<compile_context>
chip_gen: v5e
topology: v5e:2x2
jax: 0.10.0
libtpu: 0.0.40
codegen_flags: <defaults>
</compile_context>

<pallas_src>
import jax
import jax.numpy as jnp
import numpy as np
from jax import lax
from jax.experimental import pallas as pl
from jax.experimental.pallas import tpu as pltpu


def _round_up(x, m):
    return ((x + m - 1) // m) * m


# ---------------------------------------------------------------------------
# Fused char2word + LSTM input-projection kernel (row-tiled over N = T*B).
#   conv1d (single big-K matmul) -> tanh -> max-over-time
#   -> word_ch_embed residual -> x@Wih (+ gate biases) for both LSTM dirs.
# ---------------------------------------------------------------------------

def _make_char_gates_kernel(width, max_pad, fsz_max, hp4):
    def kernel(ce_ref, wv_ref, wconv_ref, bconv_ref, wp_ref, bp_ref,
               wxch_ref, wxw_ref, bg_ref, of_ref, ob_ref):
        x = ce_ref[...]                                  # (tile, W, C) f32
        tile, _, c = x.shape
        if max_pad > 0:
            z = jnp.zeros((tile, max_pad, c), x.dtype)
            xp = jnp.concatenate([z, x, z], axis=1)      # pad folded in-kernel
        else:
            xp = x
        # im2col slab in VMEM: slab[n, t, k*C + c] = xp[n, t + k, c]
        slab = jnp.concatenate([xp[:, k:k + width, :] for k in range(fsz_max)],
                               axis=2)
        slab2 = slab.reshape(tile * width, fsz_max * c)

        wconv = wconv_ref[...]
        conv = (jnp.dot(slab2.astype(wconv.dtype), wconv,
                        preferred_element_type=jnp.float32) + bconv_ref[...])
        nc = conv.shape[1]
        mots = jnp.max(jnp.tanh(conv).reshape(tile, width, nc), axis=1)

        wp = wp_ref[...]
        proj = jnp.tanh(jnp.dot(mots.astype(wp.dtype), wp,
                                preferred_element_type=jnp.float32)
                        + bp_ref[...])
        wch = mots + proj                                # (tile, NCpad)

        # LSTM input projection for both directions in one wide-N matmul
        wxch = wxch_ref[...]
        wxw = wxw_ref[...]
        gx = (jnp.dot(wch.astype(wxch.dtype), wxch,
                      preferred_element_type=jnp.float32)
              + jnp.dot(wv_ref[...].astype(wxw.dtype), wxw,
                        preferred_element_type=jnp.float32)
              + bg_ref[...])                             # (tile, 8*Hp)
        of_ref[...] = gx[:, :hp4]                        # lane-aligned halves
        ob_ref[...] = gx[:, hp4:]
    return kernel


def char_gates_pallas(ce, wv, pp, width, *, row_tile=512):
    # ce: (N, W, C) f32 char embeddings; wv: (N, word_dsz) f32 word embeddings
    n, _, c = ce.shape
    tile = min(_round_up(n, 8), row_tile)
    n_pad = _round_up(n, tile)
    if n_pad != n:
        ce = jnp.pad(ce, ((0, n_pad - n), (0, 0), (0, 0)))
        wv = jnp.pad(wv, ((0, n_pad - n), (0, 0)))
    hp4 = pp['whh_f'].shape[1]                           # 4 * Hpad

    kernel = _make_char_gates_kernel(width, pp['max_pad'], pp['fsz_max'], hp4)
    in_specs = [
        pl.BlockSpec((tile, width, c), lambda i: (i, 0, 0)),
        pl.BlockSpec((tile, wv.shape[1]), lambda i: (i, 0)),
        pl.BlockSpec(pp['w_conv'].shape, lambda i: (0, 0)),
        pl.BlockSpec(pp['b_conv'].shape, lambda i: (0, 0)),
        pl.BlockSpec(pp['w_proj'].shape, lambda i: (0, 0)),
        pl.BlockSpec(pp['b_proj'].shape, lambda i: (0, 0)),
        pl.BlockSpec(pp['wx_ch'].shape, lambda i: (0, 0)),
        pl.BlockSpec(pp['wx_w'].shape, lambda i: (0, 0)),
        pl.BlockSpec(pp['b_gates'].shape, lambda i: (0, 0)),
    ]
    out_shape = (jax.ShapeDtypeStruct((n_pad, hp4), jnp.float32),
                 jax.ShapeDtypeStruct((n_pad, hp4), jnp.float32))
    out_specs = (pl.BlockSpec((tile, hp4), lambda i: (i, 0)),
                 pl.BlockSpec((tile, hp4), lambda i: (i, 0)))
    gxf, gxb = pl.pallas_call(
        kernel,
        out_shape=out_shape,
        grid=(n_pad // tile,),
        in_specs=in_specs,
        out_specs=out_specs,
        compiler_params=pltpu.CompilerParams(
            dimension_semantics=("parallel",),
            vmem_limit_bytes=64 * 1024 * 1024),
    )(ce, wv, pp['w_conv'], pp['b_conv'], pp['w_proj'], pp['b_proj'],
      pp['wx_ch'], pp['wx_w'], pp['b_gates'])
    return gxf, gxb


# ---------------------------------------------------------------------------
# Fused bidirectional LSTM (hoisted input projection) + decoder kernel.
#   grid=(1,), fori_loop over T; per step only h@Whh per direction; fwd/bwd
#   interleaved; pack_padded semantics via precomputed mask; decoder as one
#   big epilogue matmul writing 128-lane-padded logits.
# ---------------------------------------------------------------------------

def _bilstm_decoder_kernel(mask_ref, gxf_ref, gxb_ref, whf_ref, whb_ref,
                           wdf_ref, wdb_ref, bd_ref, o_ref, hf_sc, hb_sc):
    t_len, bsz, hp4 = gxf_ref.shape
    hp = hp4 // 4
    whf = whf_ref[...]
    whb = whb_ref[...]

    def cell(g, c_prev):
        # lane-aligned gate slices (hp is a multiple of 128)
        i = jax.nn.sigmoid(g[:, 0 * hp:1 * hp])
        f = jax.nn.sigmoid(g[:, 1 * hp:2 * hp])
        u = jnp.tanh(g[:, 2 * hp:3 * hp])
        o = jax.nn.sigmoid(g[:, 3 * hp:4 * hp])
        c_new = f * c_prev + i * u
        h_new = o * jnp.tanh(c_new)
        return h_new, c_new

    def step(s, carry):
        hf, cf, hb, cb = carry
        # forward direction, time s
        vf = mask_ref[s]                                  # (B, 1)
        gf = gxf_ref[s] + jnp.dot(hf.astype(whf.dtype), whf,
                                  preferred_element_type=jnp.float32)
        hfn, cfn = cell(gf, cf)
        hf = vf * hfn + (1.0 - vf) * hf
        cf = vf * cfn + (1.0 - vf) * cf
        hf_sc[s] = vf * hf                                # zero at padded steps
        # backward direction, time T-1-s (starts at t = length-1, zero state)
        tb = t_len - 1 - s
        vb = mask_ref[tb]
        gb = gxb_ref[tb] + jnp.dot(hb.astype(whb.dtype), whb,
                                   preferred_element_type=jnp.float32)
        hbn, cbn = cell(gb, cb)
        hb = vb * hbn + (1.0 - vb) * hb
        cb = vb * cbn + (1.0 - vb) * cb
        hb_sc[tb] = vb * hb
        return (hf, cf, hb, cb)

    z = jnp.zeros((bsz, hp), jnp.float32)
    lax.fori_loop(0, t_len, step, (z, z, z, z))

    # fused decoder epilogue: one big (T*B, Hp) matmul per direction
    wdf = wdf_ref[...]
    wdb = wdb_ref[...]
    hf_all = hf_sc[...].reshape(t_len * bsz, hp)
    hb_all = hb_sc[...].reshape(t_len * bsz, hp)
    logits = (jnp.dot(hf_all.astype(wdf.dtype), wdf,
                      preferred_element_type=jnp.float32)
              + jnp.dot(hb_all.astype(wdb.dtype), wdb,
                        preferred_element_type=jnp.float32)
              + bd_ref[...])
    o_ref[...] = logits.reshape(t_len, bsz, -1)


def bilstm_decoder_pallas(mask, gxf, gxb, pp):
    t_len, bsz, hp4 = gxf.shape
    hp = hp4 // 4
    lpad = pp['wd_f'].shape[1]

    flops = (2 * 2 * t_len * bsz * hp * 4 * hp         # recurrent h@Whh matmuls
             + 2 * 2 * t_len * bsz * hp * lpad         # fused decoder
             + 2 * t_len * bsz * 16 * hp)              # gate elementwise (approx)
    transcendentals = 2 * t_len * bsz * 5 * hp
    bytes_accessed = 4 * (mask.size + gxf.size + gxb.size
                          + t_len * bsz * lpad
                          + pp['whh_f'].size + pp['whh_b'].size
                          + pp['wd_f'].size + pp['wd_b'].size + lpad)

    return pl.pallas_call(
        _bilstm_decoder_kernel,
        out_shape=jax.ShapeDtypeStruct((t_len, bsz, lpad), jnp.float32),
        grid=(1,),
        in_specs=[
            pl.BlockSpec((t_len, bsz, 1), lambda i: (0, 0, 0)),
            pl.BlockSpec((t_len, bsz, hp4), lambda i: (0, 0, 0)),
            pl.BlockSpec((t_len, bsz, hp4), lambda i: (0, 0, 0)),
            pl.BlockSpec(pp['whh_f'].shape, lambda i: (0, 0)),
            pl.BlockSpec(pp['whh_b'].shape, lambda i: (0, 0)),
            pl.BlockSpec(pp['wd_f'].shape, lambda i: (0, 0)),
            pl.BlockSpec(pp['wd_b'].shape, lambda i: (0, 0)),
            pl.BlockSpec(pp['bd'].shape, lambda i: (0, 0)),
        ],
        out_specs=pl.BlockSpec((t_len, bsz, lpad), lambda i: (0, 0, 0)),
        scratch_shapes=[pltpu.VMEM((t_len, bsz, hp), jnp.float32),
                        pltpu.VMEM((t_len, bsz, hp), jnp.float32)],
        compiler_params=pltpu.CompilerParams(
            dimension_semantics=("arbitrary",),
            vmem_limit_bytes=64 * 1024 * 1024),
        cost_estimate=pl.CostEstimate(flops=flops,
                                      transcendentals=transcendentals,
                                      bytes_accessed=bytes_accessed),
    )(mask, gxf, gxb, pp['whh_f'], pp['whh_b'],
      pp['wd_f'], pp['wd_b'], pp['bd'])


# ---------------------------------------------------------------------------
# One-time weight preprocessing: padded / fused layouts for the kernels.
# (In a real deployment do this once outside jit and cache per dtype.)
# ---------------------------------------------------------------------------

def _prepare_pallas_params(params, mxu_dtype):
    convs = params['char_convs']
    char_dsz = int(convs[0][0].shape[1])
    filtsz = [int(wc.shape[2]) for wc, _ in convs]
    wsz_list = [int(wc.shape[0]) for wc, _ in convs]
    wchsz = sum(wsz_list)
    word_dsz = int(params['wembed'].shape[1])
    hsz = int(params['whh_f'].shape[1])
    n_labels = int(params['wd'].shape[0])

    fsz_max = max(filtsz)
    max_pad = fsz_max // 2
    nc = _round_up(wchsz, 128)            # lane-padded char-feature width
    hp = _round_up(hsz, 128)              # lane-padded hidden per direction
    lp = _round_up(n_labels, 128)         # lane-padded label width

    # --- char conv: all taps along K, all filters along 128-padded N ---
    w_conv = jnp.zeros((fsz_max * char_dsz, nc), jnp.float32)
    b_conv = jnp.zeros((nc,), jnp.float32)
    col = 0
    for wc, bc in convs:
        fsz, wsz = int(wc.shape[2]), int(wc.shape[0])
        wk = jnp.transpose(wc, (2, 1, 0))                  # (fsz, C, wsz)
        off = max_pad - fsz // 2
        for j in range(fsz):
            r0 = (off + j) * char_dsz
            w_conv = w_conv.at[r0:r0 + char_dsz, col:col + wsz].set(wk[j])
        b_conv = b_conv.at[col:col + wsz].set(bc)
        col += wsz

    # --- word_ch_embed Linear (residual) ---
    w_proj = jnp.zeros((nc, nc), jnp.float32).at[:wchsz, :wchsz].set(
        params['wp'].T)
    b_proj = jnp.zeros((nc,), jnp.float32).at[:wchsz].set(params['bp'])

    # --- LSTM: gate blocks padded to Hp; input projection split ch/word ---
    def gate_pad_cols(w_in_4h):                            # (in, 4H) -> (in, 4Hp)
        out = jnp.zeros((w_in_4h.shape[0], 4 * hp), jnp.float32)
        for k in range(4):
            out = out.at[:, k * hp:k * hp + hsz].set(
                w_in_4h[:, k * hsz:(k + 1) * hsz])
        return out

    def gate_pad_vec(b_4h):
        out = jnp.zeros((4 * hp,), jnp.float32)
        for k in range(4):
            out = out.at[k * hp:k * hp + hsz].set(b_4h[k * hsz:(k + 1) * hsz])
        return out

    wxch_parts, wxw_parts, bg_parts, whh_list = [], [], [], []
    for d in ('f', 'b'):
        wih_t = params['wih_' + d].T                       # (Din, 4H)
        wxch_parts.append(jnp.zeros((nc, 4 * hp), jnp.float32)
                          .at[:wchsz].set(gate_pad_cols(wih_t[:wchsz])))
        wxw_parts.append(gate_pad_cols(wih_t[wchsz:]))     # (word_dsz, 4Hp)
        bg_parts.append(gate_pad_vec(params['bih_' + d] + params['bhh_' + d]))
        whh_list.append(jnp.zeros((hp, 4 * hp), jnp.float32)
                        .at[:hsz].set(gate_pad_cols(params['whh_' + d].T)))

    wx_ch = jnp.concatenate(wxch_parts, axis=1)            # (nc, 8Hp)
    wx_w = jnp.concatenate(wxw_parts, axis=1)              # (word_dsz, 8Hp)
    b_gates = jnp.concatenate(bg_parts)                    # (8Hp,)

    # --- decoder (fused into the LSTM epilogue), split per direction ---
    wd = params['wd']                                      # (L, 2H)
    wd_f = jnp.zeros((hp, lp), jnp.float32).at[:hsz, :n_labels].set(wd[:, :hsz].T)
    wd_b = jnp.zeros((hp, lp), jnp.float32).at[:hsz, :n_labels].set(wd[:, hsz:].T)
    bd = jnp.zeros((lp,), jnp.float32).at[:n_labels].set(params['bd'])

    m = mxu_dtype
    return {
        'fsz_max': fsz_max, 'max_pad': max_pad,
        'w_conv': w_conv.astype(m), 'b_conv': b_conv.reshape(1, nc),
        'w_proj': w_proj.astype(m), 'b_proj': b_proj.reshape(1, nc),
        'wx_ch': wx_ch.astype(m), 'wx_w': wx_w.astype(m),
        'b_gates': b_gates.reshape(1, 8 * hp),
        'whh_f': whh_list[0].astype(m), 'whh_b': whh_list[1].astype(m),
        'wd_f': wd_f.astype(m), 'wd_b': wd_b.astype(m),
        'bd': bd.reshape(1, lp),
    }


# ---------------------------------------------------------------------------
# Pure-JAX reference (same forward semantics, unpadded weights)
# ---------------------------------------------------------------------------

def char2word_ref(ce_pad, conv_params, wp_t, bp, width, max_pad):
    mots = []
    for fsz, wk, bc in conv_params:
        off = max_pad - fsz // 2
        g = jnp.zeros((ce_pad.shape[0], width, wk.shape[2]), jnp.float32)
        for k in range(fsz):
            g = g + jnp.einsum('nwc,co->nwo',
                               ce_pad[:, off + k: off + k + width, :], wk[k])
        mots.append(jnp.max(jnp.tanh(g + bc[None, None, :]), axis=1))
    m = jnp.concatenate(mots, axis=1)
    return m + jnp.tanh(m @ wp_t + bp[None, :])


def bilstm_ref(x_tbd, lengths, wf, bf, wb, bb):
    t_len, bsz, _ = x_tbd.shape
    hid = wf.shape[1] // 4
    len2d = lengths.astype(jnp.int32)[:, None]

    def cell(x_t, h, c, w, b):
        g = jnp.concatenate([x_t, h], axis=1) @ w + b[None, :]
        i, f, u, o = jnp.split(g, 4, axis=1)
        c = jax.nn.sigmoid(f) * c + jax.nn.sigmoid(i) * jnp.tanh(u)
        h = jax.nn.sigmoid(o) * jnp.tanh(c)
        return h, c

    def step(carry, s):
        hf, cf, hb, cb = carry
        vf = (s < len2d).astype(jnp.float32)
        hfn, cfn = cell(x_tbd[s], hf, cf, wf, bf)
        hf = vf * hfn + (1.0 - vf) * hf
        cf = vf * cfn + (1.0 - vf) * cf
        tb = t_len - 1 - s
        vb = (tb < len2d).astype(jnp.float32)
        hbn, cbn = cell(x_tbd[tb], hb, cb, wb, bb)
        hb = vb * hbn + (1.0 - vb) * hb
        cb = vb * cbn + (1.0 - vb) * cb
        return (hf, cf, hb, cb), (vf * hf, vb * hb)

    z = jnp.zeros((bsz, hid), jnp.float32)
    _, (of, ob_rev) = lax.scan(step, (z, z, z, z), jnp.arange(t_len))
    return jnp.concatenate([of, ob_rev[::-1]], axis=2)


# ---------------------------------------------------------------------------
# RNNTaggerModel.forward (crf=False path)
# ---------------------------------------------------------------------------

def rnn_tagger_forward(params, x_bt, xch_btw, lengths, use_pallas=True,
                       mxu_dtype=jnp.float32):
    bsz, t_len = x_bt.shape
    width = xch_btw.shape[2]
    n_labels = params['wd'].shape[0]
    filtsz = tuple(int(wc.shape[2]) for wc, _ in params['char_convs'])
    max_pad = max(filtsz) // 2

    # forward() transposes batch-first inputs to time-major
    x_tb = x_bt.T                                           # (T, B)
    xch_tbw = jnp.transpose(xch_btw, (1, 0, 2))             # (T, B, W)
    n = t_len * bsz

    # embedding lookups stay as XLA gathers (glue)
    ce = params['cembed'][xch_tbw.reshape(n, width)]        # (N, W, C)
    wv = params['wembed'][x_tb]                             # (T, B, word_dsz)

    if use_pallas:
        pp = _prepare_pallas_params(params, mxu_dtype)
        gxf, gxb = char_gates_pallas(ce, wv.reshape(n, -1), pp, width)
        hp4 = gxf.shape[1]
        gxf = gxf[:n].reshape(t_len, bsz, hp4)
        gxb = gxb[:n].reshape(t_len, bsz, hp4)
        # pack_padded_sequence mask, precomputed (keeps length compares out of
        # the per-step loop; lengths never enter the vector path)
        mask = (jnp.arange(t_len, dtype=jnp.int32)[:, None]
                < lengths.astype(jnp.int32)[None, :]).astype(jnp.float32)
        mask = mask.reshape(t_len, bsz, 1)
        logits_pad = bilstm_decoder_pallas(mask, gxf, gxb, pp)   # (T, B, Lpad)
        probv = jnp.transpose(logits_pad[:, :, :n_labels], (1, 0, 2))
    else:
        # pure-JAX reference of the same forward pass
        ce_pad = jnp.pad(ce, ((0, 0), (max_pad, max_pad), (0, 0)))
        conv_params = [(int(wc.shape[2]), jnp.transpose(wc, (2, 1, 0)), bc)
                       for wc, bc in params['char_convs']]
        wch = char2word_ref(ce_pad, conv_params, params['wp'].T, params['bp'],
                            width, max_pad)
        inp = jnp.concatenate([wch.reshape(t_len, bsz, -1), wv], axis=2)
        wf = jnp.concatenate([params['wih_f'].T, params['whh_f'].T], axis=0)
        bf = params['bih_f'] + params['bhh_f']
        wb = jnp.concatenate([params['wih_b'].T, params['whh_b'].T], axis=0)
        bb = params['bih_b'] + params['bhh_b']
        out = bilstm_ref(inp, lengths, wf, bf, wb, bb)          # (T, B, 2H)
        logits = out.reshape(n, -1) @ params['wd'].T + params['bd'][None, :]
        probv = jnp.transpose(logits.reshape(t_len, bsz, -1), (1, 0, 2))

    # crf=False branch: batched per-token argmax (valid prefix sliced by caller)
    preds_bt = jnp.argmax(probv, axis=2)                    # (B, T)
    return preds_bt, probv


# ---------------------------------------------------------------------------
# Deterministic parameter construction (shapes per RNNTaggerModel.create)
# ---------------------------------------------------------------------------

def make_params(key, *, vc, char_dsz, vw, word_dsz, filtsz, wsz, hsz, n_labels):
    keys = iter(jax.random.split(key, 64))

    def rnd(shape, scale=0.1):
        return scale * jax.random.normal(next(keys), shape, dtype=jnp.float32)

    wchsz = wsz * len(filtsz)
    din = wchsz + word_dsz
    return {
        'cembed': rnd((vc, char_dsz)),
        'wembed': rnd((vw, word_dsz)),
        # conv1d weights in torch layout (Cout, Cin, fsz)
        'char_convs': [(rnd((wsz, char_dsz, fsz)), rnd((wsz,))) for fsz in filtsz],
        # word_ch_embed Linear (torch layout: out x in)
        'wp': rnd((wchsz, wchsz)), 'bp': rnd((wchsz,)),
        # bidirectional LSTM (torch layout: 4H x in / 4H x H; gate order i,f,g,o)
        'wih_f': rnd((4 * hsz, din)), 'whh_f': rnd((4 * hsz, hsz)),
        'bih_f': rnd((4 * hsz,)), 'bhh_f': rnd((4 * hsz,)),
        'wih_b': rnd((4 * hsz, din)), 'whh_b': rnd((4 * hsz, hsz)),
        'bih_b': rnd((4 * hsz,)), 'bhh_b': rnd((4 * hsz,)),
        # decoder Linear(out_hsz=2*hsz, n_labels)
        'wd': rnd((n_labels, 2 * hsz)), 'bd': rnd((n_labels,)),
    }


if __name__ == "__main__":
    B, T, W = 2, 8, 8                 # batch, seqlen, max chars per word
    VC, CHAR_DSZ = 20, 8              # char vocab / char embedding dim
    VW, WORD_DSZ = 30, 16             # word vocab / word embedding dim
    FILTSZ, WSZ = (3, 5), 8           # cfiltsz / wsz  -> wchsz = 16
    HSZ, NLAB = 16, 10                # hidden per direction / num labels

    key = jax.random.PRNGKey(0)
    kp, kx, kc = jax.random.split(key, 3)
    params = make_params(kp, vc=VC, char_dsz=CHAR_DSZ, vw=VW, word_dsz=WORD_DSZ,
                         filtsz=FILTSZ, wsz=WSZ, hsz=HSZ, n_labels=NLAB)

    x = jax.random.randint(kx, (B, T), 0, VW, dtype=jnp.int32)       # word ids
    xch = jax.random.randint(kc, (B, T, W), 0, VC, dtype=jnp.int32)  # char ids
    lengths = jnp.array([8, 5], dtype=jnp.int32)  # sorted descending (make_input)

    fwd = jax.jit(rnn_tagger_forward, static_argnames=("use_pallas", "mxu_dtype"))

    # f32 MXU operands: tight numerics check against the pure-JAX reference
    preds_bt, probv = fwd(params, x, xch, lengths, use_pallas=True)
    probv = jax.block_until_ready(probv)
    preds_bt = jax.block_until_ready(preds_bt)

    _, probv_ref = fwd(params, x, xch, lengths, use_pallas=False)
    np.testing.assert_allclose(np.asarray(probv), np.asarray(probv_ref),
                               rtol=1e-4, atol=1e-4)

    # per-sample predictions over the valid prefix (host-side slicing only)
    lens_np = np.asarray(lengths)
    preds = [np.asarray(preds_bt)[b, :int(lens_np[b])] for b in range(B)]
    assert len(preds) == B and preds[0].shape[0] == int(lens_np[0])

    # bf16 MXU operands (recommended on v6e/v7x): smoke run, f32 accumulation
    _, probv_bf16 = fwd(params, x, xch, lengths, use_pallas=True,
                        mxu_dtype=jnp.bfloat16)
    probv_bf16 = jax.block_until_ready(probv_bf16)
    assert probv_bf16.shape == probv.shape
    assert bool(jnp.all(jnp.isfinite(probv_bf16)))

    print("KERNEL_OK")
</pallas_src>

<mosaic_0001>
module attributes {stable_mosaic.version = 11 : i64} {
  func.func @kernel(%arg0: i32, %arg1: memref<16x8x8xf32, #tpu.memory_space<vmem>>, %arg2: memref<16x16xf32, #tpu.memory_space<vmem>>, %arg3: memref<40x128xf32, #tpu.memory_space<vmem>>, %arg4: memref<1x128xf32, #tpu.memory_space<vmem>>, %arg5: memref<128x128xf32, #tpu.memory_space<vmem>>, %arg6: memref<1x128xf32, #tpu.memory_space<vmem>>, %arg7: memref<128x1024xf32, #tpu.memory_space<vmem>>, %arg8: memref<16x1024xf32, #tpu.memory_space<vmem>>, %arg9: memref<1x1024xf32, #tpu.memory_space<vmem>>, %arg10: memref<16x512xf32, #tpu.memory_space<vmem>>, %arg11: memref<16x512xf32, #tpu.memory_space<vmem>>) attributes {dimension_semantics = [#tpu.dimension_semantics<parallel>], iteration_bounds = array<i64: 1>, scalar_prefetch = 0 : i64, scratch_operands = 0 : i64, tpu.core_type = #tpu.core_type<tc>, window_params = [{transform_indices = @transform_0, window_bounds = array<i64: 16, 8, 8>}, {transform_indices = @transform_1, window_bounds = array<i64: 16, 16>}, {pipeline_mode = #tpu.pipeline_mode<synchronous>, transform_indices = @transform_2, window_bounds = array<i64: 40, 128>}, {pipeline_mode = #tpu.pipeline_mode<synchronous>, transform_indices = @transform_3, window_bounds = array<i64: 1, 128>}, {pipeline_mode = #tpu.pipeline_mode<synchronous>, transform_indices = @transform_4, window_bounds = array<i64: 128, 128>}, {pipeline_mode = #tpu.pipeline_mode<synchronous>, transform_indices = @transform_5, window_bounds = array<i64: 1, 128>}, {pipeline_mode = #tpu.pipeline_mode<synchronous>, transform_indices = @transform_6, window_bounds = array<i64: 128, 1024>}, {pipeline_mode = #tpu.pipeline_mode<synchronous>, transform_indices = @transform_7, window_bounds = array<i64: 16, 1024>}, {pipeline_mode = #tpu.pipeline_mode<synchronous>, transform_indices = @transform_8, window_bounds = array<i64: 1, 1024>}, {transform_indices = @transform_9, window_bounds = array<i64: 16, 512>}, {transform_indices = @transform_10, window_bounds = array<i64: 16, 512>}]} {
    %c0 = arith.constant 0 : index
    %c0_0 = arith.constant 0 : index
    %c0_1 = arith.constant 0 : index
    %0 = vector.load %arg1[%c0, %c0_0, %c0_1] : memref<16x8x8xf32, #tpu.memory_space<vmem>>, vector<16x8x8xf32>
    %cst = arith.constant 0.000000e+00 : f32
    %1 = vector.broadcast %cst : f32 to vector<16x2x8xf32>
    %2 = tpu.concatenate %1, %0, %1 in 1 : vector<16x2x8xf32>, vector<16x8x8xf32>, vector<16x2x8xf32> -> vector<16x12x8xf32>
    %3 = vector.extract_strided_slice %2 {offsets = [0, 0, 0], sizes = [16, 8, 8], strides = [1, 1, 1]} : vector<16x12x8xf32> to vector<16x8x8xf32>
    %4 = vector.extract_strided_slice %2 {offsets = [0, 1, 0], sizes = [16, 8, 8], strides = [1, 1, 1]} : vector<16x12x8xf32> to vector<16x8x8xf32>
    %5 = vector.extract_strided_slice %2 {offsets = [0, 2, 0], sizes = [16, 8, 8], strides = [1, 1, 1]} : vector<16x12x8xf32> to vector<16x8x8xf32>
    %6 = vector.extract_strided_slice %2 {offsets = [0, 3, 0], sizes = [16, 8, 8], strides = [1, 1, 1]} : vector<16x12x8xf32> to vector<16x8x8xf32>
    %7 = vector.extract_strided_slice %2 {offsets = [0, 4, 0], sizes = [16, 8, 8], strides = [1, 1, 1]} : vector<16x12x8xf32> to vector<16x8x8xf32>
    %8 = tpu.concatenate %3, %4, %5, %6, %7 in 2 : vector<16x8x8xf32>, vector<16x8x8xf32>, vector<16x8x8xf32>, vector<16x8x8xf32>, vector<16x8x8xf32> -> vector<16x8x40xf32>
    %9 = vector.shape_cast %8 : vector<16x8x40xf32> to vector<128x40xf32>
    %c0_2 = arith.constant 0 : index
    %c0_3 = arith.constant 0 : index
    %10 = vector.load %arg3[%c0_2, %c0_3] : memref<40x128xf32, #tpu.memory_space<vmem>>, vector<40x128xf32>
    %cst_4 = arith.constant dense<0.000000e+00> : vector<128x128xf32>
    %11 = tpu.matmul %9, %10, %cst_4 {dimension_numbers = #tpu.dot_dimension_numbers<[1], [0], [0], [1], [0, 0, 1, 1], [], []>} : vector<128x40xf32>, vector<40x128xf32>, vector<128x128xf32> -> vector<128x128xf32>
    %c0_5 = arith.constant 0 : index
    %c0_6 = arith.constant 0 : index
    %12 = vector.load %arg4[%c0_5, %c0_6] : memref<1x128xf32, #tpu.memory_space<vmem>>, vector<1x128xf32>
    %13 = vector.broadcast %12 : vector<1x128xf32> to vector<128x128xf32>
    %14 = arith.addf %11, %13 : vector<128x128xf32>
    %15 = math.tanh %14 : vector<128x128xf32>
    %16 = vector.shape_cast %15 : vector<128x128xf32> to vector<16x8x128xf32>
    %cst_7 = arith.constant dense<0xFF800000> : vector<16x128xf32>
    %17 = vector.multi_reduction <maximumf>, %16, %cst_7 [1] : vector<16x8x128xf32> to vector<16x128xf32>
    %c0_8 = arith.constant 0 : index
    %c0_9 = arith.constant 0 : index
    %18 = vector.load %arg5[%c0_8, %c0_9] : memref<128x128xf32, #tpu.memory_space<vmem>>, vector<128x128xf32>
    %cst_10 = arith.constant dense<0.000000e+00> : vector<16x128xf32>
    %19 = tpu.matmul %17, %18, %cst_10 {dimension_numbers = #tpu.dot_dimension_numbers<[1], [0], [0], [1], [0, 0, 1, 1], [], []>} : vector<16x128xf32>, vector<128x128xf32>, vector<16x128xf32> -> vector<16x128xf32>
    %c0_11 = arith.constant 0 : index
    %c0_12 = arith.constant 0 : index
    %20 = vector.load %arg6[%c0_11, %c0_12] : memref<1x128xf32, #tpu.memory_space<vmem>>, vector<1x128xf32>
    %21 = vector.broadcast %20 : vector<1x128xf32> to vector<16x128xf32>
    %22 = arith.addf %19, %21 : vector<16x128xf32>
    %23 = math.tanh %22 : vector<16x128xf32>
    %24 = arith.addf %17, %23 : vector<16x128xf32>
    %c0_13 = arith.constant 0 : index
    %c0_14 = arith.constant 0 : index
    %25 = vector.load %arg7[%c0_13, %c0_14] : memref<128x1024xf32, #tpu.memory_space<vmem>>, vector<128x1024xf32>
    %c0_15 = arith.constant 0 : index
    %c0_16 = arith.constant 0 : index
    %26 = vector.load %arg8[%c0_15, %c0_16] : memref<16x1024xf32, #tpu.memory_space<vmem>>, vector<16x1024xf32>
    %cst_17 = arith.constant dense<0.000000e+00> : vector<16x1024xf32>
    %27 = tpu.matmul %24, %25, %cst_17 {dimension_numbers = #tpu.dot_dimension_numbers<[1], [0], [0], [1], [0, 0, 1, 1], [], []>} : vector<16x128xf32>, vector<128x1024xf32>, vector<16x1024xf32> -> vector<16x1024xf32>
    %c0_18 = arith.constant 0 : index
    %c0_19 = arith.constant 0 : index
    %28 = vector.load %arg2[%c0_18, %c0_19] : memref<16x16xf32, #tpu.memory_space<vmem>>, vector<16x16xf32>
    %cst_20 = arith.constant dense<0.000000e+00> : vector<16x1024xf32>
    %29 = tpu.matmul %28, %26, %cst_20 {dimension_numbers = #tpu.dot_dimension_numbers<[1], [0], [0], [1], [0, 0, 1, 1], [], []>} : vector<16x16xf32>, vector<16x1024xf32>, vector<16x1024xf32> -> vector<16x1024xf32>
    %30 = arith.addf %27, %29 : vector<16x1024xf32>
    %c0_21 = arith.constant 0 : index
    %c0_22 = arith.constant 0 : index
    %31 = vector.load %arg9[%c0_21, %c0_22] : memref<1x1024xf32, #tpu.memory_space<vmem>>, vector<1x1024xf32>
    %32 = vector.broadcast %31 : vector<1x1024xf32> to vector<16x1024xf32>
    %33 = arith.addf %30, %32 : vector<16x1024xf32>
    %34 = vector.extract_strided_slice %33 {offsets = [0, 0], sizes = [16, 512], strides = [1, 1]} : vector<16x1024xf32> to vector<16x512xf32>
    %c0_23 = arith.constant 0 : index
    %c0_24 = arith.constant 0 : index
    %35 = vector.load %arg10[%c0_23, %c0_24] : memref<16x512xf32, #tpu.memory_space<vmem>>, vector<16x512xf32>
    tpu.vector_store %arg10[%c0_23, %c0_24], %34 {strides = array<i32>} : memref<16x512xf32, #tpu.memory_space<vmem>>, vector<16x512xf32>,
    %36 = vector.extract_strided_slice %33 {offsets = [0, 512], sizes = [16, 512], strides = [1, 1]} : vector<16x1024xf32> to vector<16x512xf32>
    %c0_25 = arith.constant 0 : index
    %c0_26 = arith.constant 0 : index
    %37 = vector.load %arg11[%c0_25, %c0_26] : memref<16x512xf32, #tpu.memory_space<vmem>>, vector<16x512xf32>
    tpu.vector_store %arg11[%c0_25, %c0_26], %36 {strides = array<i32>} : memref<16x512xf32, #tpu.memory_space<vmem>>, vector<16x512xf32>,
    return
  }
  func.func @transform_0(%arg0: i32) -> (i32, i32, i32) {
    %c0_i32 = arith.constant 0 : i32
    %c0_i32_0 = arith.constant 0 : i32
    %c0_i32_1 = arith.constant 0 : i32
    return %arg0, %c0_i32, %c0_i32_0 : i32, i32, i32
  }
  func.func @transform_1(%arg0: i32) -> (i32, i32) {
    %c0_i32 = arith.constant 0 : i32
    %c0_i32_0 = arith.constant 0 : i32
    return %arg0, %c0_i32 : i32, i32
  }
  func.func @transform_2(%arg0: i32) -> (i32, i32) {
    %c0_i32 = arith.constant 0 : i32
    %c0_i32_0 = arith.constant 0 : i32
    %c0_i32_1 = arith.constant 0 : i32
    return %c0_i32, %c0_i32_0 : i32, i32
  }
  func.func @transform_3(%arg0: i32) -> (i32, i32) {
    %c0_i32 = arith.constant 0 : i32
    %c0_i32_0 = arith.constant 0 : i32
    %c0_i32_1 = arith.constant 0 : i32
    return %c0_i32, %c0_i32_0 : i32, i32
  }
  func.func @transform_4(%arg0: i32) -> (i32, i32) {
    %c0_i32 = arith.constant 0 : i32
    %c0_i32_0 = arith.constant 0 : i32
    %c0_i32_1 = arith.constant 0 : i32
    return %c0_i32, %c0_i32_0 : i32, i32
  }
  func.func @transform_5(%arg0: i32) -> (i32, i32) {
    %c0_i32 = arith.constant 0 : i32
    %c0_i32_0 = arith.constant 0 : i32
    %c0_i32_1 = arith.constant 0 : i32
    return %c0_i32, %c0_i32_0 : i32, i32
  }
  func.func @transform_6(%arg0: i32) -> (i32, i32) {
    %c0_i32 = arith.constant 0 : i32
    %c0_i32_0 = arith.constant 0 : i32
    %c0_i32_1 = arith.constant 0 : i32
    return %c0_i32, %c0_i32_0 : i32, i32
  }
  func.func @transform_7(%arg0: i32) -> (i32, i32) {
    %c0_i32 = arith.constant 0 : i32
    %c0_i32_0 = arith.constant 0 : i32
    %c0_i32_1 = arith.constant 0 : i32
    return %c0_i32, %c0_i32_0 : i32, i32
  }
  func.func @transform_8(%arg0: i32) -> (i32, i32) {
    %c0_i32 = arith.constant 0 : i32
    %c0_i32_0 = arith.constant 0 : i32
    %c0_i32_1 = arith.constant 0 : i32
    return %c0_i32, %c0_i32_0 : i32, i32
  }
  func.func @transform_9(%arg0: i32) -> (i32, i32) {
    %c0_i32 = arith.constant 0 : i32
    %c0_i32_0 = arith.constant 0 : i32
    return %arg0, %c0_i32 : i32, i32
  }
  func.func @transform_10(%arg0: i32) -> (i32, i32) {
    %c0_i32 = arith.constant 0 : i32
    %c0_i32_0 = arith.constant 0 : i32
    return %arg0, %c0_i32 : i32, i32
  }
}

module attributes {stable_mosaic.version = 11 : i64} {
  func.func @_bilstm_decoder_kernel(%arg0: i32, %arg1: memref<8x2x1xf32, #tpu.memory_space<vmem>>, %arg2: memref<8x2x512xf32, #tpu.memory_space<vmem>>, %arg3: memref<8x2x512xf32, #tpu.memory_space<vmem>>, %arg4: memref<128x512xf32, #tpu.memory_space<vmem>>, %arg5: memref<128x512xf32, #tpu.memory_space<vmem>>, %arg6: memref<128x128xf32, #tpu.memory_space<vmem>>, %arg7: memref<128x128xf32, #tpu.memory_space<vmem>>, %arg8: memref<1x128xf32, #tpu.memory_space<vmem>>, %arg9: memref<8x2x128xf32, #tpu.memory_space<vmem>>, %arg10: memref<8x2x128xf32, #tpu.memory_space<vmem>>, %arg11: memref<8x2x128xf32, #tpu.memory_space<vmem>>) attributes {dimension_semantics = [#tpu.dimension_semantics<arbitrary>], iteration_bounds = array<i64: 1>, scalar_prefetch = 0 : i64, scratch_operands = 2 : i64, tpu.core_type = #tpu.core_type<tc>, window_params = [{pipeline_mode = #tpu.pipeline_mode<synchronous>, transform_indices = @transform_0, window_bounds = array<i64: 8, 2, 1>}, {pipeline_mode = #tpu.pipeline_mode<synchronous>, transform_indices = @transform_1, window_bounds = array<i64: 8, 2, 512>}, {pipeline_mode = #tpu.pipeline_mode<synchronous>, transform_indices = @transform_2, window_bounds = array<i64: 8, 2, 512>}, {pipeline_mode = #tpu.pipeline_mode<synchronous>, transform_indices = @transform_3, window_bounds = array<i64: 128, 512>}, {pipeline_mode = #tpu.pipeline_mode<synchronous>, transform_indices = @transform_4, window_bounds = array<i64: 128, 512>}, {pipeline_mode = #tpu.pipeline_mode<synchronous>, transform_indices = @transform_5, window_bounds = array<i64: 128, 128>}, {pipeline_mode = #tpu.pipeline_mode<synchronous>, transform_indices = @transform_6, window_bounds = array<i64: 128, 128>}, {pipeline_mode = #tpu.pipeline_mode<synchronous>, transform_indices = @transform_7, window_bounds = array<i64: 1, 128>}, {pipeline_mode = #tpu.pipeline_mode<synchronous>, transform_indices = @transform_8, window_bounds = array<i64: 8, 2, 128>}]} {
    %c0 = arith.constant 0 : index
    %c0_0 = arith.constant 0 : index
    %0 = vector.load %arg4[%c0, %c0_0] : memref<128x512xf32, #tpu.memory_space<vmem>>, vector<128x512xf32>
    %c0_1 = arith.constant 0 : index
    %c0_2 = arith.constant 0 : index
    %1 = vector.load %arg5[%c0_1, %c0_2] : memref<128x512xf32, #tpu.memory_space<vmem>>, vector<128x512xf32>
    %cst = arith.constant 0.000000e+00 : f32
    %2 = vector.broadcast %cst : f32 to vector<2x128xf32>
    %c0_i32 = arith.constant 0 : i32
    %c8_i32 = arith.constant 8 : i32
    %3 = arith.addi %c0_i32, %c8_i32 : i32
    %c1_i32 = arith.constant 1 : i32
    %4:4 = scf.for %arg12 = %c0_i32 to %3 step %c1_i32 iter_args(%arg13 = %2, %arg14 = %2, %arg15 = %2, %arg16 = %2) -> (vector<2x128xf32>, vector<2x128xf32>, vector<2x128xf32>, vector<2x128xf32>)  : i32 {
      %19 = arith.index_cast %arg12 : i32 to index
      %c0_21 = arith.constant 0 : index
      %c0_22 = arith.constant 0 : index
      %20 = vector.load %arg1[%19, %c0_21, %c0_22] : memref<8x2x1xf32, #tpu.memory_space<vmem>>, vector<1x2x1xf32>
      %21 = vector.shape_cast %20 : vector<1x2x1xf32> to vector<2x1xf32>
      %22 = arith.index_cast %arg12 : i32 to index
      %c0_23 = arith.constant 0 : index
      %c0_24 = arith.constant 0 : index
      %23 = vector.load %arg2[%22, %c0_23, %c0_24] : memref<8x2x512xf32, #tpu.memory_space<vmem>>, vector<1x2x512xf32>
      %24 = vector.shape_cast %23 : vector<1x2x512xf32> to vector<2x512xf32>
      %cst_25 = arith.constant dense<0.000000e+00> : vector<2x512xf32>
      %25 = tpu.matmul %arg13, %0, %cst_25 {dimension_numbers = #tpu.dot_dimension_numbers<[1], [0], [0], [1], [0, 0, 1, 1], [], []>} : vector<2x128xf32>, vector<128x512xf32>, vector<2x512xf32> -> vector<2x512xf32>
      %26 = arith.addf %24, %25 : vector<2x512xf32>
      %27 = vector.extract_strided_slice %26 {offsets = [0, 0], sizes = [2, 128], strides = [1, 1]} : vector<2x512xf32> to vector<2x128xf32>
      %28 = arith.negf %27 : vector<2x128xf32>
      %29 = math.exp %28 : vector<2x128xf32>
      %cst_26 = arith.constant 1.000000e+00 : f32
      %30 = vector.broadcast %cst_26 : f32 to vector<2x128xf32>
      %31 = arith.addf %30, %29 : vector<2x128xf32>
      %32 = arith.divf %30, %31 : vector<2x128xf32>
      %33 = vector.extract_strided_slice %26 {offsets = [0, 128], sizes = [2, 128], strides = [1, 1]} : vector<2x512xf32> to vector<2x128xf32>
      %34 = arith.negf %33 : vector<2x128xf32>
      %35 = math.exp %34 : vector<2x128xf32>
      %cst_27 = arith.constant 1.000000e+00 : f32
      %36 = vector.broadcast %cst_27 : f32 to vector<2x128xf32>
      %37 = arith.addf %36, %35 : vector<2x128xf32>
      %38 = arith.divf %36, %37 : vector<2x128xf32>
      %39 = vector.extract_strided_slice %26 {offsets = [0, 256], sizes = [2, 128], strides = [1, 1]} : vector<2x512xf32> to vector<2x128xf32>
      %40 = math.tanh %39 : vector<2x128xf32>
      %41 = vector.extract_strided_slice %26 {offsets = [0, 384], sizes = [2, 128], strides = [1, 1]} : vector<2x512xf32> to vector<2x128xf32>
      %42 = arith.negf %41 : vector<2x128xf32>
      %43 = math.exp %42 : vector<2x128xf32>
      %cst_28 = arith.constant 1.000000e+00 : f32
      %44 = vector.broadcast %cst_28 : f32 to vector<2x128xf32>
      %45 = arith.addf %44, %43 : vector<2x128xf32>
      %46 = arith.divf %44, %45 : vector<2x128xf32>
      %47 = arith.mulf %38, %arg14 : vector<2x128xf32>
      %48 = arith.mulf %32, %40 : vector<2x128xf32>
      %49 = arith.addf %47, %48 : vector<2x128xf32>
      %50 = math.tanh %49 : vector<2x128xf32>
      %51 = arith.mulf %46, %50 : vector<2x128xf32>
      %52 = vector.broadcast %21 : vector<2x1xf32> to vector<2x128xf32>
      %53 = arith.mulf %52, %51 : vector<2x128xf32>
      %cst_29 = arith.constant 1.000000e+00 : f32
      %54 = vector.broadcast %cst_29 : f32 to vector<2x1xf32>
      %55 = arith.subf %54, %21 : vector<2x1xf32>
      %56 = vector.broadcast %55 : vector<2x1xf32> to vector<2x128xf32>
      %57 = arith.mulf %56, %arg13 : vector<2x128xf32>
      %58 = arith.addf %53, %57 : vector<2x128xf32>
      %59 = vector.broadcast %21 : vector<2x1xf32> to vector<2x128xf32>
      %60 = arith.mulf %59, %49 : vector<2x128xf32>
      %cst_30 = arith.constant 1.000000e+00 : f32
      %61 = vector.broadcast %cst_30 : f32 to vector<2x1xf32>
      %62 = arith.subf %61, %21 : vector<2x1xf32>
      %63 = vector.broadcast %62 : vector<2x1xf32> to vector<2x128xf32>
      %64 = arith.mulf %63, %arg14 : vector<2x128xf32>
      %65 = arith.addf %60, %64 : vector<2x128xf32>
      %66 = vector.broadcast %21 : vector<2x1xf32> to vector<2x128xf32>
      %67 = arith.mulf %66, %58 : vector<2x128xf32>
      %68 = arith.index_cast %arg12 : i32 to index
      %c0_31 = arith.constant 0 : index
      %c0_32 = arith.constant 0 : index
      %69 = vector.load %arg10[%68, %c0_31, %c0_32] : memref<8x2x128xf32, #tpu.memory_space<vmem>>, vector<1x2x128xf32>
      %70 = vector.shape_cast %69 : vector<1x2x128xf32> to vector<2x128xf32>
      %71 = vector.shape_cast %67 : vector<2x128xf32> to vector<1x2x128xf32>
      tpu.vector_store %arg10[%68, %c0_31, %c0_32], %71 {strides = array<i32>} : memref<8x2x128xf32, #tpu.memory_space<vmem>>, vector<1x2x128xf32>,
      %c7_i32 = arith.constant 7 : i32
      %72 = arith.subi %c7_i32, %arg12 : i32
      %73 = arith.index_cast %72 : i32 to index
      %c0_33 = arith.constant 0 : index
      %c0_34 = arith.constant 0 : index
      %74 = vector.load %arg1[%73, %c0_33, %c0_34] : memref<8x2x1xf32, #tpu.memory_space<vmem>>, vector<1x2x1xf32>
      %75 = vector.shape_cast %74 : vector<1x2x1xf32> to vector<2x1xf32>
      %76 = arith.index_cast %72 : i32 to index
      %c0_35 = arith.constant 0 : index
      %c0_36 = arith.constant 0 : index
      %77 = vector.load %arg3[%76, %c0_35, %c0_36] : memref<8x2x512xf32, #tpu.memory_space<vmem>>, vector<1x2x512xf32>
      %78 = vector.shape_cast %77 : vector<1x2x512xf32> to vector<2x512xf32>
      %cst_37 = arith.constant dense<0.000000e+00> : vector<2x512xf32>
      %79 = tpu.matmul %arg15, %1, %cst_37 {dimension_numbers = #tpu.dot_dimension_numbers<[1], [0], [0], [1], [0, 0, 1, 1], [], []>} : vector<2x128xf32>, vector<128x512xf32>, vector<2x512xf32> -> vector<2x512xf32>
      %80 = arith.addf %78, %79 : vector<2x512xf32>
      %81 = vector.extract_strided_slice %80 {offsets = [0, 0], sizes = [2, 128], strides = [1, 1]} : vector<2x512xf32> to vector<2x128xf32>
      %82 = arith.negf %81 : vector<2x128xf32>
      %83 = math.exp %82 : vector<2x128xf32>
      %cst_38 = arith.constant 1.000000e+00 : f32
      %84 = vector.broadcast %cst_38 : f32 to vector<2x128xf32>
      %85 = arith.addf %84, %83 : vector<2x128xf32>
      %86 = arith.divf %84, %85 : vector<2x128xf32>
      %87 = vector.extract_strided_slice %80 {offsets = [0, 128], sizes = [2, 128], strides = [1, 1]} : vector<2x512xf32> to vector<2x128xf32>
      %88 = arith.negf %87 : vector<2x128xf32>
      %89 = math.exp %88 : vector<2x128xf32>
      %cst_39 = arith.constant 1.000000e+00 : f32
      %90 = vector.broadcast %cst_39 : f32 to vector<2x128xf32>
      %91 = arith.addf %90, %89 : vector<2x128xf32>
      %92 = arith.divf %90, %91 : vector<2x128xf32>
      %93 = vector.extract_strided_slice %80 {offsets = [0, 256], sizes = [2, 128], strides = [1, 1]} : vector<2x512xf32> to vector<2x128xf32>
      %94 = math.tanh %93 : vector<2x128xf32>
      %95 = vector.extract_strided_slice %80 {offsets = [0, 384], sizes = [2, 128], strides = [1, 1]} : vector<2x512xf32> to vector<2x128xf32>
      %96 = arith.negf %95 : vector<2x128xf32>
      %97 = math.exp %96 : vector<2x128xf32>
      %cst_40 = arith.constant 1.000000e+00 : f32
      %98 = vector.broadcast %cst_40 : f32 to vector<2x128xf32>
      %99 = arith.addf %98, %97 : vector<2x128xf32>
      %100 = arith.divf %98, %99 : vector<2x128xf32>
      %101 = arith.mulf %92, %arg16 : vector<2x128xf32>
      %102 = arith.mulf %86, %94 : vector<2x128xf32>
      %103 = arith.addf %101, %102 : vector<2x128xf32>
      %104 = math.tanh %103 : vector<2x128xf32>
      %105 = arith.mulf %100, %104 : vector<2x128xf32>
      %106 = vector.broadcast %75 : vector<2x1xf32> to vector<2x128xf32>
      %107 = arith.mulf %106, %105 : vector<2x128xf32>
      %cst_41 = arith.constant 1.000000e+00 : f32
      %108 = vector.broadcast %cst_41 : f32 to vector<2x1xf32>
      %109 = arith.subf %108, %75 : vector<2x1xf32>
      %110 = vector.broadcast %109 : vector<2x1xf32> to vector<2x128xf32>
      %111 = arith.mulf %110, %arg15 : vector<2x128xf32>
      %112 = arith.addf %107, %111 : vector<2x128xf32>
      %113 = vector.broadcast %75 : vector<2x1xf32> to vector<2x128xf32>
      %114 = arith.mulf %113, %103 : vector<2x128xf32>
      %cst_42 = arith.constant 1.000000e+00 : f32
      %115 = vector.broadcast %cst_42 : f32 to vector<2x1xf32>
      %116 = arith.subf %115, %75 : vector<2x1xf32>
      %117 = vector.broadcast %116 : vector<2x1xf32> to vector<2x128xf32>
      %118 = arith.mulf %117, %arg16 : vector<2x128xf32>
      %119 = arith.addf %114, %118 : vector<2x128xf32>
      %120 = vector.broadcast %75 : vector<2x1xf32> to vector<2x128xf32>
      %121 = arith.mulf %120, %112 : vector<2x128xf32>
      %122 = arith.index_cast %72 : i32 to index
      %c0_43 = arith.constant 0 : index
      %c0_44 = arith.constant 0 : index
      %123 = vector.load %arg11[%122, %c0_43, %c0_44] : memref<8x2x128xf32, #tpu.memory_space<vmem>>, vector<1x2x128xf32>
      %124 = vector.shape_cast %123 : vector<1x2x128xf32> to vector<2x128xf32>
      %125 = vector.shape_cast %121 : vector<2x128xf32> to vector<1x2x128xf32>
      tpu.vector_store %arg11[%122, %c0_43, %c0_44], %125 {strides = array<i32>} : memref<8x2x128xf32, #tpu.memory_space<vmem>>, vector<1x2x128xf32>,
      scf.yield %58, %65, %112, %119 : vector<2x128xf32>, vector<2x128xf32>, vector<2x128xf32>, vector<2x128xf32>
    }
    %c8_i32_3 = arith.constant 8 : i32
    %c0_4 = arith.constant 0 : index
    %c0_5 = arith.constant 0 : index
    %5 = vector.load %arg6[%c0_4, %c0_5] : memref<128x128xf32, #tpu.memory_space<vmem>>, vector<128x128xf32>
    %c0_6 = arith.constant 0 : index
    %c0_7 = arith.constant 0 : index
    %6 = vector.load %arg7[%c0_6, %c0_7] : memref<128x128xf32, #tpu.memory_space<vmem>>, vector<128x128xf32>
    %c0_8 = arith.constant 0 : index
    %c0_9 = arith.constant 0 : index
    %c0_10 = arith.constant 0 : index
    %7 = vector.load %arg10[%c0_8, %c0_9, %c0_10] : memref<8x2x128xf32, #tpu.memory_space<vmem>>, vector<8x2x128xf32>
    %8 = vector.shape_cast %7 : vector<8x2x128xf32> to vector<16x128xf32>
    %c0_11 = arith.constant 0 : index
    %c0_12 = arith.constant 0 : index
    %c0_13 = arith.constant 0 : index
    %9 = vector.load %arg11[%c0_11, %c0_12, %c0_13] : memref<8x2x128xf32, #tpu.memory_space<vmem>>, vector<8x2x128xf32>
    %10 = vector.shape_cast %9 : vector<8x2x128xf32> to vector<16x128xf32>
    %cst_14 = arith.constant dense<0.000000e+00> : vector<16x128xf32>
    %11 = tpu.matmul %8, %5, %cst_14 {dimension_numbers = #tpu.dot_dimension_numbers<[1], [0], [0], [1], [0, 0, 1, 1], [], []>} : vector<16x128xf32>, vector<128x128xf32>, vector<16x128xf32> -> vector<16x128xf32>
    %cst_15 = arith.constant dense<0.000000e+00> : vector<16x128xf32>
    %12 = tpu.matmul %10, %6, %cst_15 {dimension_numbers = #tpu.dot_dimension_numbers<[1], [0], [0], [1], [0, 0, 1, 1], [], []>} : vector<16x128xf32>, vector<128x128xf32>, vector<16x128xf32> -> vector<16x128xf32>
    %13 = arith.addf %11, %12 : vector<16x128xf32>
    %c0_16 = arith.constant 0 : index
    %c0_17 = arith.constant 0 : index
    %14 = vector.load %arg8[%c0_16, %c0_17] : memref<1x128xf32, #tpu.memory_space<vmem>>, vector<1x128xf32>
    %15 = vector.broadcast %14 : vector<1x128xf32> to vector<16x128xf32>
    %16 = arith.addf %13, %15 : vector<16x128xf32>
    %17 = vector.shape_cast %16 : vector<16x128xf32> to vector<8x2x128xf32>
    %c0_18 = arith.constant 0 : index
    %c0_19 = arith.constant 0 : index
    %c0_20 = arith.constant 0 : index
    %18 = vector.load %arg9[%c0_18, %c0_19, %c0_20] : memref<8x2x128xf32, #tpu.memory_space<vmem>>, vector<8x2x128xf32>
    tpu.vector_store %arg9[%c0_18, %c0_19, %c0_20], %17 {strides = array<i32>} : memref<8x2x128xf32, #tpu.memory_space<vmem>>, vector<8x2x128xf32>,
    return
  }
  func.func @transform_0(%arg0: i32) -> (i32, i32, i32) {
    %c0_i32 = arith.constant 0 : i32
    %c0_i32_0 = arith.constant 0 : i32
    %c0_i32_1 = arith.constant 0 : i32
    %c0_i32_2 = arith.constant 0 : i32
    return %c0_i32, %c0_i32_0, %c0_i32_1 : i32, i32, i32
  }
  func.func @transform_1(%arg0: i32) -> (i32, i32, i32) {
    %c0_i32 = arith.constant 0 : i32
    %c0_i32_0 = arith.constant 0 : i32
    %c0_i32_1 = arith.constant 0 : i32
    %c0_i32_2 = arith.constant 0 : i32
    return %c0_i32, %c0_i32_0, %c0_i32_1 : i32, i32, i32
  }
  func.func @transform_2(%arg0: i32) -> (i32, i32, i32) {
    %c0_i32 = arith.constant 0 : i32
    %c0_i32_0 = arith.constant 0 : i32
    %c0_i32_1 = arith.constant 0 : i32
    %c0_i32_2 = arith.constant 0 : i32
    return %c0_i32, %c0_i32_0, %c0_i32_1 : i32, i32, i32
  }
  func.func @transform_3(%arg0: i32) -> (i32, i32) {
    %c0_i32 = arith.constant 0 : i32
    %c0_i32_0 = arith.constant 0 : i32
    %c0_i32_1 = arith.constant 0 : i32
    return %c0_i32, %c0_i32_0 : i32, i32
  }
  func.func @transform_4(%arg0: i32) -> (i32, i32) {
    %c0_i32 = arith.constant 0 : i32
    %c0_i32_0 = arith.constant 0 : i32
    %c0_i32_1 = arith.constant 0 : i32
    return %c0_i32, %c0_i32_0 : i32, i32
  }
  func.func @transform_5(%arg0: i32) -> (i32, i32) {
    %c0_i32 = arith.constant 0 : i32
    %c0_i32_0 = arith.constant 0 : i32
    %c0_i32_1 = arith.constant 0 : i32
    return %c0_i32, %c0_i32_0 : i32, i32
  }
  func.func @transform_6(%arg0: i32) -> (i32, i32) {
    %c0_i32 = arith.constant 0 : i32
    %c0_i32_0 = arith.constant 0 : i32
    %c0_i32_1 = arith.constant 0 : i32
    return %c0_i32, %c0_i32_0 : i32, i32
  }
  func.func @transform_7(%arg0: i32) -> (i32, i32) {
    %c0_i32 = arith.constant 0 : i32
    %c0_i32_0 = arith.constant 0 : i32
    %c0_i32_1 = arith.constant 0 : i32
    return %c0_i32, %c0_i32_0 : i32, i32
  }
  func.func @transform_8(%arg0: i32) -> (i32, i32, i32) {
    %c0_i32 = arith.constant 0 : i32
    %c0_i32_0 = arith.constant 0 : i32
    %c0_i32_1 = arith.constant 0 : i32
    %c0_i32_2 = arith.constant 0 : i32
    return %c0_i32, %c0_i32_0, %c0_i32_1 : i32, i32, i32
  }
}

</mosaic_0001>

<bundles_post_ra>
// kernel: rnn_tagger_forward.2
= control target key start
LH: loop header
LB: loop body
LE: loop exit
PB: predicated region body
PF: predicated region fallthrough
CT: control target
= control target key end

     0   :  { %vm98_vm0 = vcmask 1041408   ;;  %vm163_vm1 = vcmask 1046528   ;;  %vm357_vm2 = vcmask 1044480   ;;  %s1700_s17 = smov 8   ;;  %s1701_s18 = smov 24   ;;  %vm260_vm3 = vcmask 1045504   ;;  %s2999_s0 = inlined_call_operand.vmem [shape: f32[16,8,8], index: 0, kind: input, shape index: {}]   ;;  %s3000_s2 = inlined_call_operand.vmem [shape: f32[40,128], index: 2, kind: input, shape index: {}]   ;;  %s3001_s3 = inlined_call_operand.vmem [shape: f32[1,128], index: 3, kind: input, shape index: {}]   ;;  %s3002_s4 = inlined_call_operand.vmem [shape: f32[128,128], index: 4, kind: input, shape index: {}]   ;;  %s3003_s5 = inlined_call_operand.vmem [shape: f32[1,128], index: 5, kind: input, shape index: {}]   ;;  %s3004_s7 = inlined_call_operand.vmem [shape: f32[16,1024], index: 7, kind: input, shape index: {}]   ;;  %s3005_s1 = inlined_call_operand.vmem [shape: f32[16,16], index: 1, kind: input, shape index: {}]   ;;  %s3006_s6 = inlined_call_operand.vmem [shape: f32[128,1024], index: 6, kind: input, shape index: {}]   ;;  %s3007_s8 = inlined_call_operand.vmem [shape: f32[1,1024], index: 8, kind: input, shape index: {}]   ;;  %s3008_s9 = inlined_call_operand.vmem [shape: f32[16,512], index: 9, kind: output, shape index: {0}]   ;;  %s3009_s10 = inlined_call_operand.vmem [shape: f32[16,512], index: 10, kind: output, shape index: {1}]  }
   0x1   :  { %v34_v0 = vld [vmem:[%s2999_s0] sm:$0xff]  ;;  %v35_v1 = vld [vmem:[%s2999_s0 + $0x8] sm:$0xff]  ;;  %vm454_vm4 = vcmask 1043456   ;;  %v36_v23 = vld [vmem:[%s2999_s0 + $0x10] sm:$0xff]  ;;  %s1702_s21 = smov 16   ;;  %s1703_s22 = smov 32  }
   0x2   :  { %v66_v2 = vrot.slane %v34_v0, 6  ;;  %v67_v5 = vrot.slane %v35_v1, 6  ;;  %v68_v27 = vrot.slane %v36_v23, 6  ;;  %v37_v36 = vld [vmem:[%s2999_s0 + $0x18] sm:$0xff]  ;;  %v38_v51 = vld [vmem:[%s2999_s0 + $0x20] sm:$0xff]  ;;  %vm551_vm5 = vcmask 64512  }
   0x3   :  { %v69_v40 = vrot.slane %v37_v36, 6  ;;  %v70_v57 = vrot.slane %v38_v51, 6  ;;  %vm568_vm6 = vcmask 130048   ;;  %vm585_vm7 = vcmask 195584  }
   0x4   :  { %v1766_v3 = vsel %vm98_vm0, 0.0, %v66_v2  ;;  %v115_v4 = vsel %vm98_vm0, %v66_v2, 0.0  ;;  %v1777_v14 = vsel %vm98_vm0, 0.0, %v67_v5  ;;  %v116_v15 = vsel %vm98_vm0, %v67_v5, 0.0 }
   0x5   :  { %v164_v6 = vrot.slane %v1766_v3, 1  ;;  %v165_v7 = vrot.slane %v115_v4, 1  ;;  %v358_v8 = vrot.slane %v1766_v3, 3  ;;  %v359_v9 = vrot.slane %v115_v4, 3 }
   0x6   :  { %v261_v12 = vrot.slane %v1766_v3, 2  ;;  %v262_v13 = vrot.slane %v115_v4, 2  ;;  %v455_v16 = vrot.slane %v1766_v3, 4  ;;  %v456_v17 = vrot.slane %v115_v4, 4 }
   0x7   :  { %v166_v10 = vsel %vm163_vm1, %v164_v6, %v165_v7  ;;  %v360_v11 = vsel %vm357_vm2, %v358_v8, %v359_v9  ;;  %v167_v18 = vrot.slane %v1777_v14, 1  ;;  %v168_v19 = vrot.slane %v116_v15, 1  ;;  %v39_v8 = vld [vmem:[%s2999_s0 + $0x28] sm:$0xff] }
   0x8   :  { %212 = vrot.lane.b32.xlu0 %v166_v10, %s1700_s17  ;;  %406 = vrot.lane.b32.xlu1 %v360_v11, %s1701_s18  ;;  %v263_v21 = vsel %vm260_vm3, %v261_v12, %v262_v13  ;;  %v457_v22 = vsel %vm454_vm4, %v455_v16, %v456_v17  ;;  %v264_v24 = vrot.slane %v1777_v14, 2  ;;  %v265_v25 = vrot.slane %v116_v15, 2 }
   0x9   :  { %v169_v20 = vsel %vm163_vm1, %v167_v18, %v168_v19  ;;  %v361_v26 = vrot.slane %v1777_v14, 3  ;;  %v362_v28 = vrot.slane %v116_v15, 3  ;;  %v458_v29 = vrot.slane %v1777_v14, 4 }
   0xa   :  { %214 = vrot.lane.b32.xlu2 %v169_v20, %s1700_s17  ;;  %v459_v30 = vrot.slane %v116_v15, 4  ;;  %v266_v31 = vsel %vm260_vm3, %v264_v24, %v265_v25  ;;  %v1796_v32 = vsel %vm98_vm0, 0.0, %v68_v27  ;;  %v117_v33 = vsel %vm98_vm0, %v68_v27, 0.0  ;;  %v40_v24 = vld [vmem:[%s2999_s0 + $0x30] sm:$0xff] }
   0xb   :  { %v363_v34 = vsel %vm357_vm2, %v361_v26, %v362_v28  ;;  %v170_v37 = vrot.slane %v1796_v32, 1  ;;  %v171_v38 = vrot.slane %v117_v33, 1  ;;  %v267_v39 = vrot.slane %v1796_v32, 2 }
   0xc   :  { %v460_v35 = vsel %vm454_vm4, %v458_v29, %v459_v30  ;;  %v268_v41 = vrot.slane %v117_v33, 2  ;;  %v364_v42 = vrot.slane %v1796_v32, 3  ;;  %v365_v43 = vrot.slane %v117_v33, 3 }
   0xd   :  { %v172_v44 = vsel %vm163_vm1, %v170_v37, %v171_v38  ;;  %v1812_v45 = vsel %vm98_vm0, 0.0, %v69_v40  ;;  %v461_v48 = vrot.slane %v1796_v32, 4  ;;  %v462_v49 = vrot.slane %v117_v33, 4  ;;  %v41_v38 = vld [vmem:[%s2999_s0 + $0x38] sm:$0xff] }
   0xe   :  { %v269_v46 = vsel %vm260_vm3, %v267_v39, %v268_v41  ;;  %v366_v47 = vsel %vm357_vm2, %v364_v42, %v365_v43  ;;  %v118_v50 = vsel %vm98_vm0, %v69_v40, 0.0  ;;  %v173_v52 = vrot.slane %v1812_v45, 1 }
   0xf   :  { %v174_v53 = vrot.slane %v118_v50, 1  ;;  %v270_v54 = vrot.slane %v1812_v45, 2  ;;  %v271_v55 = vrot.slane %v118_v50, 2  ;;  %v463_v56 = vsel %vm454_vm4, %v461_v48, %v462_v49 }
  0x10   :  { %309 = vrot.lane.b32.xlu0 %v263_v21, %s1702_s21  ;;  %503 = vrot.lane.b32.xlu1 %v457_v22, %s1703_s22  ;;  %v367_v60 = vrot.slane %v1812_v45, 3  ;;  %v368_v61 = vrot.slane %v118_v50, 3  ;;  %v1832_v62 = vsel %vm98_vm0, 0.0, %v70_v57  ;;  %v119_v63 = vsel %vm98_vm0, %v70_v57, 0.0 }
  0x11   :  { %v175_v58 = vsel %vm163_vm1, %v173_v52, %v174_v53  ;;  %v272_v59 = vsel %vm260_vm3, %v270_v54, %v271_v55  ;;  %v464_v0 = vrot.slane %v1812_v45, 4  ;;  %v465_v1 = vrot.slane %v118_v50, 4 }
  0x12   :  { %311 = vrot.lane.b32.xlu2 %v266_v31, %s1702_s21  ;;  %v176_v2 = vrot.slane %v1832_v62, 1  ;;  %v177_v4 = vrot.slane %v119_v63, 1  ;;  %v369_v5 = vsel %vm357_vm2, %v367_v60, %v368_v61  ;;  %v273_v9 = vrot.slane %v1832_v62, 2 }
  0x13   :  { %v466_v6 = vsel %vm454_vm4, %v464_v0, %v465_v1  ;;  %v274_v10 = vrot.slane %v119_v63, 2  ;;  %v370_v11 = vrot.slane %v1832_v62, 3  ;;  %v71_v12 = vrot.slane %v39_v8, 6 }
  0x14   :  { %v178_v7 = vsel %vm163_vm1, %v176_v2, %v177_v4  ;;  %v371_v13 = vrot.slane %v119_v63, 3  ;;  %v467_v15 = vrot.slane %v1832_v62, 4  ;;  %v468_v16 = vrot.slane %v119_v63, 4 }
  0x15   :  { %v275_v17 = vsel %vm260_vm3, %v273_v9, %v274_v10  ;;  %v1853_v18 = vsel %vm98_vm0, 0.0, %v71_v12  ;;  %v120_v19 = vsel %vm98_vm0, %v71_v12, 0.0  ;;  %v72_v29 = vrot.slane %v40_v24, 6  ;;  %v43_v12 = vld [vmem:[%s2999_s0 + $0x48] sm:$0xff] }
  0x16   :  { %v372_v20 = vsel %vm357_vm2, %v370_v11, %v371_v13  ;;  %v469_v21 = vsel %vm454_vm4, %v467_v15, %v468_v16  ;;  %v179_v22 = vrot.slane %v1853_v18, 1  ;;  %v180_v23 = vrot.slane %v120_v19, 1 }
  0x17   :  { %v276_v25 = vrot.slane %v1853_v18, 2  ;;  %v277_v26 = vrot.slane %v120_v19, 2  ;;  %v373_v27 = vrot.slane %v1853_v18, 3  ;;  %v374_v28 = vrot.slane %v120_v19, 3 }
  0x18   :  { %408 = vrot.lane.b32.xlu0 %v363_v34, %s1701_s18  ;;  %505 = vrot.lane.b32.xlu1 %v460_v35, %s1703_s22  ;;  %v181_v30 = vsel %vm163_vm1, %v179_v22, %v180_v23  ;;  %v1872_v34 = vsel %vm98_vm0, 0.0, %v72_v29  ;;  %v470_v35 = vrot.slane %v1853_v18, 4  ;;  %v471_v36 = vrot.slane %v120_v19, 4  ;;  %v622_v22 = vld [vmem:[%s3000_s2 + $0x18] sm:$0xff] }
  0x19   :  { %v278_v31 = vsel %vm260_vm3, %v276_v25, %v277_v26  ;;  %v375_v33 = vsel %vm357_vm2, %v373_v27, %v374_v28  ;;  %v121_v37 = vsel %vm98_vm0, %v72_v29, 0.0  ;;  %v182_v39 = vrot.slane %v1872_v34, 1  ;;  %v44_v29 = vld [vmem:[%s2999_s0 + $0x50] sm:$0xff] }
  0x1a   :  { %216 = vrot.lane.b32.xlu2 %v172_v44, %s1700_s17  ;;  %v183_v40 = vrot.slane %v121_v37, 1  ;;  %v279_v41 = vrot.slane %v1872_v34, 2  ;;  %v280_v42 = vrot.slane %v121_v37, 2  ;;  %v472_v43 = vsel %vm454_vm4, %v470_v35, %v471_v36 }
  0x1b   :  { %v73_v44 = vrot.slane %v41_v38, 6  ;;  %v376_v48 = vrot.slane %v1872_v34, 3  ;;  %v377_v49 = vrot.slane %v121_v37, 3  ;;  %v473_v52 = vrot.slane %v1872_v34, 4 }
  0x1c   :  { %v474_v53 = vrot.slane %v121_v37, 4  ;;  %v75_v19 = vrot.slane %v43_v12, 6  ;;  %v76_v38 = vrot.slane %v44_v29, 6  ;;  %v46_v12 = vld [vmem:[%s2999_s0 + $0x60] sm:$0xff]  ;;  %vm602_vm8 = vcmask 261120  }
  0x1d   :  { %v1889_v50 = vsel %vm98_vm0, 0.0, %v73_v44  ;;  %v122_v51 = vsel %vm98_vm0, %v73_v44, 0.0  ;;  %vm628_vm9 = vcmask 326656   ;;  %vm890_vm10 = vcmask 1041409  }
  0x1e   :  { %v185_v54 = vrot.slane %v1889_v50, 1  ;;  %v186_v55 = vrot.slane %v122_v51, 1  ;;  %v475_v57 = vsel %vm454_vm4, %v473_v52, %v474_v53  ;;  %v282_v60 = vrot.slane %v1889_v50, 2 }
  0x1f   :  { %v283_v61 = vrot.slane %v122_v51, 2  ;;  %v379_v63 = vrot.slane %v1889_v50, 3  ;;  %v380_v1 = vrot.slane %v122_v51, 3  ;;  %v476_v2 = vrot.slane %v1889_v50, 4 }
  0x20   :  { %313 = vrot.lane.b32.xlu0 %v269_v46, %s1702_s21  ;;  %410 = vrot.lane.b32.xlu1 %v366_v47, %s1701_s18  ;;  %v184_v46 = vsel %vm163_vm1, %v182_v39, %v183_v40  ;;  %v281_v47 = vsel %vm260_vm3, %v279_v41, %v280_v42  ;;  %v477_v4 = vrot.slane %v122_v51, 4  ;;  %v1935_v25 = vsel %vm98_vm0, 0.0, %v75_v19  ;;  %v620_v39 = vld [vmem:[%s3000_s2 + $0x8] sm:$0xff]  ;;  %v619_v40 = vld [vmem:[%s3000_s2] sm:$0xff] }
  0x21   :  { %v381_v8 = vsel %vm357_vm2, %v379_v63, %v380_v1  ;;  %v124_v28 = vsel %vm98_vm0, %v75_v19, 0.0  ;;  %v288_v35 = vrot.slane %v1935_v25, 2  ;;  %vm892_vm11 = vcmask 1042434  }
  0x22   :  { %507 = vrot.lane.b32.xlu2 %v463_v56, %s1703_s22  ;;  %v378_v56 = vsel %vm357_vm2, %v376_v48, %v377_v49  ;;  %v478_v9 = vsel %vm454_vm4, %v476_v2, %v477_v4  ;;  %v289_v36 = vrot.slane %v124_v28, 2  ;;  %v386_v44 = vrot.slane %v124_v28, 3 }
  0x23   :  { %v482_v49 = vrot.slane %v1935_v25, 4  ;;  %v483_v51 = vrot.slane %v124_v28, 4  ;;  %vm894_vm12 = vcmask 1043459   ;;  %vm896_vm13 = vcmask 1044484  }
  0x24   :  { %v290_v42 = vsel %vm260_vm3, %v288_v35, %v289_v36  ;;  %vm898_vm14 = vcmask 1045509   ;;  %vm900_vm15 = vcmask 1046534  }
  0x28   :  { %218 = vrot.lane.b32.xlu0 %v175_v58, %s1700_s17  ;;  %315 = vrot.lane.b32.xlu1 %v272_v59, %s1702_s21  ;;  %v187_v58 = vsel %vm163_vm1, %v185_v54, %v186_v55  ;;  %v42_v59 = vld [vmem:[%s2999_s0 + $0x40] sm:$0xff]  ;;  %v484_v55 = vsel %vm454_vm4, %v482_v49, %v483_v51 }
  0x29   :  { %v74_v0 = vrot.slane %v42_v59, 6 }
  0x2a   :  { %412 = vrot.lane.b32.xlu2 %v369_v5, %s1701_s18  ;;  %v284_v5 = vsel %vm260_vm3, %v282_v60, %v283_v61 }
  0x30   :  { %509 = vrot.lane.b32.xlu0 %v466_v6, %s1703_s22  ;;  %220 = vrot.lane.b32.xlu1 %v178_v7, %s1700_s17  ;;  %v1910_v6 = vsel %vm98_vm0, 0.0, %v74_v0  ;;  %v123_v7 = vsel %vm98_vm0, %v74_v0, 0.0 }
  0x31   :  { %v188_v10 = vrot.slane %v1910_v6, 1  ;;  %v189_v11 = vrot.slane %v123_v7, 1  ;;  %v285_v13 = vrot.slane %v1910_v6, 2  ;;  %v286_v15 = vrot.slane %v123_v7, 2 }
  0x32   :  { %317 = vrot.lane.b32.xlu2 %v275_v17, %s1702_s21  ;;  %v382_v16 = vrot.slane %v1910_v6, 3  ;;  %v383_v17 = vrot.slane %v123_v7, 3  ;;  %v479_v26 = vrot.slane %v1910_v6, 4  ;;  %v480_v27 = vrot.slane %v123_v7, 4 }
  0x33   :  { %v287_v23 = vsel %vm260_vm3, %v285_v13, %v286_v15 }
  0x34   :  { %v384_v24 = vsel %vm357_vm2, %v382_v16, %v383_v17  ;;  %v481_v37 = vsel %vm454_vm4, %v479_v26, %v480_v27 }
  0x38   :  { %414 = vrot.lane.b32.xlu0 %v372_v20, %s1701_s18  ;;  %511 = vrot.lane.b32.xlu1 %v469_v21, %s1703_s22  ;;  %v190_v20 = vsel %vm163_vm1, %v188_v10, %v189_v11  ;;  %v623_v21 = vld [vmem:[%s3000_s2 + $0x20] sm:$0xff] }
  0x39   :  { %688 = vmatpush.msra.mxu0 %v623_v21 }
  0x3a   :  { %222 = vrot.lane.b32.xlu2 %v181_v30, %s1700_s17  ;;  %v191_v30 = vrot.slane %v1935_v25, 1 }
  0x3b   :  { %689 = vmatpush.msra.mxu0 %v622_v22 }
  0x40   :  { %319 = vrot.lane.b32.xlu0 %v278_v31, %s1702_s21  ;;  %416 = vrot.lane.b32.xlu1 %v375_v33, %s1701_s18  ;;  %v621_v31 = vld [vmem:[%s3000_s2 + $0x10] sm:$0xff]  ;;  %v192_v33 = vrot.slane %v124_v28, 1 }
  0x41   :  { %690 = vmatpush.msra.mxu0 %v621_v31 }
  0x42   :  { %513 = vrot.lane.b32.xlu2 %v472_v43, %s1703_s22  ;;  %v193_v41 = vsel %vm163_vm1, %v191_v30, %v192_v33  ;;  %v385_v43 = vrot.slane %v1935_v25, 3  ;;  %v47_v33 = vld [vmem:[%s2999_s0 + $0x68] sm:$0xff] }
  0x43   :  { %691 = vmatpush.msra.mxu0 %v620_v39 }
  0x44   :  { %v387_v54 = vsel %vm357_vm2, %v385_v43, %v386_v44  ;;  %v79_v43 = vrot.slane %v47_v33, 6 }
  0x45   :  { %692 = vmatpush.msra.mxu0 %v619_v40 }
  0x48   :  { %224 = vrot.lane.b32.xlu0 %v184_v46, %s1700_s17  ;;  %321 = vrot.lane.b32.xlu1 %v281_v47, %s1702_s21  ;;  %v1961_v46 = vsel %vm98_vm0, 0.0, %v76_v38  ;;  %v125_v47 = vsel %vm98_vm0, %v76_v38, 0.0 }
  0x49   :  { %v194_v52 = vrot.slane %v1961_v46, 1  ;;  %v195_v53 = vrot.slane %v125_v47, 1  ;;  %v292_v59 = vrot.slane %v125_v47, 2  ;;  %v388_v61 = vrot.slane %v1961_v46, 3 }
  0x4a   :  { %418 = vrot.lane.b32.xlu2 %v378_v56, %s1701_s18  ;;  %v389_v0 = vrot.slane %v125_v47, 3  ;;  %v485_v1 = vrot.slane %v1961_v46, 4  ;;  %v486_v2 = vrot.slane %v125_v47, 4 }
  0x4b   :  { %v196_v56 = vsel %vm163_vm1, %v194_v52, %v195_v53 }
  0x50   :  { %515 = vrot.lane.b32.xlu0 %v475_v57, %s1703_s22  ;;  %226 = vrot.lane.b32.xlu1 %v187_v58, %s1700_s17  ;;  %v45_v57 = vld [vmem:[%s2999_s0 + $0x58] sm:$0xff]  ;;  %v291_v58 = vrot.slane %v1961_v46, 2 }
  0x51   :  { %v77_v63 = vrot.slane %v45_v57, 6 }
  0x52   :  { %323 = vrot.lane.b32.xlu2 %v284_v5, %s1702_s21  ;;  %v293_v4 = vsel %vm260_vm3, %v291_v58, %v292_v59 }
  0x53   :  { %v1986_v5 = vsel %vm98_vm0, 0.0, %v77_v63  ;;  %v126_v7 = vsel %vm98_vm0, %v77_v63, 0.0 }
  0x54   :  { %v197_v10 = vrot.slane %v1986_v5, 1  ;;  %v198_v11 = vrot.slane %v126_v7, 1  ;;  %v294_v15 = vrot.slane %v1986_v5, 2  ;;  %v295_v16 = vrot.slane %v126_v7, 2 }
  0x55   :  { %v391_v17 = vrot.slane %v1986_v5, 3  ;;  %v392_v19 = vrot.slane %v126_v7, 3  ;;  %v488_v29 = vrot.slane %v1986_v5, 4  ;;  %v489_v30 = vrot.slane %v126_v7, 4 }
  0x56   :  { %v199_v21 = vsel %vm163_vm1, %v197_v10, %v198_v11 }
  0x57   :  { %v393_v26 = vsel %vm357_vm2, %v391_v17, %v392_v19  ;;  %v490_v39 = vsel %vm454_vm4, %v488_v29, %v489_v30 }
  0x58   :  { %420 = vrot.lane.b32.xlu0 %v381_v8, %s1701_s18  ;;  %517 = vrot.lane.b32.xlu1 %v478_v9, %s1703_s22  ;;  %v390_v8 = vsel %vm357_vm2, %v388_v61, %v389_v0  ;;  %v487_v9 = vsel %vm454_vm4, %v485_v1, %v486_v2 }
  0x5a   :  { %228 = vrot.lane.b32.xlu2 %v190_v20, %s1700_s17  ;;  %v78_v20 = vrot.slane %v46_v12, 6 }
  0x5c   :  { %v2007_v27 = vsel %vm98_vm0, 0.0, %v78_v20  ;;  %v127_v28 = vsel %vm98_vm0, %v78_v20, 0.0 }
  0x5d   :  { %v200_v35 = vrot.slane %v2007_v27, 1  ;;  %v201_v36 = vrot.slane %v127_v28, 1  ;;  %v298_v38 = vrot.slane %v127_v28, 2  ;;  %v394_v53 = vrot.slane %v2007_v27, 3 }
  0x5e   :  { %v491_v58 = vrot.slane %v2007_v27, 4  ;;  %v492_v59 = vrot.slane %v127_v28, 4 }
  0x5f   :  { %v202_v49 = vsel %vm163_vm1, %v200_v35, %v201_v36  ;;  %v49_v36 = vld [vmem:[%s2999_s0 + $0x78] sm:$0xff] }
  0x60   :  { %325 = vrot.lane.b32.xlu0 %v287_v23, %s1702_s21  ;;  %422 = vrot.lane.b32.xlu1 %v384_v24, %s1701_s18  ;;  %v296_v24 = vsel %vm260_vm3, %v294_v15, %v295_v16 }
  0x62   :  { %519 = vrot.lane.b32.xlu2 %v481_v37, %s1703_s22  ;;  %v297_v37 = vrot.slane %v2007_v27, 2 }
  0x64   :  { %v1964_v48 = vpop.permute.xlu2 %214  ;;  %v299_v52 = vsel %vm260_vm3, %v297_v37, %v298_v38 }
  0x65   :  { %v553_v57 = vsel %vm551_vm5, %v1777_v14, %v1964_v48  ;;  %v493_v48 = vsel %vm454_vm4, %v491_v58, %v492_v59 }
  0x68   :  { %230 = vrot.lane.b32.xlu0 %v193_v41, %s1700_s17  ;;  %327 = vrot.lane.b32.xlu1 %v290_v42, %s1702_s21 }
  0x6a   :  { %424 = vrot.lane.b32.xlu2 %v387_v54, %s1701_s18  ;;  %v2032_v54 = vsel %vm98_vm0, 0.0, %v79_v43 }
  0x6b   :  { %v203_v61 = vrot.slane %v2032_v54, 1  ;;  %v300_v10 = vrot.slane %v2032_v54, 2  ;;  %v397_v15 = vrot.slane %v2032_v54, 3  ;;  %v494_v19 = vrot.slane %v2032_v54, 4 }
  0x6c   :  { %v1978_v60 = vpop.permute.xlu2 %311 }
  0x6d   :  { %v570_v1 = vsel %vm568_vm6, %v553_v57, %v1978_v60 }
  0x70   :  { %521 = vrot.lane.b32.xlu0 %v484_v55, %s1703_s22  ;;  %232 = vrot.lane.b32.xlu1 %v196_v56, %s1700_s17  ;;  %v128_v55 = vsel %vm98_vm0, %v79_v43, 0.0 }
  0x71   :  { %v204_v63 = vrot.slane %v128_v55, 1  ;;  %v301_v11 = vrot.slane %v128_v55, 2  ;;  %v398_v16 = vrot.slane %v128_v55, 3  ;;  %v495_v20 = vrot.slane %v128_v55, 4 }
  0x72   :  { %329 = vrot.lane.b32.xlu2 %v293_v4, %s1702_s21 }
  0x73   :  { %v496_v30 = vsel %vm454_vm4, %v494_v19, %v495_v20 }
  0x74   :  { %v1996_v13 = vpop.permute.xlu2 %216 }
  0x75   :  { %v554_v12 = vsel %vm551_vm5, %v1796_v32, %v1996_v13  ;;  %v399_v32 = vsel %vm357_vm2, %v397_v15, %v398_v16 }
  0x78   :  { %426 = vrot.lane.b32.xlu0 %v390_v8, %s1701_s18  ;;  %523 = vrot.lane.b32.xlu1 %v487_v9, %s1703_s22  ;;  %v205_v8 = vsel %vm163_vm1, %v203_v61, %v204_v63  ;;  %v48_v9 = vld [vmem:[%s2999_s0 + $0x70] sm:$0xff] }
  0x79   :  { %v80_v17 = vrot.slane %v48_v9, 6 }
  0x7a   :  { %v213_v22 = vpop.permute.xlu0 %212  ;;  %v407_v23 = vpop.permute.xlu1 %406  ;;  %234 = vrot.lane.b32.xlu2 %v199_v21, %s1700_s17  ;;  %v302_v21 = vsel %vm260_vm3, %v300_v10, %v301_v11 }
  0x7b   :  { %v552_v40 = vsel %vm551_vm5, %v1766_v3, %v213_v22  ;;  %v395_v3 = vrot.slane %v127_v28, 3  ;;  %v2071_v13 = vsel %vm98_vm0, 0.0, %v80_v17  ;;  %v129_v28 = vsel %vm98_vm0, %v80_v17, 0.0 }
  0x7c   :  { %v2011_v31 = vpop.permute.xlu2 %507  ;;  %v206_v33 = vrot.slane %v2071_v13, 1  ;;  %v207_v35 = vrot.slane %v129_v28, 1  ;;  %v303_v38 = vrot.slane %v2071_v13, 2  ;;  %v498_v55 = vrot.slane %v129_v28, 4 }
  0x7d   :  { %v396_v0 = vsel %vm357_vm2, %v394_v53, %v395_v3  ;;  %v497_v3 = vrot.slane %v2071_v13, 4 }
  0x80   :  { %331 = vrot.lane.b32.xlu0 %v296_v24, %s1702_s21  ;;  %428 = vrot.lane.b32.xlu1 %v393_v26, %s1701_s18 }
  0x82   :  { %v310_v41 = vpop.permute.xlu0 %309  ;;  %v504_v42 = vpop.permute.xlu1 %503  ;;  %525 = vrot.lane.b32.xlu2 %v490_v39, %s1703_s22  ;;  %v304_v39 = vrot.slane %v129_v28, 2 }
  0x83   :  { %v569_v44 = vsel %vm568_vm6, %v552_v40, %v310_v41  ;;  %v401_v40 = vrot.slane %v129_v28, 3  ;;  %v81_v41 = vrot.slane %v49_v36, 6 }
  0x84   :  { %v586_v47 = vsel %vm585_vm7, %v569_v44, %v407_v23  ;;  %v2035_v56 = vpop.permute.xlu2 %412 }
  0x85   :  { %v603_v51 = vsel %vm602_vm8, %v586_v47, %v504_v42  ;;  %v208_v42 = vsel %vm163_vm1, %v206_v33, %v207_v35  ;;  %v130_v53 = vsel %vm98_vm0, %v81_v41, 0.0 }
  0x86   :  { %1610 = vmatmul.msk.f32.vlgmr.msra.gmra.mxu0 %vm628_vm9, %v603_v51  ;;  %v210_v59 = vrot.slane %v130_v53, 1  ;;  %v307_v63 = vrot.slane %v130_v53, 2  ;;  %v404_v10 = vrot.slane %v130_v53, 3  ;;  %v501_v15 = vrot.slane %v130_v53, 4 }
  0x88   :  { %236 = vrot.lane.b32.xlu0 %v202_v49, %s1700_s17  ;;  %333 = vrot.lane.b32.xlu1 %v299_v52, %s1702_s21  ;;  %v305_v49 = vsel %vm260_vm3, %v303_v38, %v304_v39  ;;  %v2094_v52 = vsel %vm98_vm0, 0.0, %v81_v41  ;;  %vm902_vm0 = vcmask 1047559  }
  0x89   :  { %v306_v61 = vrot.slane %v2094_v52, 2  ;;  %v403_v9 = vrot.slane %v2094_v52, 3 }
  0x8a   :  { %v409_v2 = vpop.permute.xlu0 %408  ;;  %v506_v4 = vpop.permute.xlu1 %505  ;;  %430 = vrot.lane.b32.xlu2 %v396_v0, %s1701_s18  ;;  %v499_v0 = vsel %vm454_vm4, %v497_v3, %v498_v55 }
  0x8b   :  { %v587_v7 = vsel %vm585_vm7, %v570_v1, %v409_v2  ;;  %v405_v16 = vsel %vm357_vm2, %v403_v9, %v404_v10 }
  0x8c   :  { %v604_v14 = vsel %vm602_vm8, %v587_v7, %v506_v4  ;;  %v2057_v60 = vpop.permute.xlu2 %317 }
  0x8e   :  { %1611 = vmatmul.msk.f32.gmra.mxu0 %vm628_vm9, %v604_v14 }
  0x90   :  { %527 = vrot.lane.b32.xlu0 %v493_v48, %s1703_s22  ;;  %238 = vrot.lane.b32.xlu1 %v205_v8, %s1700_s17  ;;  %v308_v8 = vsel %vm260_vm3, %v306_v61, %v307_v63 }
  0x92   :  { %v314_v22 = vpop.permute.xlu0 %313  ;;  %v411_v23 = vpop.permute.xlu1 %410  ;;  %335 = vrot.lane.b32.xlu2 %v302_v21, %s1702_s21 }
  0x93   :  { %v571_v24 = vsel %vm568_vm6, %v554_v12, %v314_v22  ;;  %v500_v12 = vrot.slane %v2094_v52, 4 }
  0x94   :  { %v588_v26 = vsel %vm585_vm7, %v571_v24, %v411_v23  ;;  %v223_v37 = vpop.permute.xlu2 %222 }
  0x95   :  { %v605_v29 = vsel %vm602_vm8, %v588_v26, %v2011_v31  ;;  %v400_v31 = vrot.slane %v2071_v13, 3  ;;  %v557_v22 = vsel %vm551_vm5, %v1853_v18, %v223_v37 }
  0x96   :  { %1612 = vmatmul.msk.f32.gmra.mxu0 %vm628_vm9, %v605_v29 }
  0x97   :  { %v402_v51 = vsel %vm357_vm2, %v400_v31, %v401_v40 }
  0x98   :  { %432 = vrot.lane.b32.xlu0 %v399_v32, %s1701_s18  ;;  %529 = vrot.lane.b32.xlu1 %v496_v30, %s1703_s22 }
  0x9a   :  { %v219_v43 = vpop.permute.xlu0 %218  ;;  %v316_v44 = vpop.permute.xlu1 %315  ;;  %240 = vrot.lane.b32.xlu2 %v208_v42, %s1700_s17 }
  0x9b   :  { %v555_v47 = vsel %vm551_vm5, %v1812_v45, %v219_v43  ;;  %v209_v45 = vrot.slane %v2094_v52, 1 }
  0x9c   :  { %v514_v57 = vpop.permute.xlu2 %513  ;;  %v572_v58 = vsel %vm568_vm6, %v555_v47, %v316_v44 }
  0x9d   :  { %v589_v1 = vsel %vm585_vm7, %v572_v58, %v2035_v56  ;;  %v211_v14 = vsel %vm163_vm1, %v209_v45, %v210_v59 }
  0xa0   :  { %337 = vrot.lane.b32.xlu0 %v305_v49, %s1702_s21  ;;  %434 = vrot.lane.b32.xlu1 %v402_v51, %s1701_s18 }
  0xa2   :  { %v510_v2 = vpop.permute.xlu0 %509  ;;  %v221_v4 = vpop.permute.xlu1 %220  ;;  %531 = vrot.lane.b32.xlu2 %v499_v0, %s1703_s22 }
  0xa3   :  { %v606_v7 = vsel %vm602_vm8, %v589_v1, %v510_v2  ;;  %v556_v48 = vsel %vm551_vm5, %v1832_v62, %v221_v4 }
  0xa4   :  { %1613 = vmatmul.msk.f32.gmra.mxu0 %vm628_vm9, %v606_v7  ;;  %v419_v11 = vpop.permute.xlu2 %418  ;;  %v573_v56 = vsel %vm568_vm6, %v556_v48, %v2057_v60  ;;  %v502_v60 = vsel %vm454_vm4, %v500_v12, %v501_v15 }
  0xa8   :  { %242 = vrot.lane.b32.xlu0 %v211_v14, %s1700_s17  ;;  %339 = vrot.lane.b32.xlu1 %v308_v8, %s1702_s21 }
  0xaa   :  { %v415_v17 = vpop.permute.xlu0 %414  ;;  %v512_v62 = vpop.permute.xlu1 %511  ;;  %436 = vrot.lane.b32.xlu2 %v405_v16, %s1701_s18 }
  0xab   :  { %v590_v19 = vsel %vm585_vm7, %v573_v56, %v415_v17 }
  0xac   :  { %v607_v20 = vsel %vm602_vm8, %v590_v19, %v512_v62  ;;  %v324_v21 = vpop.permute.xlu2 %323 }
  0xad   :  { %1614 = vmatmul.msk.f32.gmra.mxu0 %vm628_vm9, %v607_v20 }
  0xb0   :  { %533 = vrot.lane.b32.xlu0 %v502_v60, %s1703_s22 }
  0xb2   :  { %v320_v23 = vpop.permute.xlu0 %319  ;;  %v417_v24 = vpop.permute.xlu1 %416 }
  0xb3   :  { %v574_v26 = vsel %vm568_vm6, %v557_v22, %v320_v23 }
  0xb4   :  { %v591_v32 = vsel %vm585_vm7, %v574_v26, %v417_v24  ;;  %v229_v29 = vpop.permute.xlu2 %228 }
  0xb5   :  { %v608_v28 = vsel %vm602_vm8, %v591_v32, %v514_v57  ;;  %v560_v49 = vsel %vm551_vm5, %v1910_v6, %v229_v29 }
  0xb6   :  { %1615 = vmatmul.msk.f32.gmra.mxu0 %vm628_vm9, %v608_v28 }
  0xba   :  { %v225_v30 = vpop.permute.xlu0 %224  ;;  %v322_v33 = vpop.permute.xlu1 %321 }
  0xbb   :  { %v558_v35 = vsel %vm551_vm5, %v1872_v34, %v225_v30 }
  0xbc   :  { %v575_v18 = vsel %vm568_vm6, %v558_v35, %v322_v33  ;;  %v520_v36 = vpop.permute.xlu2 %519 }
  0xbd   :  { %v592_v37 = vsel %vm585_vm7, %v575_v18, %v419_v11 }
  0xc2   :  { %v516_v38 = vpop.permute.xlu0 %515  ;;  %v227_v39 = vpop.permute.xlu1 %226 }
  0xc3   :  { %v609_v31 = vsel %vm602_vm8, %v592_v37, %v516_v38  ;;  %v559_v40 = vsel %vm551_vm5, %v1889_v50, %v227_v39 }
  0xc4   :  { %1616 = vmatmul.msk.f32.gmra.mxu0 %vm628_vm9, %v609_v31  ;;  %v576_v41 = vsel %vm568_vm6, %v559_v40, %v324_v21  ;;  %v425_v44 = vpop.permute.xlu2 %424 }
  0xca   :  { %v421_v42 = vpop.permute.xlu0 %420  ;;  %v518_v43 = vpop.permute.xlu1 %517 }
  0xcb   :  { %v593_v34 = vsel %vm585_vm7, %v576_v41, %v421_v42 }
  0xcc   :  { %v610_v47 = vsel %vm602_vm8, %v593_v34, %v518_v43  ;;  %v330_v57 = vpop.permute.xlu2 %329 }
  0xcd   :  { %1617 = vmatmul.msk.f32.gmra.mxu0 %vm628_vm9, %v610_v47 }
  0xd2   :  { %v326_v51 = vpop.permute.xlu0 %325  ;;  %v423_v53 = vpop.permute.xlu1 %422 }
  0xd3   :  { %v577_v3 = vsel %vm568_vm6, %v560_v49, %v326_v51 }
  0xd4   :  { %v594_v50 = vsel %vm585_vm7, %v577_v3, %v423_v53  ;;  %v235_v63 = vpop.permute.xlu2 %234  ;;  %v868_v3 = vld [vmem:[%s3002_s4 + $0x70] sm:$0xff] }
  0xd5   :  { %v611_v55 = vsel %vm602_vm8, %v594_v50, %v520_v36  ;;  %v563_v10 = vsel %vm551_vm5, %v1986_v5, %v235_v63  ;;  %v866_v50 = vld [vmem:[%s3002_s4 + $0x60] sm:$0xff]  ;;  %v861_v63 = vld [vmem:[%s3002_s4 + $0x38] sm:$0xff] }
  0xd6   :  { %1618 = vmatmul.msk.f32.gmra.mxu0 %vm628_vm9, %v611_v55  ;;  %v865_v55 = vld [vmem:[%s3002_s4 + $0x58] sm:$0xff] }
  0xda   :  { %v231_v58 = vpop.permute.xlu0 %230  ;;  %v328_v45 = vpop.permute.xlu1 %327 }
  0xdb   :  { %v561_v59 = vsel %vm551_vm5, %v1935_v25, %v231_v58 }
  0xdc   :  { %v578_v61 = vsel %vm568_vm6, %v561_v59, %v328_v45  ;;  %v526_v14 = vpop.permute.xlu2 %525  ;;  %v863_v45 = vld [vmem:[%s3002_s4 + $0x48] sm:$0xff]  ;;  %v862_v59 = vld [vmem:[%s3002_s4 + $0x40] sm:$0xff] }
  0xdd   :  { %v595_v6 = vsel %vm585_vm7, %v578_v61, %v425_v44  ;;  %v869_v44 = vld [vmem:[%s3002_s4 + $0x78] sm:$0xff]  ;;  %v2219_v61 = vld [vmem:[%s3001_s3] ss:$0 sm:$0xff] }
  0xde   :  { %913 = vmatpush.msra.mxu1 %v869_v44 }
  0xe0   :  { %914 = vmatpush.msra.mxu1 %v868_v3 }
  0xe2   :  { %v522_v0 = vpop.permute.xlu0 %521  ;;  %v233_v1 = vpop.permute.xlu1 %232 }
  0xe3   :  { %v612_v2 = vsel %vm602_vm8, %v595_v6, %v522_v0  ;;  %v562_v4 = vsel %vm551_vm5, %v1961_v46, %v233_v1  ;;  %v860_v6 = vld [vmem:[%s3002_s4 + $0x30] sm:$0xff] }
  0xe4   :  { %1619 = vmatmul.msk.f32.gmra.mxu0 %vm628_vm9, %v612_v2  ;;  %v579_v7 = vsel %vm568_vm6, %v562_v4, %v330_v57  ;;  %v431_v15 = vpop.permute.xlu2 %430  ;;  %v864_v57 = vld [vmem:[%s3002_s4 + $0x50] sm:$0xff]  ;;  %v859_v2 = vld [vmem:[%s3002_s4 + $0x28] sm:$0xff] }
  0xea   :  { %v427_v48 = vpop.permute.xlu0 %426  ;;  %v524_v8 = vpop.permute.xlu1 %523 }
  0xeb   :  { %v596_v25 = vsel %vm585_vm7, %v579_v7, %v427_v48  ;;  %v858_v48 = vld [vmem:[%s3002_s4 + $0x20] sm:$0xff] }
  0xec   :  { %v613_v9 = vsel %vm602_vm8, %v596_v25, %v524_v8  ;;  %v336_v20 = vpop.permute.xlu2 %335 }
  0xed   :  { %1620 = vmatmul.msk.f32.gmra.mxu0 %vm628_vm9, %v613_v9  ;;  %v857_v9 = vld [vmem:[%s3002_s4 + $0x18] sm:$0xff] }
  0xf2   :  { %v332_v11 = vpop.permute.xlu0 %331  ;;  %v429_v56 = vpop.permute.xlu1 %428 }
  0xf3   :  { %v580_v12 = vsel %vm568_vm6, %v563_v10, %v332_v11  ;;  %v856_v10 = vld [vmem:[%s3002_s4 + $0x10] sm:$0xff]  ;;  %v855_v11 = vld [vmem:[%s3002_s4 + $0x8] sm:$0xff] }
  0xf4   :  { %v597_v46 = vsel %vm585_vm7, %v580_v12, %v429_v56  ;;  %v241_v32 = vpop.permute.xlu2 %240 }
  0xf5   :  { %v614_v16 = vsel %vm602_vm8, %v597_v46, %v526_v14  ;;  %v566_v18 = vsel %vm551_vm5, %v2071_v13, %v241_v32 }
  0xf6   :  { %1621 = vmatmul.msk.f32.gmra.mxu0 %vm628_vm9, %v614_v16 }
  0xfa   :  { %v237_v17 = vpop.permute.xlu0 %236  ;;  %v334_v62 = vpop.permute.xlu1 %333 }
  0xfb   :  { %v564_v19 = vsel %vm551_vm5, %v2007_v27, %v237_v17 }
  0xfc   :  { %v581_v60 = vsel %vm568_vm6, %v564_v19, %v334_v62  ;;  %v532_v36 = vpop.permute.xlu2 %531 }
  0xfd   :  { %v598_v5 = vsel %vm585_vm7, %v581_v60, %v431_v15  ;;  %v854_v15 = vld [vmem:[%s3002_s4] sm:$0xff] }
 0x102   :  { %v528_v21 = vpop.permute.xlu0 %527  ;;  %v239_v22 = vpop.permute.xlu1 %238 }
 0x103   :  { %v615_v23 = vsel %vm602_vm8, %v598_v5, %v528_v21  ;;  %v565_v24 = vsel %vm551_vm5, %v2032_v54, %v239_v22  ;;  %v694_v26 = vpop.f32.mrf.mxu0 }
 0x104   :  { %1622 = vmatmul.msk.f32.gmra.mxu0 %vm628_vm9, %v615_v23  ;;  %v582_v28 = vsel %vm568_vm6, %v565_v24, %v336_v20  ;;  %v437_v13 = vpop.permute.xlu2 %436  ;;  %v695_v0 = vadd.f32 %v2219_v61, %v694_v26 }
 0x106   :  { %1664 = vtanh.f32 %v695_v0 }
 0x10a   :  { %v433_v29 = vpop.permute.xlu0 %432  ;;  %v530_v27 = vpop.permute.xlu1 %529 }
 0x10b   :  { %v599_v30 = vsel %vm585_vm7, %v582_v28, %v433_v29  ;;  %v697_v35 = vpop.f32.mrf.mxu0 }
 0x10c   :  { %v616_v33 = vsel %vm602_vm8, %v599_v30, %v530_v27  ;;  %v698_v1 = vadd.f32 %v2219_v61, %v697_v35  ;;  %v1665_v56 = vpop.eup %1664 }
 0x10d   :  { %1623 = vmatmul.msk.f32.gmra.mxu0 %vm628_vm9, %v616_v33  ;;  %v758_v21 = vrot.slane %v1665_v56, 4 }
 0x10e   :  { %1666 = vtanh.f32 %v698_v1 }
 0x10f   :  { %v759_v28 = vmax.f32 %v1665_v56, %v758_v21  ;;  %v1114_v21 = vld [vmem:[%s3004_s7] sm:$0xff] }
 0x112   :  { %v338_v37 = vpop.permute.xlu0 %337  ;;  %v435_v38 = vpop.permute.xlu1 %434 }
 0x113   :  { %v583_v54 = vsel %vm568_vm6, %v566_v18, %v338_v37  ;;  %v700_v40 = vpop.f32.mrf.mxu0 }
 0x114   :  { %v600_v39 = vsel %vm585_vm7, %v583_v54, %v435_v38  ;;  %v701_v4 = vadd.f32 %v2219_v61, %v700_v40  ;;  %v1667_v12 = vpop.eup %1666  ;;  %v760_v54 = vrot.slane %v759_v28, 2 }
 0x115   :  { %v617_v31 = vsel %vm602_vm8, %v600_v39, %v532_v36  ;;  %v764_v19 = vrot.slane %v1667_v12, 4 }
 0x116   :  { %1624 = vmatmul.msk.f32.gmra.mxu0 %vm628_vm9, %v617_v31  ;;  %1668 = vtanh.f32 %v701_v4 }
 0x117   :  { %v765_v24 = vmax.f32 %v1667_v12, %v764_v19 }
 0x119   :  { %v766_v33 = vrot.slane %v765_v24, 2 }
 0x11a   :  { %v243_v41 = vpop.permute.xlu0 %242  ;;  %v340_v43 = vpop.permute.xlu1 %339 }
 0x11b   :  { %v567_v42 = vsel %vm551_vm5, %v2094_v52, %v243_v41  ;;  %v867_v52 = vld [vmem:[%s3002_s4 + $0x68] sm:$0xff]  ;;  %v767_v41 = vmax.f32 %v765_v24, %v766_v33 }
 0x11c   :  { %v584_v34 = vsel %vm568_vm6, %v567_v42, %v340_v43  ;;  %915 = vmatpush.msra.mxu1 %v867_v52  ;;  %v1669_v46 = vpop.eup %1668 }
 0x11d   :  { %v601_v47 = vsel %vm585_vm7, %v584_v34, %v437_v13  ;;  %v770_v5 = vrot.slane %v1669_v46, 4  ;;  %v761_v13 = vmax.f32 %v759_v28, %v760_v54 }
 0x11e   :  { %916 = vmatpush.msra.mxu1 %v866_v50 }
 0x11f   :  { %v771_v32 = vmax.f32 %v1669_v46, %v770_v5  ;;  %v762_v50 = vrot.slane %v761_v13, 1  ;;  %v1122_v5 = vld [vmem:[%s3004_s7 + $0x40] sm:$0xff] }
 0x120   :  { %917 = vmatpush.msra.mxu1 %v865_v55  ;;  %1152 = vmatpush.msra.mxu2 %v1122_v5 }
 0x121   :  { %v703_v49 = vpop.f32.mrf.mxu0  ;;  %v772_v36 = vrot.slane %v771_v32, 2  ;;  %v2257_v1 = vmax.f32 %v761_v13, %v762_v50  ;;  %v1128_v13 = vld [vmem:[%s3004_s7 + $0x70] sm:$0xff] }
 0x122   :  { %v534_v51 = vpop.permute.xlu0 %533  ;;  %918 = vmatpush.msra.mxu1 %v864_v57  ;;  %v704_v14 = vadd.f32 %v2219_v61, %v703_v49  ;;  %v768_v49 = vrot.slane %v767_v41, 1  ;;  %1153 = vmatpush.msra.mxu2 %v1114_v21 }
 0x123   :  { %v618_v53 = vsel %vm602_vm8, %v601_v47, %v534_v51  ;;  %v773_v43 = vmax.f32 %v771_v32, %v772_v36  ;;  %v2302_v32 = vld [vmem:[%s3005_s1 + $0x8] sm:$0xff] }
 0x124   :  { %1625 = vmatmul.msk.f32.gmra.mxu0 %vm628_vm9, %v618_v53  ;;  %919 = vmatpush.msra.mxu1 %v863_v45  ;;  %1670 = vtanh.f32 %v704_v14  ;;  %v2253_v45 = vmax.f32 %v767_v41, %v768_v49  ;;  %v1115_v41 = vld [vmem:[%s3004_s7 + $0x8] sm:$0xff]  ;;  %v1125_v49 = vld [vmem:[%s3004_s7 + $0x58] sm:$0xff] }
 0x125   :  { %v774_v3 = vrot.slane %v773_v43, 1 }
 0x126   :  { %920 = vmatpush.msra.mxu1 %v862_v59 }
 0x128   :  { %921 = vmatpush.msra.mxu1 %v861_v63 }
 0x12a   :  { %v706_v58 = vpop.f32.mrf.mxu0  ;;  %922 = vmatpush.msra.mxu1 %v860_v6  ;;  %v1671_v16 = vpop.eup %1670  ;;  %v2255_v6 = vmax.f32 %v773_v43, %v774_v3  ;;  %v1120_v3 = vld [vmem:[%s3004_s7 + $0x30] sm:$0xff] }
 0x12b   :  { %v707_v8 = vadd.f32 %v2219_v61, %v706_v58  ;;  %v776_v22 = vrot.slane %v1671_v16, 4 }
 0x12c   :  { %923 = vmatpush.msra.mxu1 %v859_v2 }
 0x12d   :  { %1672 = vtanh.f32 %v707_v8  ;;  %v777_v29 = vmax.f32 %v1671_v16, %v776_v22  ;;  %v891_v8 = vsel %vm890_vm10, %v2253_v45, %v2257_v1  ;;  %v2293_v22 = vld [vmem:[%s3005_s1] sm:$0xff] }
 0x12e   :  { %924 = vmatpush.msra.mxu1 %v858_v48  ;;  %1626 = vmatmul.msk.f32.vlgmr.msra.gmra.mxu2 %vm568_vm6, %v2293_v22 }
 0x12f   :  { %v778_v39 = vrot.slane %v777_v29, 2 }
 0x130   :  { %925 = vmatpush.msra.mxu1 %v857_v9  ;;  %v893_v9 = vsel %vm892_vm11, %v2255_v6, %v891_v8 }
 0x131   :  { %v779_v44 = vmax.f32 %v777_v29, %v778_v39  ;;  %v1124_v29 = vld [vmem:[%s3004_s7 + $0x50] sm:$0xff] }
 0x132   :  { %926 = vmatpush.msra.mxu1 %v856_v10  ;;  %1198 = vmatpush.msrb.mxu2 %v1124_v29 }
 0x133   :  { %v709_v7 = vpop.f32.mrf.mxu0  ;;  %v1673_v62 = vpop.eup %1672  ;;  %v780_v55 = vrot.slane %v779_v44, 1 }
 0x134   :  { %v710_v25 = vadd.f32 %v2219_v61, %v709_v7  ;;  %927 = vmatpush.msra.mxu1 %v855_v11  ;;  %v782_v23 = vrot.slane %v1673_v62, 4 }
 0x135   :  { %v2259_v2 = vmax.f32 %v779_v44, %v780_v55  ;;  %v1117_v55 = vld [vmem:[%s3004_s7 + $0x18] sm:$0xff] }
 0x136   :  { %1674 = vtanh.f32 %v710_v25  ;;  %928 = vmatpush.msra.mxu1 %v854_v15  ;;  %v783_v27 = vmax.f32 %v1673_v62, %v782_v23  ;;  %1627 = vmatmul.msk.f32.gmra.mxu2 %vm568_vm6, %v2302_v32 }
 0x137   :  { %v895_v11 = vsel %vm894_vm12, %v2259_v2, %v893_v9  ;;  %v2364_v9 = vld [vmem:[%s3006_s6 + $0x3b8] sm:$0xff] }
 0x138   :  { %v784_v31 = vrot.slane %v783_v27, 2 }
 0x13a   :  { %v785_v47 = vmax.f32 %v783_v27, %v784_v31  ;;  %v1116_v27 = vld [vmem:[%s3004_s7 + $0x10] sm:$0xff]  ;;  %v1123_v31 = vld [vmem:[%s3004_s7 + $0x48] sm:$0xff] }
 0x13b   :  { %1199 = vmatpush.msrb.mxu2 %v1116_v27  ;;  %1175 = vmatpush.msra.mxu3 %v1123_v31 }
 0x13c   :  { %v1675_v60 = vpop.eup %1674  ;;  %v786_v58 = vrot.slane %v785_v47, 1 }
 0x13d   :  { %v788_v26 = vrot.slane %v1675_v60, 4  ;;  %1176 = vmatpush.msra.mxu3 %v1115_v41  ;;  %v1106_v41 = vld [vmem:[%s3006_s6 + $0x3c0] sm:$0xff] }
 0x13e   :  { %v2261_v7 = vmax.f32 %v785_v47, %v786_v58  ;;  %1630 = vmatmul.msk.f32.vlgmr.msrb.gmra.mxu2 %vm568_vm6, %v2293_v22  ;;  %1628 = vmatmul.msk.f32.vlgmr.msra.gmra.mxu3 %vm568_vm6, %v2293_v22 }
 0x13f   :  { %v789_v35 = vmax.f32 %v1675_v60, %v788_v26  ;;  %1221 = vmatpush.msrb.mxu3 %v1125_v49 }
 0x140   :  { %v897_v12 = vsel %vm896_vm13, %v2261_v7, %v895_v11 }
 0x141   :  { %v712_v17 = vpop.f32.mrf.mxu0  ;;  %v790_v42 = vrot.slane %v789_v35, 2  ;;  %1222 = vmatpush.msrb.mxu3 %v1117_v55 }
 0x142   :  { %v713_v20 = vadd.f32 %v2219_v61, %v712_v17 }
 0x143   :  { %v791_v51 = vmax.f32 %v789_v35, %v790_v42 }
 0x144   :  { %1676 = vtanh.f32 %v713_v20 }
 0x145   :  { %v792_v63 = vrot.slane %v791_v51, 1 }
 0x146   :  { %1631 = vmatmul.msk.f32.gmra.mxu2 %vm568_vm6, %v2302_v32  ;;  %1629 = vmatmul.msk.f32.gmra.mxu3 %vm568_vm6, %v2302_v32 }
 0x147   :  { %v2263_v14 = vmax.f32 %v791_v51, %v792_v63  ;;  %v1127_v63 = vld [vmem:[%s3004_s7 + $0x68] sm:$0xff] }
 0x148   :  { %1267 = vmatpush.msra.mxu3 %v1127_v63 }
 0x149   :  { %v899_v46 = vsel %vm898_vm14, %v2263_v14, %v897_v12  ;;  %v1091_v12 = vld [vmem:[%s3006_s6 + $0x348] sm:$0xff] }
 0x14a   :  { %v1677_v30 = vpop.eup %1676  ;;  %v715_v18 = vpop.f32.mrf.mxu0 }
 0x14b   :  { %v794_v37 = vrot.slane %v1677_v30, 4  ;;  %v716_v38 = vadd.f32 %v2219_v61, %v715_v18 }
 0x14d   :  { %v795_v40 = vmax.f32 %v1677_v30, %v794_v37  ;;  %1678 = vtanh.f32 %v716_v38 }
 0x14e   :  { %1632 = vmatmul.msk.f32.vlgmr.msrb.gmra.mxu3 %vm568_vm6, %v2293_v22 }
 0x14f   :  { %v796_v34 = vrot.slane %v795_v40, 2 }
 0x151   :  { %v797_v52 = vmax.f32 %v795_v40, %v796_v34  ;;  %v1126_v40 = vld [vmem:[%s3004_s7 + $0x60] sm:$0xff] }
 0x152   :  { %1244 = vmatpush.msra.mxu2 %v1126_v40  ;;  %v1118_v34 = vld [vmem:[%s3004_s7 + $0x20] sm:$0xff] }
 0x153   :  { %v1679_v53 = vpop.eup %1678  ;;  %v798_v0 = vrot.slane %v797_v52, 1  ;;  %v718_v56 = vpop.f32.mrf.mxu0 }
 0x154   :  { %v800_v57 = vrot.slane %v1679_v53, 4  ;;  %v719_v24 = vadd.f32 %v2219_v61, %v718_v56  ;;  %1245 = vmatpush.msra.mxu2 %v1118_v34  ;;  %v1119_v56 = vld [vmem:[%s3004_s7 + $0x28] sm:$0xff] }
 0x155   :  { %v2268_v25 = vmax.f32 %v797_v52, %v798_v0  ;;  %v2356_v0 = vld [vmem:[%s3006_s6 + $0x3f8] sm:$0xff]  ;;  %1268 = vmatpush.msra.mxu3 %v1119_v56  ;;  %1634 = vmatmul.msk.f32.vlgmr.msra.gmra.mxu2 %vm568_vm6, %v2293_v22 }
 0x156   :  { %v801_v59 = vmax.f32 %v1679_v53, %v800_v57  ;;  %1680 = vtanh.f32 %v719_v24  ;;  %1290 = vmatpush.msrb.mxu2 %v1128_v13  ;;  %v1107_v57 = vld [vmem:[%s3006_s6 + $0x3c8] sm:$0xff]  ;;  %1529 = vmatpush.msrb.mxu0 %v2356_v0 }
 0x157   :  { %v901_v16 = vsel %vm900_vm15, %v2268_v25, %v899_v46  ;;  %1391 = vmatpush.msrb.mxu1 %v1107_v57  ;;  %1368 = vmatpush.msrb.mxu3 %v1106_v41  ;;  %v1043_v41 = vld [vmem:[%s3006_s6 + $0x1c8] sm:$0xff] }
 0x158   :  { %v802_v4 = vrot.slane %v801_v59, 2  ;;  %1291 = vmatpush.msrb.mxu2 %v1120_v3  ;;  %1530 = vmatpush.msrb.mxu0 %v2364_v9 }
 0x159   :  { %1633 = vmatmul.msk.f32.gmra.mxu3 %vm568_vm6, %v2302_v32 }
 0x15a   :  { %v803_v48 = vmax.f32 %v801_v59, %v802_v4  ;;  %v1099_v4 = vld [vmem:[%s3006_s6 + $0x388] sm:$0xff] }
 0x15b   :  { %1392 = vmatpush.msrb.mxu1 %v1099_v4 }
 0x15c   :  { %v804_v10 = vrot.slane %v803_v48, 1  ;;  %v1681_v37 = vpop.eup %1680 }
 0x15d   :  { %v806_v51 = vrot.slane %v1681_v37, 4  ;;  %1393 = vmatpush.msrb.mxu1 %v1091_v12  ;;  %1635 = vmatmul.msk.f32.gmra.mxu2 %vm568_vm6, %v2302_v32  ;;  %v1108_v12 = vld [vmem:[%s3006_s6 + $0x3d0] sm:$0xff] }
 0x15e   :  { %v2276_v15 = vmax.f32 %v803_v48, %v804_v10 }
 0x15f   :  { %v807_v10 = vmax.f32 %v1681_v37, %v806_v51 }
 0x160   :  { %v903_v17 = vsel %vm902_vm0, %v2276_v15, %v901_v16  ;;  %v2376_v16 = vld [vmem:[%s3006_s6 + $0x378] sm:$0xff] }
 0x161   :  { %929 = vmatmul.f32.vlgmr.msra.gmra.mxu1 %v903_v17  ;;  %v721_v62 = vpop.f32.mrf.mxu0  ;;  %v808_v24 = vrot.slane %v807_v10, 2  ;;  %1531 = vmatpush.msrb.mxu0 %v2376_v16 }
 0x162   :  { %v722_v26 = vadd.f32 %v2219_v61, %v721_v62  ;;  %1636 = vmatmul.msk.f32.vlgmr.msra.gmra.mxu3 %vm568_vm6, %v2293_v22 }
 0x164   :  { %1682 = vtanh.f32 %v722_v26 }
 0x165   :  { %1638 = vmatmul.msk.f32.vlgmr.msrb.gmra.mxu2 %vm568_vm6, %v2293_v22 }
 0x16a   :  { %v724_v19 = vpop.f32.mrf.mxu0  ;;  %v1683_v38 = vpop.eup %1682  ;;  %1637 = vmatmul.msk.f32.gmra.mxu3 %vm568_vm6, %v2302_v32 }
 0x16b   :  { %v725_v28 = vadd.f32 %v2219_v61, %v724_v19  ;;  %v812_v43 = vrot.slane %v1683_v38, 4 }
 0x16d   :  { %1684 = vtanh.f32 %v725_v28  ;;  %v813_v58 = vmax.f32 %v1683_v38, %v812_v43  ;;  %v1129_v28 = vld [vmem:[%s3004_s7 + $0x78] sm:$0xff]  ;;  %1639 = vmatmul.msk.f32.gmra.mxu2 %vm568_vm6, %v2302_v32 }
 0x16e   :  { %1313 = vmatpush.msra.mxu2 %v1129_v28  ;;  %v1076_v28 = vld [vmem:[%s3006_s6 + $0x2d0] sm:$0xff] }
 0x16f   :  { %v814_v17 = vrot.slane %v813_v58, 2 }
 0x173   :  { %v727_v20 = vpop.f32.mrf.mxu0  ;;  %v1685_v54 = vpop.eup %1684 }
 0x174   :  { %v728_v30 = vadd.f32 %v2219_v61, %v727_v20  ;;  %v818_v47 = vrot.slane %v1685_v54, 4  ;;  %v1083_v20 = vld [vmem:[%s3006_s6 + $0x308] sm:$0xff] }
 0x175   :  { %1394 = vmatpush.msrb.mxu1 %v1083_v20 }
 0x176   :  { %1686 = vtanh.f32 %v728_v30  ;;  %v819_v48 = vmax.f32 %v1685_v54, %v818_v47  ;;  %v1121_v30 = vld [vmem:[%s3004_s7 + $0x38] sm:$0xff] }
 0x177   :  { %1314 = vmatpush.msra.mxu2 %v1121_v30  ;;  %v1068_v30 = vld [vmem:[%s3006_s6 + $0x290] sm:$0xff] }
 0x178   :  { %1640 = vmatmul.msk.f32.vlgmr.msra.gmra.mxu2 %vm568_vm6, %v2293_v22  ;;  %v1026_v22 = vld [vmem:[%s3006_s6 + $0x140] sm:$0xff] }
 0x179   :  { %1414 = vmatpush.msrb.mxu2 %v1108_v12  ;;  %v2603_v12 = vld [vmem:[%s3006_s6 + $0xf8] sm:$0xff] }
 0x17c   :  { %v1687_v39 = vpop.eup %1686 }
 0x17d   :  { %v824_v53 = vrot.slane %v1687_v39, 4 }
 0x17f   :  { %v825_v11 = vmax.f32 %v1687_v39, %v824_v53 }
 0x180   :  { %1641 = vmatmul.msk.f32.gmra.mxu2 %vm568_vm6, %v2302_v32  ;;  %v994_v32 = vld [vmem:[%s3006_s6 + $0x40] sm:$0xff] }
 0x181   :  { %v730_v60 = vpop.f32.mrf.mxu0  ;;  %v826_v26 = vrot.slane %v825_v11, 2 }
 0x182   :  { %v731_v33 = vadd.f32 %v2219_v61, %v730_v60  ;;  %v820_v60 = vrot.slane %v819_v48, 2 }
 0x184   :  { %1688 = vtanh.f32 %v731_v33  ;;  %v821_v33 = vmax.f32 %v819_v48, %v820_v60 }
 0x186   :  { %v822_v31 = vrot.slane %v821_v33, 1 }
 0x188   :  { %v2412_v53 = vmax.f32 %v821_v33, %v822_v31  ;;  %v2494_v33 = vld [vmem:[%s3006_s6 + $0x2b8] sm:$0xff] }
 0x189   :  { %v2524_v31 = vld [vmem:[%s3006_s6 + $0x238] sm:$0xff] }
 0x18a   :  { %v733_v23 = vpop.f32.mrf.mxu0  ;;  %v1689_v42 = vpop.eup %1688 }
 0x18b   :  { %v734_v35 = vadd.f32 %v2219_v61, %v733_v23  ;;  %v830_v50 = vrot.slane %v1689_v42, 4  ;;  %v2386_v23 = vld [vmem:[%s3006_s6 + $0x338] sm:$0xff] }
 0x18c   :  { %1532 = vmatpush.msrb.mxu0 %v2386_v23 }
 0x18d   :  { %1690 = vtanh.f32 %v734_v35  ;;  %v831_v46 = vmax.f32 %v1689_v42, %v830_v50 }
 0x18f   :  { %v832_v29 = vrot.slane %v831_v46, 2 }
 0x191   :  { %v833_v37 = vmax.f32 %v831_v46, %v832_v29  ;;  %v2479_v29 = vld [vmem:[%s3006_s6 + $0x2f8] sm:$0xff] }
 0x192   :  { %1533 = vmatpush.msrb.mxu0 %v2479_v29 }
 0x193   :  { %v736_v18 = vpop.f32.mrf.mxu0  ;;  %v1691_v44 = vpop.eup %1690  ;;  %v834_v13 = vrot.slane %v833_v37, 1 }
 0x194   :  { %v737_v36 = vadd.f32 %v2219_v61, %v736_v18  ;;  %v836_v59 = vrot.slane %v1691_v44, 4  ;;  %v809_v18 = vmax.f32 %v807_v10, %v808_v24  ;;  %v1074_v24 = vld [vmem:[%s3006_s6 + $0x2c0] sm:$0xff]  ;;  %1534 = vmatpush.msrb.mxu0 %v2494_v33 }
 0x196   :  { %1692 = vtanh.f32 %v737_v36  ;;  %v837_v62 = vmax.f32 %v1691_v44, %v836_v59  ;;  %v827_v36 = vmax.f32 %v825_v11, %v826_v26  ;;  %v810_v42 = vrot.slane %v809_v18, 1  ;;  %v1098_v44 = vld [vmem:[%s3006_s6 + $0x380] sm:$0xff]  ;;  %v1075_v26 = vld [vmem:[%s3006_s6 + $0x2c8] sm:$0xff] }
 0x197   :  { %1369 = vmatpush.msrb.mxu3 %v1098_v44  ;;  %v1082_v59 = vld [vmem:[%s3006_s6 + $0x300] sm:$0xff]  ;;  %1395 = vmatpush.msrb.mxu1 %v1075_v26  ;;  %v1036_v44 = vld [vmem:[%s3006_s6 + $0x190] sm:$0xff]  ;;  %v987_v26 = vld [vmem:[%s3006_s6 + $0x8] sm:$0xff] }
 0x198   :  { %v838_v27 = vrot.slane %v837_v62, 2  ;;  %v828_v43 = vrot.slane %v827_v36, 1  ;;  %v2417_v50 = vmax.f32 %v809_v18, %v810_v42  ;;  %v1059_v18 = vld [vmem:[%s3006_s6 + $0x248] sm:$0xff]  ;;  %v1044_v42 = vld [vmem:[%s3006_s6 + $0x1d0] sm:$0xff] }
 0x19a   :  { %v839_v54 = vmax.f32 %v837_v62, %v838_v27  ;;  %v2419_v55 = vmax.f32 %v827_v36, %v828_v43  ;;  %v1067_v27 = vld [vmem:[%s3006_s6 + $0x288] sm:$0xff]  ;;  %v1060_v36 = vld [vmem:[%s3006_s6 + $0x250] sm:$0xff]  ;;  %v2539_v43 = vld [vmem:[%s3006_s6 + $0x1f8] sm:$0xff] }
 0x19b   :  { %1396 = vmatpush.msrb.mxu1 %v1067_v27  ;;  %v1109_v27 = vld [vmem:[%s3006_s6 + $0x3d8] sm:$0xff] }
 0x19c   :  { %v1693_v52 = vpop.eup %1692  ;;  %v840_v51 = vrot.slane %v839_v54, 1 }
 0x19d   :  { %v842_v8 = vrot.slane %v1693_v52, 4  ;;  %1397 = vmatpush.msrb.mxu1 %v1059_v18 }
 0x19e   :  { %v2426_v63 = vmax.f32 %v839_v54, %v840_v51  ;;  %v1051_v54 = vld [vmem:[%s3006_s6 + $0x208] sm:$0xff] }
 0x19f   :  { %v843_v5 = vmax.f32 %v1693_v52, %v842_v8  ;;  %v1090_v52 = vld [vmem:[%s3006_s6 + $0x340] sm:$0xff]  ;;  %1398 = vmatpush.msrb.mxu1 %v1051_v54  ;;  %v1027_v51 = vld [vmem:[%s3006_s6 + $0x148] sm:$0xff] }
 0x1a0   :  { %1370 = vmatpush.msrb.mxu3 %v1090_v52  ;;  %v2570_v52 = vld [vmem:[%s3006_s6 + $0x178] sm:$0xff] }
 0x1a1   :  { %v739_v19 = vpop.f32.mrf.mxu0  ;;  %v844_v35 = vrot.slane %v843_v5, 2  ;;  %1399 = vmatpush.msrb.mxu1 %v1043_v41 }
 0x1a2   :  { %v740_v21 = vadd.f32 %v2219_v61, %v739_v19  ;;  %v815_v61 = vmax.f32 %v813_v58, %v814_v17  ;;  %v2421_v58 = vmax.f32 %v833_v37, %v834_v13  ;;  %1371 = vmatpush.msrb.mxu3 %v1082_v59  ;;  %v1100_v19 = vld [vmem:[%s3006_s6 + $0x390] sm:$0xff]  ;;  %v2509_v37 = vld [vmem:[%s3006_s6 + $0x278] sm:$0xff]  ;;  %v1035_v13 = vld [vmem:[%s3006_s6 + $0x188] sm:$0xff] }
 0x1a3   :  { %v845_v40 = vmax.f32 %v843_v5, %v844_v35  ;;  %v1092_v5 = vld [vmem:[%s3006_s6 + $0x350] sm:$0xff]  ;;  %1415 = vmatpush.msrb.mxu2 %v1100_v19  ;;  %v1058_v35 = vld [vmem:[%s3006_s6 + $0x240] sm:$0xff]  ;;  %1535 = vmatpush.msrb.mxu0 %v2509_v37  ;;  %v1019_v59 = vld [vmem:[%s3006_s6 + $0x108] sm:$0xff] }
 0x1a4   :  { %1694 = vtanh.f32 %v740_v21  ;;  %v816_v38 = vrot.slane %v815_v61, 1  ;;  %v1084_v21 = vld [vmem:[%s3006_s6 + $0x310] sm:$0xff]  ;;  %1372 = vmatpush.msrb.mxu3 %v1074_v24  ;;  %1400 = vmatpush.msrb.mxu1 %v1035_v13  ;;  %v986_v24 = vld [vmem:[%s3006_s6] sm:$0xff] }
 0x1a5   :  { %v846_v3 = vrot.slane %v845_v40, 1  ;;  %1416 = vmatpush.msrb.mxu2 %v1092_v5  ;;  %1536 = vmatpush.msrb.mxu0 %v2524_v31  ;;  %v1004_v19 = vld [vmem:[%s3006_s6 + $0x90] sm:$0xff] }
 0x1a6   :  { %v2408_v47 = vmax.f32 %v815_v61, %v816_v38  ;;  %v1066_v61 = vld [vmem:[%s3006_s6 + $0x280] sm:$0xff]  ;;  %1401 = vmatpush.msrb.mxu1 %v1027_v51  ;;  %v996_v5 = vld [vmem:[%s3006_s6 + $0x50] sm:$0xff] }
 0x1a7   :  { %v2431_v8 = vmax.f32 %v845_v40, %v846_v3  ;;  %1417 = vmatpush.msrb.mxu2 %v1084_v21  ;;  %1373 = vmatpush.msrb.mxu3 %v1066_v61  ;;  %v1050_v38 = vld [vmem:[%s3006_s6 + $0x200] sm:$0xff]  ;;  %v1028_v3 = vld [vmem:[%s3006_s6 + $0x150] sm:$0xff]  ;;  %v2634_v21 = vld [vmem:[%s3006_s6 + $0x78] sm:$0xff] }
 0x1a8   :  { %v904_v48 = vsel %vm890_vm10, %v2408_v47, %v2417_v50  ;;  %v1042_v40 = vld [vmem:[%s3006_s6 + $0x1c0] sm:$0xff]  ;;  %1537 = vmatpush.msrb.mxu0 %v2539_v43  ;;  %1402 = vmatpush.msrb.mxu1 %v1019_v59  ;;  %v2649_v61 = vld [vmem:[%s3006_s6 + $0x38] sm:$0xff] }
 0x1a9   :  { %v905_v10 = vsel %vm892_vm11, %v2412_v53, %v904_v48  ;;  %1418 = vmatpush.msrb.mxu2 %v1076_v28  ;;  %1374 = vmatpush.msrb.mxu3 %v1058_v35  ;;  %v2585_v48 = vld [vmem:[%s3006_s6 + $0x138] sm:$0xff]  ;;  %v988_v28 = vld [vmem:[%s3006_s6 + $0x10] sm:$0xff]  ;;  %v2662_v35 = vld [vmem:[%s3003_s5] ss:$0 sm:$0xff] }
 0x1aa   :  { %v1695_v39 = vpop.eup %1694  ;;  %v906_v56 = vsel %vm894_vm12, %v2419_v55, %v905_v10  ;;  %v1010_v10 = vld [vmem:[%s3006_s6 + $0xc0] sm:$0xff] }
 0x1ab   :  { %v848_v34 = vrot.slane %v1695_v39, 4  ;;  %v907_v46 = vsel %vm896_vm13, %v2421_v58, %v906_v56  ;;  %1419 = vmatpush.msrb.mxu2 %v1068_v30  ;;  %1375 = vmatpush.msrb.mxu3 %v1050_v38  ;;  %v1012_v56 = vld [vmem:[%s3006_s6 + $0xd0] sm:$0xff]  ;;  %v1110_v30 = vld [vmem:[%s3006_s6 + $0x3e0] sm:$0xff] }
 0x1ac   :  { %v908_v62 = vsel %vm898_vm14, %v2426_v63, %v907_v46  ;;  %v1002_v46 = vld [vmem:[%s3006_s6 + $0x80] sm:$0xff] }
 0x1ad   :  { %v849_v49 = vmax.f32 %v1695_v39, %v848_v34  ;;  %v909_v20 = vsel %vm900_vm15, %v2431_v8, %v908_v62  ;;  %1420 = vmatpush.msrb.mxu2 %v1060_v36  ;;  %v1052_v39 = vld [vmem:[%s3006_s6 + $0x210] sm:$0xff]  ;;  %v1034_v34 = vld [vmem:[%s3006_s6 + $0x180] sm:$0xff]  ;;  %1376 = vmatpush.msrb.mxu3 %v1042_v40  ;;  %v1003_v62 = vld [vmem:[%s3006_s6 + $0x88] sm:$0xff] }
 0x1ae   :  { %v1094_v51 = vld [vmem:[%s3006_s6 + $0x360] sm:$0xff] }
 0x1af   :  { %v850_v57 = vrot.slane %v849_v49, 2  ;;  %1421 = vmatpush.msrb.mxu2 %v1052_v39  ;;  %1377 = vmatpush.msrb.mxu3 %v1034_v34  ;;  %v1102_v34 = vld [vmem:[%s3006_s6 + $0x3a0] sm:$0xff] }
 0x1b1   :  { %v851_v4 = vmax.f32 %v849_v49, %v850_v57  ;;  %1422 = vmatpush.msrb.mxu2 %v1044_v42  ;;  %v2555_v49 = vld [vmem:[%s3006_s6 + $0x1b8] sm:$0xff]  ;;  %v1018_v57 = vld [vmem:[%s3006_s6 + $0x100] sm:$0xff]  ;;  %1378 = vmatpush.msrb.mxu3 %v1026_v22 }
 0x1b2   :  { %1538 = vmatpush.msrb.mxu0 %v2555_v49  ;;  %v1101_v42 = vld [vmem:[%s3006_s6 + $0x398] sm:$0xff] }
 0x1b3   :  { %v852_v11 = vrot.slane %v851_v4, 1  ;;  %1423 = vmatpush.msrb.mxu2 %v1036_v44  ;;  %1379 = vmatpush.msrb.mxu3 %v1018_v57  ;;  %v1093_v22 = vld [vmem:[%s3006_s6 + $0x358] sm:$0xff] }
 0x1b4   :  { %1539 = vmatpush.msrb.mxu0 %v2570_v52 }
 0x1b5   :  { %v2444_v17 = vmax.f32 %v851_v4, %v852_v11  ;;  %v1020_v4 = vld [vmem:[%s3006_s6 + $0x110] sm:$0xff]  ;;  %1424 = vmatpush.msrb.mxu2 %v1028_v3  ;;  %v1011_v11 = vld [vmem:[%s3006_s6 + $0xc8] sm:$0xff]  ;;  %1380 = vmatpush.msrb.mxu3 %v1010_v10  ;;  %v1085_v10 = vld [vmem:[%s3006_s6 + $0x318] sm:$0xff] }
 0x1b6   :  { %1540 = vmatpush.msrb.mxu0 %v2585_v48  ;;  %1403 = vmatpush.msrb.mxu1 %v1011_v11  ;;  %v1086_v11 = vld [vmem:[%s3006_s6 + $0x320] sm:$0xff] }
 0x1b7   :  { %v910_v60 = vsel %vm902_vm0, %v2444_v17, %v909_v20  ;;  %1425 = vmatpush.msrb.mxu2 %v1020_v4  ;;  %v2619_v20 = vld [vmem:[%s3006_s6 + $0xb8] sm:$0xff]  ;;  %1381 = vmatpush.msrb.mxu3 %v1002_v46 }
 0x1b8   :  { %932 = vmatmul.f32.gmra.mxu1 %v910_v60  ;;  %1541 = vmatpush.msrb.mxu0 %v2603_v12  ;;  %v995_v60 = vld [vmem:[%s3006_s6 + $0x48] sm:$0xff] }
 0x1b9   :  { %1426 = vmatpush.msrb.mxu2 %v1012_v56  ;;  %1404 = vmatpush.msrb.mxu1 %v1003_v62 }
 0x1ba   :  { %1542 = vmatpush.msrb.mxu0 %v2619_v20  ;;  %1382 = vmatpush.msrb.mxu3 %v994_v32 }
 0x1bb   :  { %1427 = vmatpush.msrb.mxu2 %v1004_v19  ;;  %1405 = vmatpush.msrb.mxu1 %v995_v60  ;;  %v1078_v19 = vld [vmem:[%s3006_s6 + $0x2e0] sm:$0xff] }
 0x1bc   :  { %1543 = vmatpush.msrb.mxu0 %v2634_v21  ;;  %1383 = vmatpush.msrb.mxu3 %v986_v24 }
 0x1bd   :  { %1428 = vmatpush.msrb.mxu2 %v996_v5  ;;  %1406 = vmatpush.msrb.mxu1 %v987_v26 }
 0x1be   :  { %1544 = vmatpush.msrb.mxu0 %v2649_v61  ;;  %1437 = vmatpush.msra.mxu3 %v1109_v27 }
 0x1bf   :  { %1429 = vmatpush.msrb.mxu2 %v988_v28  ;;  %1460 = vmatpush.msra.mxu1 %v1110_v30  ;;  %v1069_v28 = vld [vmem:[%s3006_s6 + $0x298] sm:$0xff] }
 0x1c0   :  { %1438 = vmatpush.msra.mxu3 %v1101_v42  ;;  %v2728_v42 = vpop.f32.mrf.mxu2 }
 0x1c1   :  { %1461 = vmatpush.msra.mxu1 %v1102_v34  ;;  %v1111_v34 = vld [vmem:[%s3006_s6 + $0x3e8] sm:$0xff] }
 0x1c2   :  { %1439 = vmatpush.msra.mxu3 %v1093_v22  ;;  %1483 = vmatpush.msra.mxu2 %v1111_v34  ;;  %v1103_v22 = vld [vmem:[%s3006_s6 + $0x3a8] sm:$0xff] }
 0x1c3   :  { %1462 = vmatpush.msra.mxu1 %v1094_v51  ;;  %v1037_v51 = vld [vmem:[%s3006_s6 + $0x198] sm:$0xff] }
 0x1c4   :  { %1440 = vmatpush.msra.mxu3 %v1085_v10  ;;  %1484 = vmatpush.msra.mxu2 %v1103_v22  ;;  %v1087_v10 = vld [vmem:[%s3006_s6 + $0x328] sm:$0xff] }
 0x1c5   :  { %1463 = vmatpush.msra.mxu1 %v1086_v11  ;;  %v1021_v11 = vld [vmem:[%s3006_s6 + $0x118] sm:$0xff] }
 0x1c7   :  { %1464 = vmatpush.msra.mxu1 %v1078_v19  ;;  %v1006_v19 = vld [vmem:[%s3006_s6 + $0xa0] sm:$0xff] }
 0x1de   :  { %v930_v18 = vpop.f32.mrf.mxu1 }
 0x1df   :  { %v931_v36 = vadd.f32 %v2662_v35, %v930_v18  ;;  %v1062_v18 = vld [vmem:[%s3006_s6 + $0x260] sm:$0xff] }
 0x1e1   :  { %1696 = vtanh.f32 %v931_v36 }
 0x1e7   :  { %v1697_v38 = vpop.eup %1696 }
 0x1e8   :  { %v940_v54 = vrot.slane %v1697_v38, 1  ;;  %v941_v39 = vrot.slane %v1697_v38, 2  ;;  %v942_v40 = vrot.slane %v1697_v38, 3  ;;  %v943_v41 = vrot.slane %v1697_v38, 4 }
 0x1e9   :  { %v944_v13 = vrot.slane %v1697_v38, 5  ;;  %v945_v44 = vrot.slane %v1697_v38, 6  ;;  %v946_v3 = vrot.slane %v1697_v38, 7  ;;  %v970_v46 = vadd.f32 %v1697_v38, %v2257_v1 }
 0x1ea   :  { %v971_v57 = vadd.f32 %v940_v54, %v2253_v45  ;;  %v972_v59 = vadd.f32 %v941_v39, %v2255_v6  ;;  %v973_v4 = vadd.f32 %v942_v40, %v2259_v2  ;;  %v974_v56 = vadd.f32 %v943_v41, %v2261_v7  ;;  %v1077_v2 = vld [vmem:[%s3006_s6 + $0x2d8] sm:$0xff]  ;;  %v1054_v41 = vld [vmem:[%s3006_s6 + $0x220] sm:$0xff] }
 0x1eb   :  { %v975_v45 = vadd.f32 %v944_v13, %v2263_v14  ;;  %v976_v32 = vadd.f32 %v945_v44, %v2268_v25  ;;  %v977_v7 = vadd.f32 %v946_v3, %v2276_v15  ;;  %1441 = vmatpush.msra.mxu3 %v1077_v2  ;;  %v1070_v25 = vld [vmem:[%s3006_s6 + $0x2a0] sm:$0xff]  ;;  %v1061_v15 = vld [vmem:[%s3006_s6 + $0x258] sm:$0xff] }
 0x1ec   :  { %v1338_v62 = vrot.slane %v971_v57, 7  ;;  %v1340_v6 = vrot.slane %v972_v59, 6  ;;  %v1342_v60 = vrot.slane %v973_v4, 5  ;;  %v1344_v5 = vrot.slane %v974_v56, 4  ;;  %1465 = vmatpush.msra.mxu1 %v1070_v25  ;;  %v1053_v40 = vld [vmem:[%s3006_s6 + $0x218] sm:$0xff]  ;;  %v1046_v44 = vld [vmem:[%s3006_s6 + $0x1e0] sm:$0xff] }
 0x1ed   :  { %v1346_v26 = vrot.slane %v975_v45, 3  ;;  %v1348_v30 = vrot.slane %v976_v32, 2  ;;  %1442 = vmatpush.msra.mxu3 %v1069_v28  ;;  %v1350_v38 = vrot.slane %v977_v7, 1  ;;  %v1045_v13 = vld [vmem:[%s3006_s6 + $0x1d8] sm:$0xff]  ;;  %v1038_v3 = vld [vmem:[%s3006_s6 + $0x1a0] sm:$0xff]  ;;  %v1095_v57 = vld [vmem:[%s3006_s6 + $0x368] sm:$0xff]  ;;  %v2784_v32 = vpop.f32.mrf.mxu2 }
 0x1ee   :  { %v1339_v1 = vsel %vm890_vm10, %v1338_v62, %v970_v46  ;;  %1466 = vmatpush.msra.mxu1 %v1062_v18  ;;  %v1029_v59 = vld [vmem:[%s3006_s6 + $0x158] sm:$0xff]  ;;  %v1030_v4 = vld [vmem:[%s3006_s6 + $0x160] sm:$0xff]  ;;  %1485 = vmatpush.msra.mxu2 %v1095_v57  ;;  %v1079_v46 = vld [vmem:[%s3006_s6 + $0x2e8] sm:$0xff] }
 0x1ef   :  { %v1341_v14 = vsel %vm892_vm11, %v1340_v6, %v1339_v1  ;;  %1443 = vmatpush.msra.mxu3 %v1061_v15  ;;  %v1022_v56 = vld [vmem:[%s3006_s6 + $0x120] sm:$0xff]  ;;  %v1013_v45 = vld [vmem:[%s3006_s6 + $0xd8] sm:$0xff]  ;;  %v1071_v6 = vld [vmem:[%s3006_s6 + $0x2a8] sm:$0xff] }
 0x1f0   :  { %v1343_v24 = vsel %vm894_vm12, %v1342_v60, %v1341_v14  ;;  %1467 = vmatpush.msra.mxu1 %v1054_v41  ;;  %1486 = vmatpush.msra.mxu2 %v1087_v10  ;;  %v1014_v62 = vld [vmem:[%s3006_s6 + $0xe0] sm:$0xff]  ;;  %v1005_v2 = vld [vmem:[%s3006_s6 + $0x98] sm:$0xff]  ;;  %v1063_v7 = vld [vmem:[%s3006_s6 + $0x268] sm:$0xff] }
 0x1f1   :  { %v1345_v27 = vsel %vm896_vm13, %v1344_v5, %v1343_v24  ;;  %1444 = vmatpush.msra.mxu3 %v1053_v40  ;;  %v997_v1 = vld [vmem:[%s3006_s6 + $0x58] sm:$0xff]  ;;  %v998_v60 = vld [vmem:[%s3006_s6 + $0x60] sm:$0xff]  ;;  %v1055_v14 = vld [vmem:[%s3006_s6 + $0x228] sm:$0xff] }
 0x1f2   :  { %v1347_v36 = vsel %vm898_vm14, %v1346_v26, %v1345_v27  ;;  %1468 = vmatpush.msra.mxu1 %v1046_v44  ;;  %1487 = vmatpush.msra.mxu2 %v1079_v46  ;;  %v989_v5 = vld [vmem:[%s3006_s6 + $0x18] sm:$0xff]  ;;  %v990_v24 = vld [vmem:[%s3006_s6 + $0x20] sm:$0xff]  ;;  %v1047_v26 = vld [vmem:[%s3006_s6 + $0x1e8] sm:$0xff] }
 0x1f3   :  { %v1349_v54 = vsel %vm900_vm15, %v1348_v30, %v1347_v36  ;;  %1445 = vmatpush.msra.mxu3 %v1045_v13  ;;  %v1112_v28 = vld [vmem:[%s3006_s6 + $0x3f0] sm:$0xff]  ;;  %v1039_v25 = vld [vmem:[%s3006_s6 + $0x1a8] sm:$0xff] }
 0x1f4   :  { %v2716_v39 = vsel %vm902_vm0, %v1350_v38, %v1349_v54  ;;  %1469 = vmatpush.msra.mxu1 %v1038_v3  ;;  %1488 = vmatpush.msra.mxu2 %v1071_v6  ;;  %v1104_v15 = vld [vmem:[%s3006_s6 + $0x3b0] sm:$0xff]  ;;  %v1031_v27 = vld [vmem:[%s3006_s6 + $0x168] sm:$0xff] }
 0x1f5   :  { %1384 = vmatmul.f32.vlgmr.msrb.gmra.mxu3 %v2716_v39  ;;  %1407 = vmatmul.f32.vlgmr.msrb.gmra.mxu1 %v2716_v39  ;;  %v1096_v30 = vld [vmem:[%s3006_s6 + $0x370] sm:$0xff]  ;;  %v2823_v18 = vpop.f32.mrf.mxu2  ;;  %v1023_v36 = vld [vmem:[%s3006_s6 + $0x128] sm:$0xff] }
 0x1f6   :  { %1430 = vmatmul.f32.vlgmr.msrb.gmra.mxu2 %v2716_v39  ;;  %1545 = vmatmul.f32.vlgmr.msrb.gmra.mxu0 %v2716_v39  ;;  %v1080_v38 = vld [vmem:[%s3006_s6 + $0x2f0] sm:$0xff]  ;;  %v1007_v54 = vld [vmem:[%s3006_s6 + $0xa8] sm:$0xff] }
 0x1f7   :  { %1446 = vmatpush.msra.mxu3 %v1037_v51  ;;  %1470 = vmatpush.msra.mxu1 %v1030_v4  ;;  %v1064_v40 = vld [vmem:[%s3006_s6 + $0x270] sm:$0xff]  ;;  %v991_v41 = vld [vmem:[%s3006_s6 + $0x28] sm:$0xff]  ;;  %v2880_v51 = vpop.f32.mrf.mxu3 }
 0x1f8   :  { %1489 = vmatpush.msra.mxu2 %v1063_v7  ;;  %v1040_v44 = vld [vmem:[%s3006_s6 + $0x1b0] sm:$0xff] }
 0x1f9   :  { %1447 = vmatpush.msra.mxu3 %v1029_v59  ;;  %1471 = vmatpush.msra.mxu1 %v1022_v56 }
 0x1fa   :  { %1490 = vmatpush.msra.mxu2 %v1055_v14 }
 0x1fb   :  { %1448 = vmatpush.msra.mxu3 %v1021_v11  ;;  %1472 = vmatpush.msra.mxu1 %v1014_v62 }
 0x1fc   :  { %1491 = vmatpush.msra.mxu2 %v1047_v26 }
 0x1fd   :  { %1449 = vmatpush.msra.mxu3 %v1013_v45  ;;  %1473 = vmatpush.msra.mxu1 %v1006_v19  ;;  %v2860_v34 = vpop.f32.mrf.mxu2 }
 0x1fe   :  { %1492 = vmatpush.msra.mxu2 %v1039_v25 }
 0x1ff   :  { %1450 = vmatpush.msra.mxu3 %v1005_v2  ;;  %1474 = vmatpush.msra.mxu1 %v998_v60 }
 0x200   :  { %1493 = vmatpush.msra.mxu2 %v1031_v27 }
 0x201   :  { %1451 = vmatpush.msra.mxu3 %v997_v1  ;;  %1475 = vmatpush.msra.mxu1 %v990_v24 }
 0x202   :  { %1494 = vmatpush.msra.mxu2 %v1023_v36 }
 0x203   :  { %1452 = vmatpush.msra.mxu3 %v989_v5  ;;  %1642 = vmatpush.msrb.mxu1 %v2356_v0  ;;  %v1088_v0 = vld [vmem:[%s3006_s6 + $0x330] sm:$0xff] }
 0x205   :  { %1506 = vmatpush.msrb.mxu3 %v1112_v28  ;;  %1643 = vmatpush.msrb.mxu1 %v2364_v9  ;;  %v1015_v9 = vld [vmem:[%s3006_s6 + $0xe8] sm:$0xff] }
 0x206   :  { %1495 = vmatpush.msra.mxu2 %v1015_v9  ;;  %v2931_v9 = vld [vmem:[%s3007_s8] sm:$0xff] }
 0x207   :  { %1507 = vmatpush.msrb.mxu3 %v1104_v15  ;;  %1644 = vmatpush.msrb.mxu1 %v2376_v16  ;;  %v1072_v16 = vld [vmem:[%s3006_s6 + $0x2b0] sm:$0xff] }
 0x208   :  { %1496 = vmatpush.msra.mxu2 %v1007_v54  ;;  %v1555_v54 = vperm.slane %v2931_v9, 1 }
 0x209   :  { %1508 = vmatpush.msrb.mxu3 %v1096_v30  ;;  %1645 = vmatpush.msrb.mxu1 %v2386_v23  ;;  %v999_v23 = vld [vmem:[%s3006_s6 + $0x68] sm:$0xff] }
 0x20a   :  { %1497 = vmatpush.msra.mxu2 %v999_v23  ;;  %v1561_v23 = vperm.slane %v2931_v9, 7 }
 0x20b   :  { %1509 = vmatpush.msrb.mxu3 %v1088_v0  ;;  %1646 = vmatpush.msrb.mxu1 %v2479_v29  ;;  %v1056_v29 = vld [vmem:[%s3006_s6 + $0x230] sm:$0xff] }
 0x20c   :  { %1498 = vmatpush.msra.mxu2 %v991_v41 }
 0x20d   :  { %1510 = vmatpush.msrb.mxu3 %v1080_v38  ;;  %1647 = vmatpush.msrb.mxu1 %v2494_v33  ;;  %v1048_v33 = vld [vmem:[%s3006_s6 + $0x1f0] sm:$0xff] }
 0x20f   :  { %1511 = vmatpush.msrb.mxu3 %v1072_v16  ;;  %1648 = vmatpush.msrb.mxu1 %v2509_v37  ;;  %v1032_v37 = vld [vmem:[%s3006_s6 + $0x170] sm:$0xff] }
 0x211   :  { %1512 = vmatpush.msrb.mxu3 %v1064_v40  ;;  %1649 = vmatpush.msrb.mxu1 %v2524_v31  ;;  %v1024_v31 = vld [vmem:[%s3006_s6 + $0x130] sm:$0xff] }
 0x213   :  { %1513 = vmatpush.msrb.mxu3 %v1056_v29  ;;  %1650 = vmatpush.msrb.mxu1 %v2539_v43  ;;  %v1016_v43 = vld [vmem:[%s3006_s6 + $0xf0] sm:$0xff] }
 0x215   :  { %1514 = vmatpush.msrb.mxu3 %v1048_v33  ;;  %1651 = vmatpush.msrb.mxu1 %v2555_v49  ;;  %v1008_v49 = vld [vmem:[%s3006_s6 + $0xb0] sm:$0xff]  ;;  %v1554_v33 = vperm.slane %v2931_v9, 0 }
 0x217   :  { %1515 = vmatpush.msrb.mxu3 %v1040_v44  ;;  %1652 = vmatpush.msrb.mxu1 %v2570_v52 }
 0x219   :  { %1516 = vmatpush.msrb.mxu3 %v1032_v37  ;;  %1653 = vmatpush.msrb.mxu1 %v2585_v48  ;;  %v1000_v48 = vld [vmem:[%s3006_s6 + $0x70] sm:$0xff] }
 0x21b   :  { %1517 = vmatpush.msrb.mxu3 %v1024_v31  ;;  %1654 = vmatpush.msrb.mxu1 %v2603_v12  ;;  %v992_v12 = vld [vmem:[%s3006_s6 + $0x30] sm:$0xff] }
 0x21d   :  { %1518 = vmatpush.msrb.mxu3 %v1016_v43  ;;  %1655 = vmatpush.msrb.mxu1 %v2619_v20 }
 0x21f   :  { %1519 = vmatpush.msrb.mxu3 %v1008_v49  ;;  %1656 = vmatpush.msrb.mxu1 %v2634_v21 }
 0x221   :  { %1520 = vmatpush.msrb.mxu3 %v1000_v48  ;;  %1657 = vmatpush.msrb.mxu1 %v2649_v61 }
 0x223   :  { %1521 = vmatpush.msrb.mxu3 %v992_v12 }
 0x235   :  { %v933_v13 = vpop.f32.mrf.mxu1 }
 0x236   :  { %v934_v22 = vadd.f32 %v2662_v35, %v933_v13  ;;  %v2882_v35 = vpop.f32.mrf.mxu2 }
 0x238   :  { %1698 = vtanh.f32 %v934_v22  ;;  %v1556_v22 = vperm.slane %v2931_v9, 2 }
 0x23e   :  { %v1699_v3 = vpop.eup %1698  ;;  %v2912_v5 = vpop.f32.mrf.mxu2 }
 0x23f   :  { %v947_v57 = vrot.slane %v1699_v3, 1  ;;  %v948_v59 = vrot.slane %v1699_v3, 2  ;;  %v949_v52 = vrot.slane %v1699_v3, 3  ;;  %v950_v4 = vrot.slane %v1699_v3, 4 }
 0x240   :  { %v951_v10 = vrot.slane %v1699_v3, 5  ;;  %v952_v11 = vrot.slane %v1699_v3, 6  ;;  %v953_v56 = vrot.slane %v1699_v3, 7  ;;  %v978_v2 = vadd.f32 %v1699_v3, %v2417_v50  ;;  %v1181_v50 = vpop.f32.mrf.mxu3 }
 0x241   :  { %v979_v46 = vadd.f32 %v947_v57, %v2408_v47  ;;  %v980_v45 = vadd.f32 %v948_v59, %v2412_v53  ;;  %v981_v62 = vadd.f32 %v949_v52, %v2419_v55  ;;  %v982_v6 = vadd.f32 %v950_v4, %v2421_v58 }
 0x242   :  { %v983_v19 = vadd.f32 %v951_v10, %v2426_v63  ;;  %v984_v47 = vadd.f32 %v952_v11, %v2431_v8  ;;  %v985_v53 = vadd.f32 %v953_v56, %v2444_v17  ;;  %v1558_v4 = vperm.slane %v2931_v9, 4 }
 0x243   :  { %v1352_v7 = vrot.slane %v979_v46, 7  ;;  %v1354_v1 = vrot.slane %v980_v45, 6  ;;  %v1356_v20 = vrot.slane %v981_v62, 5  ;;  %v1358_v60 = vrot.slane %v982_v6, 4 }
 0x244   :  { %v1360_v14 = vrot.slane %v983_v19, 3  ;;  %v1362_v8 = vrot.slane %v984_v47, 2  ;;  %v1364_v17 = vrot.slane %v985_v53, 1  ;;  %v1559_v62 = vperm.slane %v2931_v9, 5 }
 0x245   :  { %v1353_v55 = vsel %vm890_vm10, %v1352_v7, %v978_v2 }
 0x246   :  { %v1355_v58 = vsel %vm892_vm11, %v1354_v1, %v1353_v55  ;;  %v2918_v25 = vpop.f32.mrf.mxu2 }
 0x247   :  { %v1357_v63 = vsel %vm894_vm12, %v1356_v20, %v1355_v58 }
 0x248   :  { %v1359_v21 = vsel %vm896_vm13, %v1358_v60, %v1357_v63  ;;  %v1224_v61 = vpop.f32.mrf.mxu3 }
 0x249   :  { %v1361_v24 = vsel %vm898_vm14, %v1360_v14, %v1359_v21  ;;  %v1560_v21 = vperm.slane %v2931_v9, 6 }
 0x24a   :  { %v1363_v26 = vsel %vm900_vm15, %v1362_v8, %v1361_v24 }
 0x24b   :  { %v1365_v28 = vsel %vm902_vm0, %v1364_v17, %v1363_v26 }
 0x24c   :  { %1387 = vmatmul.f32.gmra.mxu3 %v1365_v28  ;;  %1410 = vmatmul.f32.gmra.mxu1 %v1365_v28 }
 0x24d   :  { %1433 = vmatmul.f32.gmra.mxu2 %v1365_v28 }
 0x24e   :  { %v2925_v27 = vpop.f32.mrf.mxu2 }
 0x250   :  { %v2923_v15 = vpop.f32.mrf.mxu3 }
 0x254   :  { %1453 = vmatmul.f32.vlgmr.msra.gmra.mxu3 %v2716_v39  ;;  %1476 = vmatmul.f32.vlgmr.msra.gmra.mxu1 %v2716_v39 }
 0x255   :  { %1499 = vmatmul.f32.vlgmr.msra.gmra.mxu2 %v2716_v39 }
 0x256   :  { %v1316_v36 = vpop.f32.mrf.mxu2 }
 0x258   :  { %v1270_v30 = vpop.f32.mrf.mxu3 }
 0x25c   :  { %1456 = vmatmul.f32.gmra.mxu3 %v1365_v28  ;;  %1479 = vmatmul.f32.gmra.mxu1 %v1365_v28 }
 0x25d   :  { %1502 = vmatmul.f32.gmra.mxu2 %v1365_v28 }
 0x25e   :  { %v1319_v38 = vpop.f32.mrf.mxu2 }
 0x260   :  { %v1273_v0 = vpop.f32.mrf.mxu3 }
 0x264   :  { %1522 = vmatmul.f32.vlgmr.msrb.gmra.mxu3 %v2716_v39  ;;  %1548 = vmatmul.f32.vlgmr.msrb.gmra.mxu1 %v1365_v28 }
 0x26c   :  { %1525 = vmatmul.f32.gmra.mxu3 %v1365_v28 }
 0x272   :  { %v1408_v16 = vpop.f32.mrf.mxu1 }
 0x273   :  { %v1409_v40 = vadd.f32 %v1408_v16, %v2880_v51  ;;  %v1546_v41 = vpop.f32.mrf.mxu0 }
 0x274   :  { %v1547_v39 = vadd.f32 %v1546_v41, %v1316_v36 }
 0x275   :  { %v1571_v29 = vadd.f32 %v1555_v54, %v1409_v40 }
 0x276   :  { %v1577_v13 = vadd.f32 %v1561_v23, %v1547_v39 }
 0x277   :  { %1587 = vst [vmem:[%s3008_s9 + $0x8] sm:$0xff] %v1571_v29 }
 0x278   :  { %1597 = vst [vmem:[%s3009_s10 + $0x18] sm:$0xff] %v1577_v13  ;;  %v1385_v44 = vpop.f32.mrf.mxu3 }
 0x279   :  { %v1386_v37 = vadd.f32 %v1385_v44, %v2728_v42  ;;  %v1431_v31 = vpop.f32.mrf.mxu2 }
 0x27a   :  { %v1432_v51 = vadd.f32 %v1431_v31, %v2823_v18 }
 0x27b   :  { %v1570_v43 = vadd.f32 %v1554_v33, %v1386_v37 }
 0x27c   :  { %v1572_v49 = vadd.f32 %v1556_v22, %v1432_v51 }
 0x27d   :  { %1586 = vst [vmem:[%s3008_s9] sm:$0xff] %v1570_v43 }
 0x27e   :  { %1588 = vst [vmem:[%s3008_s9 + $0x10] sm:$0xff] %v1572_v49 }
 0x2c9   :  { %v1411_v3 = vpop.f32.mrf.mxu1 }
 0x2ca   :  { %v1412_v57 = vadd.f32 %v1411_v3, %v1181_v50 }
 0x2cc   :  { %v1579_v59 = vadd.f32 %v1555_v54, %v1412_v57 }
 0x2ce   :  { %1591 = vst [vmem:[%s3008_s9 + $0x28] sm:$0xff] %v1579_v59 }
 0x2cf   :  { %v1388_v42 = vpop.f32.mrf.mxu3 }
 0x2d0   :  { %v1389_v18 = vadd.f32 %v1388_v42, %v2784_v32  ;;  %v1434_v52 = vpop.f32.mrf.mxu2  ;;  %v1557_v32 = vperm.slane %v2931_v9, 3 }
 0x2d1   :  { %v1435_v48 = vadd.f32 %v1434_v52, %v2860_v34  ;;  %v1477_v10 = vpop.f32.mrf.mxu1 }
 0x2d2   :  { %v1578_v11 = vadd.f32 %v1554_v33, %v1389_v18  ;;  %v1478_v56 = vadd.f32 %v1477_v10, %v2882_v35 }
 0x2d3   :  { %v1580_v46 = vadd.f32 %v1556_v22, %v1435_v48 }
 0x2d4   :  { %1590 = vst [vmem:[%s3008_s9 + $0x20] sm:$0xff] %v1578_v11  ;;  %v1574_v45 = vadd.f32 %v1558_v4, %v1478_v56 }
 0x2d5   :  { %1592 = vst [vmem:[%s3008_s9 + $0x30] sm:$0xff] %v1580_v46 }
 0x2d6   :  { %1594 = vst [vmem:[%s3009_s10] sm:$0xff] %v1574_v45 }
 0x2d7   :  { %v1454_v34 = vpop.f32.mrf.mxu3 }
 0x2d8   :  { %v1455_v35 = vadd.f32 %v1454_v34, %v1224_v61  ;;  %v1500_v12 = vpop.f32.mrf.mxu2 }
 0x2d9   :  { %v1501_v6 = vadd.f32 %v1500_v12, %v1270_v30  ;;  %v1480_v2 = vpop.f32.mrf.mxu1 }
 0x2da   :  { %v1573_v19 = vadd.f32 %v1557_v32, %v1455_v35  ;;  %v1481_v7 = vadd.f32 %v1480_v2, %v2912_v5 }
 0x2db   :  { %v1575_v1 = vadd.f32 %v1559_v62, %v1501_v6 }
 0x2dc   :  { %1589 = vst [vmem:[%s3008_s9 + $0x18] sm:$0xff] %v1573_v19  ;;  %v1582_v47 = vadd.f32 %v1558_v4, %v1481_v7 }
 0x2dd   :  { %1595 = vst [vmem:[%s3009_s10 + $0x8] sm:$0xff] %v1575_v1 }
 0x2de   :  { %1598 = vst [vmem:[%s3009_s10 + $0x20] sm:$0xff] %v1582_v47 }
 0x2df   :  { %v1457_v53 = vpop.f32.mrf.mxu3 }
 0x2e0   :  { %v1458_v55 = vadd.f32 %v1457_v53, %v2923_v15  ;;  %v1503_v20 = vpop.f32.mrf.mxu2 }
 0x2e1   :  { %v1504_v58 = vadd.f32 %v1503_v20, %v1273_v0  ;;  %v1549_v60 = vpop.f32.mrf.mxu1 }
 0x2e2   :  { %v1581_v50 = vadd.f32 %v1557_v32, %v1458_v55  ;;  %v1550_v63 = vadd.f32 %v1549_v60, %v1319_v38 }
 0x2e3   :  { %v1583_v14 = vadd.f32 %v1559_v62, %v1504_v58 }
 0x2e4   :  { %1593 = vst [vmem:[%s3008_s9 + $0x38] sm:$0xff] %v1581_v50  ;;  %v1585_v5 = vadd.f32 %v1561_v23, %v1550_v63 }
 0x2e5   :  { %1599 = vst [vmem:[%s3009_s10 + $0x28] sm:$0xff] %v1583_v14 }
 0x2e6   :  { %1601 = vst [vmem:[%s3009_s10 + $0x38] sm:$0xff] %v1585_v5 }
 0x2e7   :  { %v1523_v8 = vpop.f32.mrf.mxu3 }
 0x2e8   :  { %v1524_v24 = vadd.f32 %v1523_v8, %v2918_v25 }
 0x2ea   :  { %v1576_v17 = vadd.f32 %v1560_v21, %v1524_v24 }
 0x2ec   :  { %1596 = vst [vmem:[%s3009_s10 + $0x10] sm:$0xff] %v1576_v17 }
 0x2ef   :  { %v1526_v26 = vpop.f32.mrf.mxu3 }
 0x2f0   :  { %v1527_v28 = vadd.f32 %v1526_v26, %v2925_v27 }
 0x2f2   :  { %v1584_v61 = vadd.f32 %v1560_v21, %v1527_v28 }
 0x2f4   :  { %1600 = vst [vmem:[%s3009_s10 + $0x30] sm:$0xff] %v1584_v61 }

// kernel: rnn_tagger_forward.3
= control target key start
LH: loop header
LB: loop body
LE: loop exit
PB: predicated region body
PF: predicated region fallthrough
CT: control target
= control target key end

     0   :  { %s1614_s13 = smov 0   ;;  %s1997_s0 = inlined_call_operand.vmem [shape: f32[8,2,1], index: 0, kind: input, shape index: {}]   ;;  %s1998_s1 = inlined_call_operand.vmem [shape: f32[8,2,512], index: 1, kind: input, shape index: {}]   ;;  %s1999_s2 = inlined_call_operand.vmem [shape: f32[8,2,512], index: 2, kind: input, shape index: {}]   ;;  %s2000_s3 = inlined_call_operand.vmem [shape: f32[128,512], index: 3, kind: input, shape index: {}]   ;;  %s2001_s5 = inlined_call_operand.vmem [shape: f32[128,128], index: 5, kind: input, shape index: {}]   ;;  %s2002_s6 = inlined_call_operand.vmem [shape: f32[128,128], index: 6, kind: input, shape index: {}]   ;;  %s2003_s7 = inlined_call_operand.vmem [shape: f32[1,128], index: 7, kind: input, shape index: {}]   ;;  %s2004_s8 = inlined_call_operand.vmem [shape: f32[8,2,128], index: 8, kind: output, shape index: {}]   ;;  %s2005_s4 = inlined_call_operand.vmem [shape: f32[128,512], index: 4, kind: input, shape index: {}]  }
   0x1   :  { %v969_v0 = vld [vmem:[%s2000_s3] sm:$0xff]  ;;  %v974_v1 = vld [vmem:[%s2000_s3 + $0x8] sm:$0xff]  ;;  %v979_v2 = vld [vmem:[%s2000_s3 + $0x10] sm:$0xff] }
   0x2   :  { %2006 = vst [vmem:[#allocation4_spill] sm:$0xff] %v969_v0  ;;  %v984_v3 = vld [vmem:[%s2000_s3 + $0x18] sm:$0xff]  ;;  %v989_v4 = vld [vmem:[%s2000_s3 + $0x20] sm:$0xff]  ;;  %v994_v5 = vld [vmem:[%s2000_s3 + $0x28] sm:$0xff] }
   0x3   :  { %2007 = vst [vmem:[#allocation5_spill] sm:$0xff] %v974_v1  ;;  %v999_v6 = vld [vmem:[%s2000_s3 + $0x30] sm:$0xff]  ;;  %v1004_v7 = vld [vmem:[%s2000_s3 + $0x38] sm:$0xff]  ;;  %v1009_v8 = vld [vmem:[%s2000_s3 + $0x40] sm:$0xff] }
   0x4   :  { %2008 = vst [vmem:[#allocation6_spill] sm:$0xff] %v979_v2  ;;  %v1014_v9 = vld [vmem:[%s2000_s3 + $0x48] sm:$0xff]  ;;  %v1019_v10 = vld [vmem:[%s2000_s3 + $0x50] sm:$0xff]  ;;  %v1024_v11 = vld [vmem:[%s2000_s3 + $0x58] sm:$0xff] }
   0x5   :  { %2009 = vst [vmem:[#allocation7_spill] sm:$0xff] %v984_v3  ;;  %v1029_v12 = vld [vmem:[%s2000_s3 + $0x60] sm:$0xff]  ;;  %v1034_v13 = vld [vmem:[%s2000_s3 + $0x68] sm:$0xff]  ;;  %v1039_v14 = vld [vmem:[%s2000_s3 + $0x70] sm:$0xff] }
   0x6   :  { %2010 = vst [vmem:[#allocation8_spill] sm:$0xff] %v989_v4  ;;  %v1044_v15 = vld [vmem:[%s2000_s3 + $0x78] sm:$0xff]  ;;  %v1049_v16 = vld [vmem:[%s2000_s3 + $0x80] sm:$0xff]  ;;  %v1054_v17 = vld [vmem:[%s2000_s3 + $0x88] sm:$0xff] }
   0x7   :  { %2011 = vst [vmem:[#allocation9_spill] sm:$0xff] %v994_v5  ;;  %v1059_v18 = vld [vmem:[%s2000_s3 + $0x90] sm:$0xff]  ;;  %v1064_v19 = vld [vmem:[%s2000_s3 + $0x98] sm:$0xff]  ;;  %v1069_v20 = vld [vmem:[%s2000_s3 + $0xa0] sm:$0xff]  ;;  %v1608_v5 = vmov 0.0  }
   0x8   :  { %2012 = vst [vmem:[#allocation10_spill] sm:$0xff] %v999_v6  ;;  %v1074_v21 = vld [vmem:[%s2000_s3 + $0xa8] sm:$0xff]  ;;  %v1079_v22 = vld [vmem:[%s2000_s3 + $0xb0] sm:$0xff]  ;;  %v1084_v23 = vld [vmem:[%s2000_s3 + $0xb8] sm:$0xff] }
   0x9   :  { %2013 = vst [vmem:[#allocation11_spill] sm:$0xff] %v1004_v7  ;;  %v1089_v24 = vld [vmem:[%s2000_s3 + $0xc0] sm:$0xff]  ;;  %v1094_v25 = vld [vmem:[%s2000_s3 + $0xc8] sm:$0xff]  ;;  %v1099_v26 = vld [vmem:[%s2000_s3 + $0xd0] sm:$0xff]  ;;  %v1612_v7 = vmov 0.0  }
   0xa   :  { %2014 = vst [vmem:[#allocation12_spill] sm:$0xff] %v1009_v8  ;;  %v1104_v27 = vld [vmem:[%s2000_s3 + $0xd8] sm:$0xff]  ;;  %v1109_v28 = vld [vmem:[%s2000_s3 + $0xe0] sm:$0xff]  ;;  %v1114_v29 = vld [vmem:[%s2000_s3 + $0xe8] sm:$0xff] }
   0xb   :  { %2015 = vst [vmem:[#allocation13_spill] sm:$0xff] %v1014_v9  ;;  %v1119_v30 = vld [vmem:[%s2000_s3 + $0xf0] sm:$0xff]  ;;  %v1124_v31 = vld [vmem:[%s2000_s3 + $0xf8] sm:$0xff]  ;;  %v1129_v32 = vld [vmem:[%s2000_s3 + $0x100] sm:$0xff] }
   0xc   :  { %2016 = vst [vmem:[#allocation14_spill] sm:$0xff] %v1019_v10  ;;  %v1134_v33 = vld [vmem:[%s2000_s3 + $0x108] sm:$0xff]  ;;  %v1139_v34 = vld [vmem:[%s2000_s3 + $0x110] sm:$0xff]  ;;  %v1144_v35 = vld [vmem:[%s2000_s3 + $0x118] sm:$0xff] }
   0xd   :  { %2017 = vst [vmem:[#allocation15_spill] sm:$0xff] %v1024_v11  ;;  %v1149_v36 = vld [vmem:[%s2000_s3 + $0x120] sm:$0xff]  ;;  %v1154_v37 = vld [vmem:[%s2000_s3 + $0x128] sm:$0xff]  ;;  %v1159_v38 = vld [vmem:[%s2000_s3 + $0x130] sm:$0xff] }
   0xe   :  { %2018 = vst [vmem:[#allocation16_spill] sm:$0xff] %v1029_v12  ;;  %v1164_v39 = vld [vmem:[%s2000_s3 + $0x138] sm:$0xff]  ;;  %v1169_v40 = vld [vmem:[%s2000_s3 + $0x140] sm:$0xff]  ;;  %v1174_v41 = vld [vmem:[%s2000_s3 + $0x148] sm:$0xff] }
   0xf   :  { %2019 = vst [vmem:[#allocation17_spill] sm:$0xff] %v1034_v13  ;;  %v1179_v42 = vld [vmem:[%s2000_s3 + $0x150] sm:$0xff]  ;;  %v1184_v43 = vld [vmem:[%s2000_s3 + $0x158] sm:$0xff]  ;;  %v1189_v44 = vld [vmem:[%s2000_s3 + $0x160] sm:$0xff] }
  0x10   :  { %2020 = vst [vmem:[#allocation18_spill] sm:$0xff] %v1039_v14  ;;  %v1194_v45 = vld [vmem:[%s2000_s3 + $0x168] sm:$0xff]  ;;  %v1199_v46 = vld [vmem:[%s2000_s3 + $0x170] sm:$0xff]  ;;  %v1204_v47 = vld [vmem:[%s2000_s3 + $0x178] sm:$0xff] }
  0x11   :  { %2021 = vst [vmem:[#allocation19_spill] sm:$0xff] %v1044_v15  ;;  %v1209_v48 = vld [vmem:[%s2000_s3 + $0x180] sm:$0xff]  ;;  %v1214_v49 = vld [vmem:[%s2000_s3 + $0x188] sm:$0xff]  ;;  %v1219_v50 = vld [vmem:[%s2000_s3 + $0x190] sm:$0xff] }
  0x12   :  { %2022 = vst [vmem:[#allocation20_spill] sm:$0xff] %v1049_v16  ;;  %v1224_v51 = vld [vmem:[%s2000_s3 + $0x198] sm:$0xff]  ;;  %v1229_v52 = vld [vmem:[%s2000_s3 + $0x1a0] sm:$0xff]  ;;  %v1234_v53 = vld [vmem:[%s2000_s3 + $0x1a8] sm:$0xff] }
  0x13   :  { %2023 = vst [vmem:[#allocation21_spill] sm:$0xff] %v1054_v17  ;;  %v1239_v54 = vld [vmem:[%s2000_s3 + $0x1b0] sm:$0xff]  ;;  %v1244_v55 = vld [vmem:[%s2000_s3 + $0x1b8] sm:$0xff]  ;;  %v1249_v56 = vld [vmem:[%s2000_s3 + $0x1c0] sm:$0xff] }
  0x14   :  { %2024 = vst [vmem:[#allocation22_spill] sm:$0xff] %v1059_v18  ;;  %v1254_v57 = vld [vmem:[%s2000_s3 + $0x1c8] sm:$0xff]  ;;  %v1259_v58 = vld [vmem:[%s2000_s3 + $0x1d0] sm:$0xff]  ;;  %v1264_v59 = vld [vmem:[%s2000_s3 + $0x1d8] sm:$0xff] }
  0x15   :  { %2025 = vst [vmem:[#allocation23_spill] sm:$0xff] %v1064_v19  ;;  %v1269_v60 = vld [vmem:[%s2000_s3 + $0x1e0] sm:$0xff]  ;;  %v1274_v61 = vld [vmem:[%s2000_s3 + $0x1e8] sm:$0xff]  ;;  %v1279_v62 = vld [vmem:[%s2000_s3 + $0x1f0] sm:$0xff] }
  0x16   :  { %2026 = vst [vmem:[#allocation24_spill] sm:$0xff] %v1069_v20  ;;  %v1284_v63 = vld [vmem:[%s2000_s3 + $0x1f8] sm:$0xff]  ;;  %v1289_v0 = vld [vmem:[%s2005_s4] sm:$0xff]  ;;  %v1294_v1 = vld [vmem:[%s2005_s4 + $0x8] sm:$0xff] }
  0x17   :  { %2027 = vst [vmem:[#allocation25_spill] sm:$0xff] %v1074_v21  ;;  %v1299_v3 = vld [vmem:[%s2005_s4 + $0x10] sm:$0xff]  ;;  %v1304_v2 = vld [vmem:[%s2005_s4 + $0x18] sm:$0xff]  ;;  %v1309_v4 = vld [vmem:[%s2005_s4 + $0x20] sm:$0xff] }
  0x18   :  { %2028 = vst [vmem:[#allocation26_spill] sm:$0xff] %v1079_v22 }
  0x19   :  { %2029 = vst [vmem:[#allocation27_spill] sm:$0xff] %v1084_v23 }
  0x1a   :  { %2030 = vst [vmem:[#allocation28_spill] sm:$0xff] %v1089_v24 }
  0x1b   :  { %2031 = vst [vmem:[#allocation29_spill] sm:$0xff] %v1094_v25 }
  0x1c   :  { %2032 = vst [vmem:[#allocation30_spill] sm:$0xff] %v1099_v26 }
  0x1d   :  { %2033 = vst [vmem:[#allocation31_spill] sm:$0xff] %v1104_v27 }
  0x1e   :  { %2034 = vst [vmem:[#allocation32_spill] sm:$0xff] %v1109_v28 }
  0x1f   :  { %2035 = vst [vmem:[#allocation33_spill] sm:$0xff] %v1114_v29 }
  0x20   :  { %2036 = vst [vmem:[#allocation34_spill] sm:$0xff] %v1119_v30 }
  0x21   :  { %2037 = vst [vmem:[#allocation35_spill] sm:$0xff] %v1124_v31 }
  0x22   :  { %2038 = vst [vmem:[#allocation36_spill] sm:$0xff] %v1129_v32 }
  0x23   :  { %2039 = vst [vmem:[#allocation37_spill] sm:$0xff] %v1134_v33 }
  0x24   :  { %2040 = vst [vmem:[#allocation38_spill] sm:$0xff] %v1289_v0  ;;  %v1314_v0 = vld [vmem:[%s2005_s4 + $0x28] sm:$0xff] }
  0x25   :  { %2041 = vst [vmem:[#allocation39_spill] sm:$0xff] %v1294_v1  ;;  %v1319_v1 = vld [vmem:[%s2005_s4 + $0x30] sm:$0xff] }
  0x26   :  { %2042 = vst [vmem:[#allocation40_spill] sm:$0xff] %v1299_v3  ;;  %v1324_v3 = vld [vmem:[%s2005_s4 + $0x38] sm:$0xff] }
  0x27   :  { %2043 = vst [vmem:[#allocation41_spill] sm:$0xff] %v1304_v2  ;;  %v1329_v2 = vld [vmem:[%s2005_s4 + $0x40] sm:$0xff] }
  0x28   :  { %2044 = vst [vmem:[#allocation42_spill] sm:$0xff] %v1309_v4  ;;  %v1334_v4 = vld [vmem:[%s2005_s4 + $0x48] sm:$0xff] }
  0x29   :  { %2045 = vst [vmem:[#allocation43_spill] sm:$0xff] %v1314_v0  ;;  %v1339_v0 = vld [vmem:[%s2005_s4 + $0x50] sm:$0xff] }
  0x2a   :  { %2046 = vst [vmem:[#allocation44_spill] sm:$0xff] %v1319_v1  ;;  %v1344_v1 = vld [vmem:[%s2005_s4 + $0x58] sm:$0xff] }
  0x2b   :  { %2047 = vst [vmem:[#allocation45_spill] sm:$0xff] %v1324_v3  ;;  %v1349_v3 = vld [vmem:[%s2005_s4 + $0x60] sm:$0xff] }
  0x2c   :  { %2048 = vst [vmem:[#allocation46_spill] sm:$0xff] %v1329_v2  ;;  %v1354_v2 = vld [vmem:[%s2005_s4 + $0x68] sm:$0xff] }
  0x2d   :  { %2049 = vst [vmem:[#allocation47_spill] sm:$0xff] %v1334_v4  ;;  %v1359_v4 = vld [vmem:[%s2005_s4 + $0x70] sm:$0xff] }
  0x2e   :  { %2050 = vst [vmem:[#allocation48_spill] sm:$0xff] %v1339_v0  ;;  %v1364_v0 = vld [vmem:[%s2005_s4 + $0x78] sm:$0xff] }
  0x2f   :  { %2051 = vst [vmem:[#allocation49_spill] sm:$0xff] %v1344_v1  ;;  %v1369_v1 = vld [vmem:[%s2005_s4 + $0x80] sm:$0xff] }
  0x30   :  { %2052 = vst [vmem:[#allocation50_spill] sm:$0xff] %v1349_v3  ;;  %v1374_v3 = vld [vmem:[%s2005_s4 + $0x88] sm:$0xff] }
  0x31   :  { %2053 = vst [vmem:[#allocation51_spill] sm:$0xff] %v1354_v2  ;;  %v1379_v2 = vld [vmem:[%s2005_s4 + $0x90] sm:$0xff] }
  0x32   :  { %2054 = vst [vmem:[#allocation52_spill] sm:$0xff] %v1359_v4  ;;  %v1384_v4 = vld [vmem:[%s2005_s4 + $0x98] sm:$0xff] }
  0x33   :  { %2055 = vst [vmem:[#allocation53_spill] sm:$0xff] %v1364_v0  ;;  %v1389_v0 = vld [vmem:[%s2005_s4 + $0xa0] sm:$0xff] }
  0x34   :  { %2056 = vst [vmem:[#allocation54_spill] sm:$0xff] %v1369_v1  ;;  %v1394_v1 = vld [vmem:[%s2005_s4 + $0xa8] sm:$0xff] }
  0x35   :  { %2057 = vst [vmem:[#allocation55_spill] sm:$0xff] %v1374_v3  ;;  %v1399_v3 = vld [vmem:[%s2005_s4 + $0xb0] sm:$0xff] }
  0x36   :  { %2058 = vst [vmem:[#allocation56_spill] sm:$0xff] %v1379_v2  ;;  %v1404_v2 = vld [vmem:[%s2005_s4 + $0xb8] sm:$0xff] }
  0x37   :  { %2059 = vst [vmem:[#allocation57_spill] sm:$0xff] %v1384_v4  ;;  %v1409_v4 = vld [vmem:[%s2005_s4 + $0xc0] sm:$0xff] }
  0x38   :  { %2060 = vst [vmem:[#allocation58_spill] sm:$0xff] %v1389_v0  ;;  %v1414_v0 = vld [vmem:[%s2005_s4 + $0xc8] sm:$0xff] }
  0x39   :  { %2061 = vst [vmem:[#allocation59_spill] sm:$0xff] %v1394_v1  ;;  %v1419_v1 = vld [vmem:[%s2005_s4 + $0xd0] sm:$0xff] }
  0x3a   :  { %2062 = vst [vmem:[#allocation60_spill] sm:$0xff] %v1399_v3  ;;  %v1424_v3 = vld [vmem:[%s2005_s4 + $0xd8] sm:$0xff] }
  0x3b   :  { %2063 = vst [vmem:[#allocation61_spill] sm:$0xff] %v1404_v2  ;;  %v1429_v2 = vld [vmem:[%s2005_s4 + $0xe0] sm:$0xff] }
  0x3c   :  { %2064 = vst [vmem:[#allocation62_spill] sm:$0xff] %v1409_v4  ;;  %v1434_v4 = vld [vmem:[%s2005_s4 + $0xe8] sm:$0xff] }
  0x3d   :  { %2065 = vst [vmem:[#allocation63_spill] sm:$0xff] %v1414_v0  ;;  %v1439_v0 = vld [vmem:[%s2005_s4 + $0xf0] sm:$0xff] }
  0x3e   :  { %2066 = vst [vmem:[#allocation64_spill] sm:$0xff] %v1419_v1  ;;  %v1444_v1 = vld [vmem:[%s2005_s4 + $0xf8] sm:$0xff] }
  0x3f   :  { %2067 = vst [vmem:[#allocation65_spill] sm:$0xff] %v1424_v3  ;;  %v1449_v3 = vld [vmem:[%s2005_s4 + $0x100] sm:$0xff] }
  0x40   :  { %2068 = vst [vmem:[#allocation66_spill] sm:$0xff] %v1429_v2  ;;  %v1454_v2 = vld [vmem:[%s2005_s4 + $0x108] sm:$0xff] }
  0x41   :  { %2069 = vst [vmem:[#allocation67_spill] sm:$0xff] %v1434_v4  ;;  %v1459_v4 = vld [vmem:[%s2005_s4 + $0x110] sm:$0xff] }
  0x42   :  { %2070 = vst [vmem:[#allocation68_spill] sm:$0xff] %v1439_v0  ;;  %v1464_v0 = vld [vmem:[%s2005_s4 + $0x118] sm:$0xff] }
  0x43   :  { %2071 = vst [vmem:[#allocation69_spill] sm:$0xff] %v1444_v1  ;;  %v1469_v1 = vld [vmem:[%s2005_s4 + $0x120] sm:$0xff] }
  0x44   :  { %2072 = vst [vmem:[#allocation70_spill] sm:$0xff] %v1449_v3  ;;  %v1474_v3 = vld [vmem:[%s2005_s4 + $0x128] sm:$0xff] }
  0x45   :  { %2073 = vst [vmem:[#allocation71_spill] sm:$0xff] %v1454_v2  ;;  %v1479_v2 = vld [vmem:[%s2005_s4 + $0x130] sm:$0xff] }
  0x46   :  { %2074 = vst [vmem:[#allocation72_spill] sm:$0xff] %v1459_v4  ;;  %v1484_v4 = vld [vmem:[%s2005_s4 + $0x138] sm:$0xff] }
  0x47   :  { %2075 = vst [vmem:[#allocation73_spill] sm:$0xff] %v1464_v0  ;;  %v1489_v0 = vld [vmem:[%s2005_s4 + $0x140] sm:$0xff] }
  0x48   :  { %2076 = vst [vmem:[#allocation74_spill] sm:$0xff] %v1469_v1  ;;  %v1494_v1 = vld [vmem:[%s2005_s4 + $0x148] sm:$0xff] }
  0x49   :  { %2077 = vst [vmem:[#allocation75_spill] sm:$0xff] %v1474_v3  ;;  %v1499_v3 = vld [vmem:[%s2005_s4 + $0x150] sm:$0xff] }
  0x4a   :  { %2078 = vst [vmem:[#allocation76_spill] sm:$0xff] %v1479_v2  ;;  %v1504_v2 = vld [vmem:[%s2005_s4 + $0x158] sm:$0xff] }
  0x4b   :  { %2079 = vst [vmem:[#allocation77_spill] sm:$0xff] %v1484_v4  ;;  %v1509_v4 = vld [vmem:[%s2005_s4 + $0x160] sm:$0xff] }
  0x4c   :  { %2080 = vst [vmem:[#allocation78_spill] sm:$0xff] %v1489_v0  ;;  %v1514_v0 = vld [vmem:[%s2005_s4 + $0x168] sm:$0xff] }
  0x4d   :  { %2081 = vst [vmem:[#allocation79_spill] sm:$0xff] %v1494_v1  ;;  %v1519_v1 = vld [vmem:[%s2005_s4 + $0x170] sm:$0xff] }
  0x4e   :  { %2082 = vst [vmem:[#allocation80_spill] sm:$0xff] %v1499_v3  ;;  %v1524_v3 = vld [vmem:[%s2005_s4 + $0x178] sm:$0xff] }
  0x4f   :  { %2083 = vst [vmem:[#allocation81_spill] sm:$0xff] %v1504_v2  ;;  %v1529_v2 = vld [vmem:[%s2005_s4 + $0x180] sm:$0xff] }
  0x50   :  { %2084 = vst [vmem:[#allocation82_spill] sm:$0xff] %v1509_v4  ;;  %v1534_v4 = vld [vmem:[%s2005_s4 + $0x188] sm:$0xff] }
  0x51   :  { %2085 = vst [vmem:[#allocation83_spill] sm:$0xff] %v1514_v0  ;;  %v1539_v0 = vld [vmem:[%s2005_s4 + $0x190] sm:$0xff] }
  0x52   :  { %2086 = vst [vmem:[#allocation84_spill] sm:$0xff] %v1519_v1  ;;  %v1544_v1 = vld [vmem:[%s2005_s4 + $0x198] sm:$0xff] }
  0x53   :  { %2087 = vst [vmem:[#allocation85_spill] sm:$0xff] %v1524_v3  ;;  %v1549_v3 = vld [vmem:[%s2005_s4 + $0x1a0] sm:$0xff] }
  0x54   :  { %2088 = vst [vmem:[#allocation86_spill] sm:$0xff] %v1529_v2  ;;  %v1554_v2 = vld [vmem:[%s2005_s4 + $0x1a8] sm:$0xff] }
  0x55   :  { %2089 = vst [vmem:[#allocation87_spill] sm:$0xff] %v1534_v4  ;;  %v1559_v4 = vld [vmem:[%s2005_s4 + $0x1b0] sm:$0xff] }
  0x56   :  { %2090 = vst [vmem:[#allocation88_spill] sm:$0xff] %v1539_v0  ;;  %v1564_v0 = vld [vmem:[%s2005_s4 + $0x1b8] sm:$0xff] }
  0x57   :  { %2091 = vst [vmem:[#allocation89_spill] sm:$0xff] %v1544_v1  ;;  %v1569_v1 = vld [vmem:[%s2005_s4 + $0x1c0] sm:$0xff] }
  0x58   :  { %2092 = vst [vmem:[#allocation90_spill] sm:$0xff] %v1549_v3  ;;  %v1574_v3 = vld [vmem:[%s2005_s4 + $0x1c8] sm:$0xff] }
  0x59   :  { %2093 = vst [vmem:[#allocation91_spill] sm:$0xff] %v1554_v2  ;;  %v1579_v2 = vld [vmem:[%s2005_s4 + $0x1d0] sm:$0xff] }
  0x5a   :  { %2094 = vst [vmem:[#allocation92_spill] sm:$0xff] %v1559_v4  ;;  %v1584_v4 = vld [vmem:[%s2005_s4 + $0x1d8] sm:$0xff] }
  0x5b   :  { %2095 = vst [vmem:[#allocation93_spill] sm:$0xff] %v1564_v0  ;;  %v1589_v0 = vld [vmem:[%s2005_s4 + $0x1e0] sm:$0xff] }
  0x5c   :  { %2096 = vst [vmem:[#allocation94_spill] sm:$0xff] %v1569_v1  ;;  %v1594_v1 = vld [vmem:[%s2005_s4 + $0x1e8] sm:$0xff] }
  0x5d   :  { %2097 = vst [vmem:[#allocation95_spill] sm:$0xff] %v1574_v3  ;;  %v1599_v3 = vld [vmem:[%s2005_s4 + $0x1f0] sm:$0xff] }
  0x5e   :  { %2098 = vst [vmem:[#allocation96_spill] sm:$0xff] %v1579_v2  ;;  %v1604_v2 = vld [vmem:[%s2005_s4 + $0x1f8] sm:$0xff] }
  0x5f   :  { %2099 = vst [vmem:[#allocation97_spill] sm:$0xff] %v1584_v4  ;;  %v1606_v4 = vmov 0.0  }
  0x60   :  { %2100 = vst [vmem:[#allocation98_spill] sm:$0xff] %v1589_v0  ;;  %v1610_v0 = vmov 0.0  }
  0x61   :  { %2101 = vst [vmem:[#allocation99_spill] sm:$0xff] %v1594_v1 }
  0x62   :  { %2102 = vst [vmem:[#allocation100_spill] sm:$0xff] %v1599_v3 }
  0x63   :  { %2103 = vst [vmem:[#allocation101_spill] sm:$0xff] %v1604_v2 }
  0x64 LB: > { %214 = vmatpush.msra.mxu2 %v1279_v62  ;;  %234 = vmatpush.msra.mxu3 %v1284_v63  ;;  %v2104_v33 = vld [vmem:[#allocation37_spill] sm:$0xff]  ;;  %v2105_v32 = vld [vmem:[#allocation36_spill] sm:$0xff]  ;;  %v2106_v30 = vld [vmem:[#allocation34_spill] sm:$0xff]  ;;  %s359_s4 = ssub.s32 7, %s918_s13  ;;  %s758_s14 = sshll.u32 %s918_s13, 1  ;;  %vm261_vm0 = vcmask 1041408   ;;  %s918_s13 = sphi %s1614_s13, %s162_s13   ;;  %v914_v7 = vphi %v1612_v7, %v1851_v7   ;;  %v910_v0 = vphi %v1610_v0, %v1847_v0   ;;  %v906_v5 = vphi %v1608_v5, %v542_v5   ;;  %v902_v4 = vphi %v1606_v4, %v545_v4  }
  0x65   : > { %194 = vmatpush.msra.mxu1 %v1274_v61  ;;  %174 = vmatpush.msra.mxu0 %v1269_v60  ;;  %v2107_v31 = vld [vmem:[#allocation35_spill] sm:$0xff]  ;;  %v2108_v29 = vld [vmem:[#allocation33_spill] sm:$0xff]  ;;  %v2109_v28 = vld [vmem:[#allocation32_spill] sm:$0xff]  ;;  %s1753_s15 = sshll.u32 %s359_s4, 1  ;;  %s168_s18 = scalar_lea.vmem %s1997_s0, %s758_s14  ;;  %vm263_vm1 = vcmask 1045508   ;;  %vm265_vm2 = vcmask 1043456  }
  0x66   : > { %215 = vmatpush.msra.mxu2 %v1259_v58  ;;  %235 = vmatpush.msra.mxu3 %v1264_v59  ;;  %v2110_v26 = vld [vmem:[#allocation30_spill] sm:$0xff]  ;;  %v2111_v27 = vld [vmem:[#allocation31_spill] sm:$0xff]  ;;  %v2112_v25 = vld [vmem:[#allocation29_spill] sm:$0xff]  ;;  %s361_s21 = scalar_lea.vmem %s1997_s0, %s1753_s15  ;;  %s770_s22 = sshll.u32 %s918_s13, 3 }
  0x67   : > { %195 = vmatpush.msra.mxu1 %v1254_v57  ;;  %175 = vmatpush.msra.mxu0 %v1249_v56  ;;  %v2113_v24 = vld [vmem:[#allocation28_spill] sm:$0xff]  ;;  %v2114_v22 = vld [vmem:[#allocation26_spill] sm:$0xff]  ;;  %v2115_v23 = vld [vmem:[#allocation27_spill] sm:$0xff]  ;;  %s172_s25 = scalar_lea.vmem %s1998_s1, %s770_s22  ;;  %s771_s26 = sshll.u32 %s359_s4, 3 }
  0x68   : > { %216 = vmatpush.msra.mxu2 %v1239_v54  ;;  %236 = vmatpush.msra.mxu3 %v1244_v55  ;;  %v2116_v21 = vld [vmem:[#allocation25_spill] sm:$0xff]  ;;  %v2117_v20 = vld [vmem:[#allocation24_spill] sm:$0xff]  ;;  %v2118_v18 = vld [vmem:[#allocation22_spill] sm:$0xff]  ;;  %s365_s29 = scalar_lea.vmem %s1999_s2, %s771_s26  ;;  %s357_s30 = scalar_lea.vmem [#allocation2], %s758_s14 }
  0x69   : > { %196 = vmatpush.msra.mxu1 %v1234_v53  ;;  %176 = vmatpush.msra.mxu0 %v1229_v52  ;;  %v2119_v19 = vld [vmem:[#allocation23_spill] sm:$0xff]  ;;  %v2120_v17 = vld [vmem:[#allocation21_spill] sm:$0xff]  ;;  %v2121_v16 = vld [vmem:[#allocation20_spill] sm:$0xff]  ;;  %s547_s3 = scalar_lea.vmem [#allocation3], %s1753_s15  ;;  %s162_s13 = sadd.s32 1, %s918_s13  }
  0x6a   : > { %217 = vmatpush.msra.mxu2 %v1219_v50  ;;  %237 = vmatpush.msra.mxu3 %v1224_v51  ;;  %v2122_v14 = vld [vmem:[#allocation18_spill] sm:$0xff]  ;;  %v2123_v15 = vld [vmem:[#allocation19_spill] sm:$0xff]  ;;  %v2124_v13 = vld [vmem:[#allocation17_spill] sm:$0xff]  ;;  %p159_p0 = scmp.ge.s32.totalorder %s162_s13, 8  }
  0x6b   : > { %197 = vmatpush.msra.mxu1 %v1214_v49  ;;  %177 = vmatpush.msra.mxu0 %v1209_v48  ;;  %v2125_v12 = vld [vmem:[#allocation16_spill] sm:$0xff]  ;;  %v2126_v10 = vld [vmem:[#allocation14_spill] sm:$0xff]  ;;  %v2127_v11 = vld [vmem:[#allocation15_spill] sm:$0xff] }
  0x6c   : > { %218 = vmatpush.msra.mxu2 %v1199_v46  ;;  %238 = vmatpush.msra.mxu3 %v1204_v47  ;;  %v2128_v9 = vld [vmem:[#allocation13_spill] sm:$0xff]  ;;  %v2129_v8 = vld [vmem:[#allocation12_spill] sm:$0xff]  ;;  %v2130_v6 = vld [vmem:[#allocation10_spill] sm:$0xff] }
  0x6d   : > { %198 = vmatpush.msra.mxu1 %v1194_v45  ;;  %178 = vmatpush.msra.mxu0 %v1189_v44  ;;  %v2136_v3 = vld [vmem:[#allocation100_spill] sm:$0xff]  ;;  %v2137_v2 = vld [vmem:[#allocation101_spill] sm:$0xff]  ;;  %v2144_v1 = vld [vmem:[#allocation99_spill] sm:$0xff] }
  0x6e   : > { %219 = vmatpush.msra.mxu2 %v1179_v42  ;;  %239 = vmatpush.msra.mxu3 %v1184_v43  ;;  %v557_v42 = vld [vmem:[%s2001_s5 + $0x40] sm:$0xff] (%p159_p0)  ;;  %v572_v47 = vld [vmem:[%s2002_s6 + $0x38] sm:$0xff] (%p159_p0)  ;;  %v571_v49 = vld [vmem:[%s2002_s6 + $0x30] sm:$0xff] (%p159_p0) }
  0x6f   : > { %199 = vmatpush.msra.mxu1 %v1174_v41  ;;  %179 = vmatpush.msra.mxu0 %v1169_v40  ;;  %v558_v40 = vld [vmem:[%s2001_s5 + $0x48] sm:$0xff] (%p159_p0)  ;;  %v573_v41 = vld [vmem:[%s2002_s6 + $0x40] sm:$0xff] (%p159_p0)  ;;  %v556_v48 = vld [vmem:[%s2001_s5 + $0x38] sm:$0xff] (%p159_p0) }
  0x70   : > { %220 = vmatpush.msra.mxu2 %v1159_v38  ;;  %240 = vmatpush.msra.mxu3 %v1164_v39  ;;  %v559_v38 = vld [vmem:[%s2001_s5 + $0x50] sm:$0xff] (%p159_p0)  ;;  %v574_v39 = vld [vmem:[%s2002_s6 + $0x48] sm:$0xff] (%p159_p0)  ;;  %v569_v57 = vld [vmem:[%s2002_s6 + $0x20] sm:$0xff] (%p159_p0) }
  0x71   : > { %200 = vmatpush.msra.mxu1 %v1154_v37  ;;  %180 = vmatpush.msra.mxu0 %v1149_v36  ;;  %v560_v36 = vld [vmem:[%s2001_s5 + $0x58] sm:$0xff] (%p159_p0)  ;;  %v575_v37 = vld [vmem:[%s2002_s6 + $0x50] sm:$0xff] (%p159_p0)  ;;  %v570_v55 = vld [vmem:[%s2002_s6 + $0x28] sm:$0xff] (%p159_p0) }
  0x72   : > { %221 = vmatpush.msra.mxu2 %v1139_v34  ;;  %241 = vmatpush.msra.mxu3 %v1144_v35  ;;  %v561_v34 = vld [vmem:[%s2001_s5 + $0x60] sm:$0xff] (%p159_p0)  ;;  %v576_v35 = vld [vmem:[%s2002_s6 + $0x58] sm:$0xff] (%p159_p0)  ;;  %v555_v50 = vld [vmem:[%s2001_s5 + $0x30] sm:$0xff] (%p159_p0) }
  0x73   : > { %201 = vmatpush.msra.mxu1 %v2104_v33  ;;  %181 = vmatpush.msra.mxu0 %v2105_v32  ;;  %v366_v32 = vld [vmem:[%s365_s29] sm:$0xff]  ;;  %v554_v56 = vld [vmem:[%s2001_s5 + $0x28] sm:$0xff] (%p159_p0)  ;;  %v568_v60 = vld [vmem:[%s2002_s6 + $0x18] sm:$0xff] (%p159_p0) }
  0x74   : > { %222 = vmatpush.msra.mxu2 %v2106_v30  ;;  %242 = vmatpush.msra.mxu3 %v2107_v31  ;;  %v553_v58 = vld [vmem:[%s2001_s5 + $0x20] sm:$0xff] (%p159_p0)  ;;  %v552_v61 = vld [vmem:[%s2001_s5 + $0x18] sm:$0xff] (%p159_p0) }
  0x75   : > { %202 = vmatpush.msra.mxu1 %v2108_v29  ;;  %182 = vmatpush.msra.mxu0 %v2109_v28 }
  0x76   : > { %223 = vmatpush.msra.mxu2 %v2110_v26  ;;  %243 = vmatpush.msra.mxu3 %v2111_v27 }
  0x77   : > { %203 = vmatpush.msra.mxu1 %v2112_v25  ;;  %183 = vmatpush.msra.mxu0 %v2113_v24 }
  0x78   : > { %224 = vmatpush.msra.mxu2 %v2114_v22  ;;  %244 = vmatpush.msra.mxu3 %v2115_v23 }
  0x79   : > { %204 = vmatpush.msra.mxu1 %v2116_v21  ;;  %184 = vmatpush.msra.mxu0 %v2117_v20 }
  0x7a   : > { %225 = vmatpush.msra.mxu2 %v2118_v18  ;;  %245 = vmatpush.msra.mxu3 %v2119_v19 }
  0x7b   : > { %205 = vmatpush.msra.mxu1 %v2120_v17  ;;  %185 = vmatpush.msra.mxu0 %v2121_v16  ;;  %v2131_v17 = vld [vmem:[#allocation11_spill] sm:$0xff]  ;;  %v2132_v16 = vld [vmem:[#allocation9_spill] sm:$0xff] }
  0x7c   : > { %226 = vmatpush.msra.mxu2 %v2122_v14  ;;  %246 = vmatpush.msra.mxu3 %v2123_v15  ;;  %v2133_v14 = vld [vmem:[#allocation8_spill] sm:$0xff]  ;;  %v2134_v15 = vld [vmem:[#allocation6_spill] sm:$0xff] }
  0x7d   : > { %206 = vmatpush.msra.mxu1 %v2124_v13  ;;  %186 = vmatpush.msra.mxu0 %v2125_v12  ;;  %v2135_v13 = vld [vmem:[#allocation7_spill] sm:$0xff] }
  0x7e   : > { %227 = vmatpush.msra.mxu2 %v2126_v10  ;;  %247 = vmatpush.msra.mxu3 %v2127_v11 }
  0x7f   : > { %207 = vmatpush.msra.mxu1 %v2128_v9  ;;  %187 = vmatpush.msra.mxu0 %v2129_v8  ;;  %v2138_v8 = vld [vmem:[#allocation5_spill] sm:$0xff]  ;;  %v2152_v9 = vld [vmem:[#allocation91_spill] sm:$0xff] }
  0x80   : > { %228 = vmatpush.msra.mxu2 %v2130_v6  ;;  %248 = vmatpush.msra.mxu3 %v2131_v17  ;;  %v2139_v6 = vld [vmem:[#allocation4_spill] sm:$0xff] }
  0x81   : > { %208 = vmatpush.msra.mxu1 %v2132_v16  ;;  %188 = vmatpush.msra.mxu0 %v2133_v14  ;;  %v2140_v17 = vld [vmem:[#allocation96_spill] sm:$0xff]  ;;  %v2141_v16 = vld [vmem:[#allocation97_spill] sm:$0xff] }
  0x82   : > { %229 = vmatpush.msra.mxu2 %v2134_v15  ;;  %249 = vmatpush.msra.mxu3 %v2135_v13  ;;  %v2142_v13 = vld [vmem:[#allocation92_spill] sm:$0xff]  ;;  %v2143_v14 = vld [vmem:[#allocation93_spill] sm:$0xff]  ;;  %v2145_v15 = vld [vmem:[#allocation98_spill] sm:$0xff] }
  0x83   : > { %230 = vmatmul.f32.vlgmr.msra.gmra.mxu2 %v914_v7  ;;  %250 = vmatmul.f32.vlgmr.msra.gmra.mxu3 %v914_v7 }
  0x84   : > { %407 = vmatpush.msrb.mxu2 %v2136_v3  ;;  %427 = vmatpush.msrb.mxu3 %v2137_v2  ;;  %v2146_v2 = vld [vmem:[#allocation88_spill] sm:$0xff]  ;;  %v2151_v3 = vld [vmem:[#allocation85_spill] sm:$0xff] }
  0x85   : > { %209 = vmatpush.msra.mxu1 %v2138_v8  ;;  %189 = vmatpush.msra.mxu0 %v2139_v6  ;;  %v2147_v8 = vld [vmem:[#allocation89_spill] sm:$0xff]  ;;  %v2148_v6 = vld [vmem:[#allocation95_spill] sm:$0xff] }
  0x86   : > { %408 = vmatpush.msrb.mxu2 %v2140_v17  ;;  %428 = vmatpush.msrb.mxu3 %v2141_v16  ;;  %v2149_v17 = vld [vmem:[#allocation94_spill] sm:$0xff]  ;;  %v2150_v16 = vld [vmem:[#allocation84_spill] sm:$0xff] }
  0x87   : > { %210 = vmatmul.f32.vlgmr.msra.gmra.mxu1 %v914_v7  ;;  %190 = vmatmul.f32.vlgmr.msra.gmra.mxu0 %v914_v7 }
  0x88   : > { %409 = vmatpush.msrb.mxu2 %v2142_v13  ;;  %429 = vmatpush.msrb.mxu3 %v2143_v14  ;;  %v2153_v13 = vld [vmem:[#allocation90_spill] sm:$0xff]  ;;  %v2154_v14 = vld [vmem:[#allocation80_spill] sm:$0xff] }
  0x89   : > { %387 = vmatpush.msrb.mxu1 %v2144_v1  ;;  %367 = vmatpush.msrb.mxu0 %v2145_v15  ;;  %v2155_v1 = vld [vmem:[#allocation81_spill] sm:$0xff]  ;;  %v2156_v15 = vld [vmem:[#allocation87_spill] sm:$0xff] }
  0x8a   : > { %410 = vmatpush.msrb.mxu2 %v2146_v2  ;;  %430 = vmatpush.msrb.mxu3 %v2147_v8  ;;  %v2157_v2 = vld [vmem:[#allocation86_spill] sm:$0xff]  ;;  %v2158_v8 = vld [vmem:[#allocation76_spill] sm:$0xff] }
  0x8b   : > { %388 = vmatpush.msrb.mxu1 %v2148_v6  ;;  %368 = vmatpush.msrb.mxu0 %v2149_v17  ;;  %v2159_v6 = vld [vmem:[#allocation77_spill] sm:$0xff]  ;;  %v2160_v17 = vld [vmem:[#allocation83_spill] sm:$0xff] }
  0x8c   : > { %411 = vmatpush.msrb.mxu2 %v2150_v16  ;;  %431 = vmatpush.msrb.mxu3 %v2151_v3  ;;  %v2161_v16 = vld [vmem:[#allocation82_spill] sm:$0xff]  ;;  %v2162_v3 = vld [vmem:[#allocation72_spill] sm:$0xff] }
  0x8d   : > { %389 = vmatpush.msrb.mxu1 %v2152_v9  ;;  %369 = vmatpush.msrb.mxu0 %v2153_v13  ;;  %v2163_v9 = vld [vmem:[#allocation73_spill] sm:$0xff]  ;;  %v2164_v13 = vld [vmem:[#allocation79_spill] sm:$0xff] }
  0x8e   : > { %412 = vmatpush.msrb.mxu2 %v2154_v14  ;;  %432 = vmatpush.msrb.mxu3 %v2155_v1  ;;  %v2165_v14 = vld [vmem:[#allocation78_spill] sm:$0xff]  ;;  %v2166_v1 = vld [vmem:[#allocation68_spill] sm:$0xff] }
  0x8f   : > { %390 = vmatpush.msrb.mxu1 %v2156_v15  ;;  %370 = vmatpush.msrb.mxu0 %v2157_v2  ;;  %v2167_v15 = vld [vmem:[#allocation69_spill] sm:$0xff]  ;;  %v2168_v2 = vld [vmem:[#allocation75_spill] sm:$0xff] }
  0x90   : > { %413 = vmatpush.msrb.mxu2 %v2158_v8  ;;  %433 = vmatpush.msrb.mxu3 %v2159_v6  ;;  %v2169_v8 = vld [vmem:[#allocation74_spill] sm:$0xff]  ;;  %v2170_v6 = vld [vmem:[#allocation64_spill] sm:$0xff] }
  0x91   : > { %391 = vmatpush.msrb.mxu1 %v2160_v17  ;;  %371 = vmatpush.msrb.mxu0 %v2161_v16  ;;  %v2171_v17 = vld [vmem:[#allocation65_spill] sm:$0xff]  ;;  %v2172_v16 = vld [vmem:[#allocation71_spill] sm:$0xff] }
  0x92   : > { %414 = vmatpush.msrb.mxu2 %v2162_v3  ;;  %434 = vmatpush.msrb.mxu3 %v2163_v9  ;;  %v2173_v3 = vld [vmem:[#allocation70_spill] sm:$0xff]  ;;  %v2174_v9 = vld [vmem:[#allocation60_spill] sm:$0xff] }
  0x93   : > { %392 = vmatpush.msrb.mxu1 %v2164_v13  ;;  %372 = vmatpush.msrb.mxu0 %v2165_v14  ;;  %v2175_v13 = vld [vmem:[#allocation61_spill] sm:$0xff]  ;;  %v2176_v14 = vld [vmem:[#allocation67_spill] sm:$0xff] }
  0x94   : > { %415 = vmatpush.msrb.mxu2 %v2166_v1  ;;  %435 = vmatpush.msrb.mxu3 %v2167_v15  ;;  %v2177_v1 = vld [vmem:[#allocation66_spill] sm:$0xff]  ;;  %v2178_v15 = vld [vmem:[#allocation56_spill] sm:$0xff] }
  0x95   : > { %393 = vmatpush.msrb.mxu1 %v2168_v2  ;;  %373 = vmatpush.msrb.mxu0 %v2169_v8  ;;  %v2179_v2 = vld [vmem:[#allocation57_spill] sm:$0xff]  ;;  %v2180_v8 = vld [vmem:[#allocation63_spill] sm:$0xff] }
  0x96   : > { %416 = vmatpush.msrb.mxu2 %v2170_v6  ;;  %436 = vmatpush.msrb.mxu3 %v2171_v17  ;;  %v2181_v6 = vld [vmem:[#allocation62_spill] sm:$0xff]  ;;  %v2182_v17 = vld [vmem:[#allocation52_spill] sm:$0xff] }
  0x97   : > { %394 = vmatpush.msrb.mxu1 %v2172_v16  ;;  %374 = vmatpush.msrb.mxu0 %v2173_v3  ;;  %v2183_v16 = vld [vmem:[#allocation53_spill] sm:$0xff]  ;;  %v2184_v3 = vld [vmem:[#allocation59_spill] sm:$0xff] }
  0x98   : > { %417 = vmatpush.msrb.mxu2 %v2174_v9  ;;  %437 = vmatpush.msrb.mxu3 %v2175_v13  ;;  %v2185_v9 = vld [vmem:[#allocation58_spill] sm:$0xff]  ;;  %v2186_v13 = vld [vmem:[#allocation48_spill] sm:$0xff] }
  0x99   : > { %395 = vmatpush.msrb.mxu1 %v2176_v14  ;;  %375 = vmatpush.msrb.mxu0 %v2177_v1  ;;  %v2187_v14 = vld [vmem:[#allocation49_spill] sm:$0xff]  ;;  %v2188_v1 = vld [vmem:[#allocation55_spill] sm:$0xff] }
  0x9a   : > { %418 = vmatpush.msrb.mxu2 %v2178_v15  ;;  %438 = vmatpush.msrb.mxu3 %v2179_v2  ;;  %v2189_v15 = vld [vmem:[#allocation54_spill] sm:$0xff]  ;;  %v2190_v2 = vld [vmem:[#allocation44_spill] sm:$0xff] }
  0x9b   : > { %396 = vmatpush.msrb.mxu1 %v2180_v8  ;;  %376 = vmatpush.msrb.mxu0 %v2181_v6  ;;  %v2191_v8 = vld [vmem:[#allocation45_spill] sm:$0xff]  ;;  %v2192_v6 = vld [vmem:[#allocation51_spill] sm:$0xff] }
  0x9c   : > { %419 = vmatpush.msrb.mxu2 %v2182_v17  ;;  %439 = vmatpush.msrb.mxu3 %v2183_v16  ;;  %v2193_v17 = vld [vmem:[#allocation50_spill] sm:$0xff]  ;;  %v2194_v16 = vld [vmem:[#allocation40_spill] sm:$0xff] }
  0x9d   : > { %397 = vmatpush.msrb.mxu1 %v2184_v3  ;;  %377 = vmatpush.msrb.mxu0 %v2185_v9  ;;  %v2195_v3 = vld [vmem:[#allocation41_spill] sm:$0xff]  ;;  %v2196_v9 = vld [vmem:[#allocation47_spill] sm:$0xff] }
  0x9e   : > { %420 = vmatpush.msrb.mxu2 %v2186_v13  ;;  %440 = vmatpush.msrb.mxu3 %v2187_v14  ;;  %v2197_v13 = vld [vmem:[#allocation46_spill] sm:$0xff]  ;;  %v169_v14 = vld [vmem:[%s168_s18] sm:$0x3] }
  0x9f   : > { %398 = vmatpush.msrb.mxu1 %v2188_v1  ;;  %378 = vmatpush.msrb.mxu0 %v2189_v15  ;;  %v362_v1 = vld [vmem:[%s361_s21] sm:$0x3]  ;;  %v920_v15 = vmov 0  }
  0xa0   : > { %421 = vmatpush.msrb.mxu2 %v2190_v2  ;;  %441 = vmatpush.msrb.mxu3 %v2191_v8  ;;  %v2198_v2 = vld [vmem:[#allocation43_spill] sm:$0xff]  ;;  %v2199_v8 = vld [vmem:[#allocation42_spill] sm:$0xff] }
  0xa1   : > { %399 = vmatpush.msrb.mxu1 %v2192_v6  ;;  %379 = vmatpush.msrb.mxu0 %v2193_v17  ;;  %v2200_v6 = vld [vmem:[#allocation39_spill] sm:$0xff]  ;;  %v2201_v17 = vld [vmem:[#allocation38_spill] sm:$0xff] }
  0xa2   : > { %422 = vmatpush.msrb.mxu2 %v2194_v16  ;;  %442 = vmatpush.msrb.mxu3 %v2195_v3  ;;  %v345_v16 = vsub.f32 1.0, %v169_v14  ;;  %v535_v3 = vsub.f32 1.0, %v362_v1 }
  0xa3   : > { %423 = vmatmul.f32.vlgmr.msrb.gmra.mxu2 %v906_v5  ;;  %443 = vmatmul.f32.vlgmr.msrb.gmra.mxu3 %v906_v5 }
  0xa4   : > { %400 = vmatpush.msrb.mxu1 %v2196_v9  ;;  %380 = vmatpush.msrb.mxu0 %v2197_v13 }
  0xa5   : > { %845 = vset.pattern.permute.xlu0 %v920_v15  ;;  %846 = vset.pattern.permute.xlu1 %v920_v15 }
  0xa6   : > { %401 = vmatpush.msrb.mxu1 %v2198_v2  ;;  %381 = vmatpush.msrb.mxu0 %v2199_v8 }
  0xa7   : > { %341 = vperm.xlu0 %845, %v169_v14   ;;  %531 = vperm.xlu1 %846, %v362_v1   ;;  %v173_v14 = vld [vmem:[%s172_s25] sm:$0xff] }
  0xa8   : > { %402 = vmatpush.msrb.mxu1 %v2200_v6  ;;  %382 = vmatpush.msrb.mxu0 %v2201_v17 }
  0xa9   : > { %403 = vmatmul.f32.vlgmr.msrb.gmra.mxu1 %v906_v5  ;;  %383 = vmatmul.f32.vlgmr.msrb.gmra.mxu0 %v906_v5 }
  0xaf   : > { %348 = vperm.xlu0 %845, %v345_v16   ;;  %538 = vperm.xlu1 %846, %v535_v3  }
 0x104   : > { %v211_v9 = vpop.f32.mrf.mxu1  ;;  %v191_v13 = vpop.f32.mrf.mxu0 }
 0x105   : > { %v258_v15 = vrot.slane %v211_v9, 6 }
 0x106   : > { %v231_v2 = vpop.f32.mrf.mxu2  ;;  %v251_v8 = vpop.f32.mrf.mxu3 }
 0x107   : > { %v259_v6 = vrot.slane %v231_v2, 4  ;;  %v260_v17 = vrot.slane %v251_v8, 2  ;;  %v262_v10 = vsel %vm261_vm0, %v191_v13, %v258_v15 }
 0x109   : > { %v264_v1 = vsel %vm263_vm1, %v259_v6, %v260_v17 }
 0x10a   : > { %v266_v16 = vsel %vm265_vm2, %v262_v10, %v264_v1 }
 0x10b   : > { %v268_v3 = vadd.f32 %v266_v16, %v173_v14 }
 0x10d   : > { %v761_v11 = vmul.f32 -1.442695, %v268_v3  ;;  %v289_v9 = vrot.slane %v268_v3, 2  ;;  %v313_v12 = vrot.slane %v268_v3, 6  ;;  %v310_v10 = vrot.slane %v268_v3, 4 }
 0x10f   : > { %847 = vpow2.f32 %v761_v11  ;;  %v762_v18 = vmul.f32 -1.442695, %v289_v9  ;;  %v763_v19 = vmul.f32 -1.442695, %v313_v12 }
 0x111   : > { %849 = vpow2.f32 %v762_v18 }
 0x112   : > { %851 = vpow2.f32 %v763_v19 }
 0x115   : > { %v848_v20 = vpop.eup %847 }
 0x116   : > { %v272_v2 = vadd.f32 1.0, %v848_v20 }
 0x117   : > { %v850_v8 = vpop.eup %849 }
 0x118   : > { %v852_v21 = vpop.eup %851  ;;  %853 = vrcp.f32 %v272_v2  ;;  %v294_v13 = vadd.f32 1.0, %v850_v8  ;;  %vm278_vm3 = vweird.f32 %v272_v2  ;;  %v284_v12 = vand.u32 2147483648, %v272_v2 }
 0x119   : > { %v1789_v15 = vadd.f32 1.0, %v852_v21  ;;  %v1792_v14 = vpop.permute.xlu0 %341  ;;  %v282_v20 = vand.u32 2147483647, %v272_v2 }
 0x11a   : > { %855 = vrcp.f32 %v294_v13  ;;  %v304_v1 = vand.u32 2147483647, %v294_v13  ;;  %v306_v16 = vand.u32 2147483648, %v294_v13  ;;  %vm300_vm5 = vweird.f32 %v294_v13 }
 0x11b   : > { %857 = vrcp.f32 %v1789_v15  ;;  %vm1805_vm8 = vcmp.eq.f32.partialorder %v282_v20, 8.507059e+37  ;;  %vm324_vm11 = vweird.f32 %v1789_v15 }
 0x11c   : > { %859 = vtanh.f32 %v310_v10  ;;  %vm1816_vm10 = vcmp.eq.f32.partialorder %v304_v1, 8.507059e+37  ;;  %v307_v20 = vor.u32 1.1754944e-38, %v306_v16 }
 0x11e   : > { %v854_v6 = vpop.eup %853 }
 0x11f   : > { %v274_v17 = vmul.f32 %v854_v6, %v272_v2  ;;  %vm279_vm4 = vweird.f32 %v854_v6 }
 0x120   : > { %v856_v11 = vpop.eup %855  ;;  %vm1801_vm7 = vmor %vm278_vm3, %vm279_vm4 }
 0x121   : > { %v1794_v18 = vpop.eup %857  ;;  %v275_v19 = vsub.f32 1.0, %v274_v17  ;;  %v296_v21 = vmul.f32 %v856_v11, %v294_v13  ;;  %vm301_vm6 = vweird.f32 %v856_v11  ;;  %v285_v17 = vor.u32 1.1754944e-38, %v284_v12  ;;  %v349_v33 = vpop.permute.xlu0 %348 }
 0x122   : > { %v320_v3 = vmul.f32 %v1794_v18, %v1789_v15  ;;  %v860_v26 = vpop.eup %859  ;;  %vm1812_vm9 = vmor %vm300_vm5, %vm301_vm6  ;;  %vm325_vm12 = vweird.f32 %v1794_v18 }
 0x123   : > { %v276_v9 = vmul.f32 %v854_v6, %v275_v19  ;;  %v297_v8 = vsub.f32 1.0, %v296_v21  ;;  %vm1838_vm13 = vmor %vm324_vm11, %vm325_vm12 }
 0x124   : > { %v321_v22 = vsub.f32 1.0, %v320_v3 }
 0x125   : > { %v277_v23 = vadd.f32 %v854_v6, %v276_v9  ;;  %v298_v25 = vmul.f32 %v856_v11, %v297_v8 }
 0x126   : > { %v404_v13 = vpop.f32.mrf.mxu1  ;;  %v424_v19 = vpop.f32.mrf.mxu2  ;;  %v322_v31 = vmul.f32 %v1794_v18, %v321_v22  ;;  %v328_v22 = vand.u32 2147483647, %v1789_v15 }
 0x127   : > { %v451_v21 = vrot.slane %v404_v13, 6  ;;  %v452_v3 = vrot.slane %v424_v19, 4  ;;  %v444_v9 = vpop.f32.mrf.mxu3  ;;  %v384_v8 = vpop.f32.mrf.mxu0  ;;  %v281_v27 = vsel %vm1801_vm7, %v854_v6, %v277_v23  ;;  %v299_v28 = vadd.f32 %v856_v11, %v298_v25 }
 0x128   : > { %v453_v29 = vrot.slane %v444_v9, 2  ;;  %v286_v30 = vsel %vm1805_vm8, %v285_v17, %v281_v27  ;;  %v330_v25 = vand.u32 2147483648, %v1789_v15  ;;  %v354_v6 = vmul.f32 %v910_v0, %v349_v33 }
 0x129   : > { %v454_v1 = vsel %vm261_vm0, %v384_v8, %v451_v21  ;;  %v303_v16 = vsel %vm1812_vm9, %v856_v11, %v299_v28  ;;  %v335_v13 = vmul.f32 %v860_v26, %v286_v30  ;;  %v323_v26 = vadd.f32 %v1794_v18, %v322_v31 }
 0x12a   : > { %v455_v19 = vsel %vm263_vm1, %v452_v3, %v453_v29  ;;  %v308_v23 = vsel %vm1816_vm10, %v307_v20, %v303_v16  ;;  %vm329_vm14 = vcmp.eq.f32.partialorder %v328_v22, 8.507059e+37  ;;  %v331_v2 = vor.u32 1.1754944e-38, %v330_v25 }
 0x12b   : > { %v456_v24 = vsel %vm265_vm2, %v454_v1, %v455_v19  ;;  %v334_v27 = vmul.f32 %v910_v0, %v308_v23  ;;  %v327_v31 = vsel %vm1838_vm13, %v1794_v18, %v323_v26  ;;  %v351_v8 = vmul.f32 %v914_v7, %v349_v33  ;;  %v532_v26 = vpop.permute.xlu1 %531 }
 0x12c   : > { %v458_v28 = vadd.f32 %v456_v24, %v366_v32  ;;  %v332_v20 = vsel %vm329_vm14, %v331_v2, %v327_v31 }
 0x12d   : > { %v336_v30 = vadd.f32 %v335_v13, %v334_v27 }
 0x12e   : > { %v767_v11 = vmul.f32 -1.442695, %v458_v28  ;;  %v479_v10 = vrot.slane %v458_v28, 2  ;;  %v503_v17 = vrot.slane %v458_v28, 6  ;;  %v500_v27 = vrot.slane %v458_v28, 4 }
 0x12f   : > { %861 = vtanh.f32 %v336_v30  ;;  %v353_v15 = vmul.f32 %v1792_v14, %v336_v30 }
 0x130   : > { %863 = vpow2.f32 %v767_v11  ;;  %v768_v12 = vmul.f32 -1.442695, %v479_v10  ;;  %v769_v32 = vmul.f32 -1.442695, %v503_v17 }
 0x131   : > { %v1847_v0 = vadd.f32 %v354_v6, %v353_v15  }
 0x132   : > { %865 = vpow2.f32 %v768_v12  ;;  %v578_v0 = vld [vmem:[%s2002_s6 + $0x68] sm:$0xff] (%p159_p0) }
 0x133   : > { %867 = vpow2.f32 %v769_v32 }
 0x135   : > { %v862_v21 = vpop.eup %861 }
 0x136   : > { %v864_v3 = vpop.eup %863  ;;  %v338_v9 = vmul.f32 %v862_v21, %v332_v20 }
 0x137   : > { %v462_v1 = vadd.f32 1.0, %v864_v3 }
 0x138   : > { %v866_v16 = vpop.eup %865  ;;  %v344_v13 = vmul.f32 %v1792_v14, %v338_v9 }
 0x139   : > { %v868_v19 = vpop.eup %867  ;;  %869 = vrcp.f32 %v462_v1  ;;  %v484_v23 = vadd.f32 1.0, %v866_v16  ;;  %v474_v11 = vand.u32 2147483648, %v462_v1  ;;  %v472_v2 = vand.u32 2147483647, %v462_v1 }
 0x13a   : > { %v508_v24 = vadd.f32 1.0, %v868_v19  ;;  %v1851_v7 = vadd.f32 %v351_v8, %v344_v13   ;;  %vm468_vm0 = vweird.f32 %v462_v1 }
 0x13b   : > { %871 = vrcp.f32 %v484_v23  ;;  %v496_v12 = vand.u32 2147483648, %v484_v23  ;;  %v494_v31 = vand.u32 2147483647, %v484_v23  ;;  %v475_v20 = vor.u32 1.1754944e-38, %v474_v11 }
 0x13c   : > { %873 = vrcp.f32 %v508_v24  ;;  %v356_v18 = vmul.f32 %v1851_v7, %v1792_v14  ;;  %vm473_vm3 = vcmp.eq.f32.partialorder %v472_v2, 8.507059e+37  ;;  %vm490_vm4 = vweird.f32 %v484_v23  ;;  %v563_v7 = vld [vmem:[%s2001_s5 + $0x70] sm:$0xff] (%p159_p0) }
 0x13d   : > { %875 = vtanh.f32 %v500_v27  ;;  %v497_v8 = vor.u32 1.1754944e-38, %v496_v12  ;;  %vm495_vm6 = vcmp.eq.f32.partialorder %v494_v31, 8.507059e+37  ;;  %vm514_vm8 = vweird.f32 %v508_v24 }
 0x13e   : > { %358 = vst [vmem:[%s357_s30] sm:$0x3] %v356_v18 }
 0x13f   : > { %v870_v22 = vpop.eup %869 }
 0x140   : > { %v464_v33 = vmul.f32 %v870_v22, %v462_v1  ;;  %vm469_vm15 = vweird.f32 %v870_v22  ;;  %v539_v1 = vpop.permute.xlu1 %538 }
 0x141   : > { %v872_v25 = vpop.eup %871  ;;  %vm470_vm2 = vmor %vm468_vm0, %vm469_vm15 }
 0x142   : > { %v874_v29 = vpop.eup %873  ;;  %v465_v30 = vsub.f32 1.0, %v464_v33  ;;  %v486_v6 = vmul.f32 %v872_v25, %v484_v23  ;;  %vm491_vm1 = vweird.f32 %v872_v25 }
 0x143   : > { %v510_v10 = vmul.f32 %v874_v29, %v508_v24  ;;  %vm492_vm5 = vmor %vm490_vm4, %vm491_vm1  ;;  %v876_v13 = vpop.eup %875  ;;  %vm515_vm7 = vweird.f32 %v874_v29 }
 0x144   : > { %v466_v17 = vmul.f32 %v870_v22, %v465_v30  ;;  %v487_v15 = vsub.f32 1.0, %v486_v6  ;;  %v544_v6 = vmul.f32 %v902_v4, %v539_v1  ;;  %vm516_vm9 = vmor %vm514_vm8, %vm515_vm7 }
 0x145   : > { %v511_v28 = vsub.f32 1.0, %v510_v10  ;;  %v518_v10 = vand.u32 2147483647, %v508_v24  ;;  %v585_v59 = vld [vmem:[#allocation2 + $0x8] sm:$0x3] (%p159_p0) }
 0x146   : > { %v467_v14 = vadd.f32 %v870_v22, %v466_v17  ;;  %v488_v32 = vmul.f32 %v872_v25, %v487_v15  ;;  %v586_v62 = vld [vmem:[#allocation2 + $0xa] sm:$0x3] (%p159_p0)  ;;  %v587_v63 = vld [vmem:[#allocation2 + $0xc] sm:$0x3] (%p159_p0) }
 0x147   : > { %v512_v18 = vmul.f32 %v874_v29, %v511_v28  ;;  %vm519_vm10 = vcmp.eq.f32.partialorder %v518_v10, 8.507059e+37  ;;  %v567_v28 = vld [vmem:[%s2002_s6 + $0x10] sm:$0xff] (%p159_p0) }
 0x148   : > { %v471_v21 = vsel %vm470_vm2, %v870_v22, %v467_v14  ;;  %v489_v3 = vadd.f32 %v872_v25, %v488_v32  ;;  %v520_v22 = vand.u32 2147483648, %v508_v24  ;;  %v541_v32 = vmul.f32 %v906_v5, %v539_v1  ;;  %v580_v24 = vld [vmem:[%s2002_s6 + $0x78] sm:$0xff] (%p159_p0)  ;;  %v583_v1 = vld [vmem:[#allocation2 + $0x4] sm:$0x3] (%p159_p0) }
 0x149   : > { %v476_v9 = vsel %vm473_vm3, %v475_v20, %v471_v21  ;;  %v513_v11 = vadd.f32 %v874_v29, %v512_v18  ;;  %772 = vmatpush.msra.mxu2 (%p159_p0), %v580_v24  ;;  %624 = vmatpush.msra.mxu0 (%p159_p0), %v580_v24  ;;  %v551_v21 = vld [vmem:[%s2001_s5 + $0x10] sm:$0xff] (%p159_p0)  ;;  %v565_v18 = vld [vmem:[%s2002_s6] sm:$0xff] (%p159_p0) }
 0x14a   : > { %v493_v16 = vsel %vm492_vm5, %v872_v25, %v489_v3  ;;  %v525_v27 = vmul.f32 %v876_v13, %v476_v9  ;;  %v521_v17 = vor.u32 1.1754944e-38, %v520_v22  ;;  %v588_v3 = vld [vmem:[#allocation2 + $0xe] sm:$0x3] (%p159_p0)  ;;  %v566_v9 = vld [vmem:[%s2002_s6 + $0x8] sm:$0xff] (%p159_p0)  ;;  %v879_v22 = vld [vmem:[%s2003_s7] ss:$0 sm:$0xff] (%p159_p0) }
 0x14b   : > { %v498_v19 = vsel %vm495_vm6, %v497_v8, %v493_v16  ;;  %v517_v25 = vsel %vm516_vm9, %v874_v29, %v513_v11  ;;  %v579_v29 = vld [vmem:[%s2002_s6 + $0x70] sm:$0xff] (%p159_p0)  ;;  %v550_v8 = vld [vmem:[%s2001_s5 + $0x8] sm:$0xff] (%p159_p0) }
 0x14c   : > { %v524_v33 = vmul.f32 %v902_v4, %v498_v19  ;;  %v522_v15 = vsel %vm519_vm10, %v521_v17, %v517_v25  ;;  %773 = vmatpush.msra.mxu2 (%p159_p0), %v579_v29  ;;  %625 = vmatpush.msra.mxu0 (%p159_p0), %v579_v29  ;;  %v581_v16 = vld [vmem:[#allocation2] sm:$0x3] (%p159_p0)  ;;  %v582_v13 = vld [vmem:[#allocation2 + $0x2] sm:$0x3] (%p159_p0) }
 0x14e   : > { %v526_v30 = vadd.f32 %v525_v27, %v524_v33  ;;  %774 = vmatpush.msra.mxu2 (%p159_p0), %v578_v0  ;;  %626 = vmatpush.msra.mxu0 (%p159_p0), %v578_v0  ;;  %v549_v33 = vld [vmem:[%s2001_s5] sm:$0xff] (%p159_p0)  ;;  %v584_v27 = vld [vmem:[#allocation2 + $0x6] sm:$0x3] (%p159_p0) }
 0x150   : > { %877 = vtanh.f32 %v526_v30  ;;  %v543_v23 = vmul.f32 %v532_v26, %v526_v30 }
 0x152   : > { %v545_v4 = vadd.f32 %v544_v6, %v543_v23  }
 0x153   :  { %v562_v4 = vld [vmem:[%s2001_s5 + $0x68] sm:$0xff] (%p159_p0) }
 0x156   : > { %v878_v2 = vpop.eup %877 }
 0x157   : > { %v528_v12 = vmul.f32 %v878_v2, %v522_v15 }
 0x159   : > { %v534_v14 = vmul.f32 %v532_v26, %v528_v12 }
 0x15b   : > { %v542_v5 = vadd.f32 %v541_v32, %v534_v14   ;;  %161 = sbr.rel (!%p159_p0) target bundleno = 100 (0x64), region = 79 }
 0x15d   : > { %v546_v31 = vmul.f32 %v542_v5, %v532_v26  ;;  %v564_v26 = vld [vmem:[%s2001_s5 + $0x78] sm:$0xff] (%p159_p0)  ;;  %v577_v5 = vld [vmem:[%s2002_s6 + $0x60] sm:$0xff] (%p159_p0) }
 0x15e   :  { %788 = vmatpush.msra.mxu3 (%p159_p0), %v564_v26  ;;  %674 = vmatpush.msra.mxu1 (%p159_p0), %v564_v26 }
 0x15f   : > { %548 = vst [vmem:[%s547_s3] sm:$0x3] %v546_v31  ;;  %775 = vmatpush.msra.mxu2 (%p159_p0), %v577_v5  ;;  %627 = vmatpush.msra.mxu0 (%p159_p0), %v577_v5 }
 0x160   :  { %789 = vmatpush.msra.mxu3 %v563_v7  ;;  %675 = vmatpush.msra.mxu1 %v563_v7 }
 0x161   :  { %776 = vmatpush.msra.mxu2 %v576_v35  ;;  %628 = vmatpush.msra.mxu0 %v576_v35 }
 0x162   :  { %790 = vmatpush.msra.mxu3 %v562_v4  ;;  %676 = vmatpush.msra.mxu1 %v562_v4 }
 0x163   :  { %777 = vmatpush.msra.mxu2 %v575_v37  ;;  %629 = vmatpush.msra.mxu0 %v575_v37 }
 0x164   :  { %791 = vmatpush.msra.mxu3 %v561_v34  ;;  %677 = vmatpush.msra.mxu1 %v561_v34 }
 0x165   :  { %778 = vmatpush.msra.mxu2 %v574_v39  ;;  %630 = vmatpush.msra.mxu0 %v574_v39 }
 0x166   :  { %792 = vmatpush.msra.mxu3 %v560_v36  ;;  %678 = vmatpush.msra.mxu1 %v560_v36  ;;  %v593_v43 = vld [vmem:[#allocation3 + $0x8] sm:$0x3]  ;;  %v594_v44 = vld [vmem:[#allocation3 + $0xa] sm:$0x3]  ;;  %v595_v45 = vld [vmem:[#allocation3 + $0xc] sm:$0x3] }
 0x167   :  { %v596_v46 = vld [vmem:[#allocation3 + $0xe] sm:$0x3]  ;;  %613 = vst [vmem:[#allocation1 + $0x20] ss:$4 sm:$0xff] %v593_v43  ;;  %779 = vmatpush.msra.mxu2 %v573_v41  ;;  %v589_v51 = vld [vmem:[#allocation3] sm:$0x3]  ;;  %631 = vmatpush.msra.mxu0 %v573_v41 }
 0x168   :  { %793 = vmatpush.msra.mxu3 %v559_v38  ;;  %679 = vmatpush.msra.mxu1 %v559_v38  ;;  %615 = vst [vmem:[#allocation1 + $0x21] ss:$4 sm:$0xff] %v594_v44  ;;  %v590_v52 = vld [vmem:[#allocation3 + $0x2] sm:$0x3]  ;;  %v591_v53 = vld [vmem:[#allocation3 + $0x4] sm:$0x3] }
 0x169   :  { %617 = vst [vmem:[#allocation1 + $0x22] ss:$4 sm:$0xff] %v595_v45  ;;  %780 = vmatpush.msra.mxu2 %v572_v47  ;;  %v592_v54 = vld [vmem:[#allocation3 + $0x6] sm:$0x3]  ;;  %632 = vmatpush.msra.mxu0 %v572_v47 }
 0x16a   :  { %794 = vmatpush.msra.mxu3 %v558_v40  ;;  %680 = vmatpush.msra.mxu1 %v558_v40  ;;  %619 = vst [vmem:[#allocation1 + $0x23] ss:$4 sm:$0xff] %v596_v46 }
 0x16b   :  { %605 = vst [vmem:[#allocation1] ss:$4 sm:$0xff] %v589_v51  ;;  %781 = vmatpush.msra.mxu2 %v571_v49  ;;  %633 = vmatpush.msra.mxu0 %v571_v49 }
 0x16c   :  { %795 = vmatpush.msra.mxu3 %v557_v42  ;;  %681 = vmatpush.msra.mxu1 %v557_v42  ;;  %607 = vst [vmem:[#allocation1 + $0x1] ss:$4 sm:$0xff] %v590_v52 }
 0x16d   :  { %609 = vst [vmem:[#allocation1 + $0x2] ss:$4 sm:$0xff] %v591_v53  ;;  %782 = vmatpush.msra.mxu2 %v570_v55  ;;  %634 = vmatpush.msra.mxu0 %v570_v55 }
 0x16e   :  { %796 = vmatpush.msra.mxu3 %v556_v48  ;;  %682 = vmatpush.msra.mxu1 %v556_v48  ;;  %611 = vst [vmem:[#allocation1 + $0x3] ss:$4 sm:$0xff] %v592_v54 }
 0x16f   :  { %783 = vmatpush.msra.mxu2 %v569_v57  ;;  %635 = vmatpush.msra.mxu0 %v569_v57 }
 0x170   :  { %797 = vmatpush.msra.mxu3 %v555_v50  ;;  %683 = vmatpush.msra.mxu1 %v555_v50 }
 0x171   :  { %v621_v20 = vld.sshfl [vmem:[#allocation1 + $0x20] sm:$0xff pattern:$0x73625140]  ;;  %784 = vmatpush.msra.mxu2 %v568_v60  ;;  %636 = vmatpush.msra.mxu0 %v568_v60 }
 0x172   :  { %798 = vmatpush.msra.mxu3 %v554_v56  ;;  %684 = vmatpush.msra.mxu1 %v554_v56  ;;  %663 = vst [vmem:[#allocation1 + $0x20] ss:$4 sm:$0xff] %v585_v59 }
 0x173   :  { %665 = vst [vmem:[#allocation1 + $0x21] ss:$4 sm:$0xff] %v586_v62  ;;  %785 = vmatpush.msra.mxu2 %v567_v28  ;;  %637 = vmatpush.msra.mxu0 %v567_v28 }
 0x174   :  { %799 = vmatpush.msra.mxu3 %v553_v58  ;;  %685 = vmatpush.msra.mxu1 %v553_v58  ;;  %667 = vst [vmem:[#allocation1 + $0x22] ss:$4 sm:$0xff] %v587_v63 }
 0x175   :  { %669 = vst [vmem:[#allocation1 + $0x23] ss:$4 sm:$0xff] %v588_v3  ;;  %v620_v19 = vld.sshfl [vmem:[#allocation1] sm:$0xff pattern:$0x73625140]  ;;  %786 = vmatpush.msra.mxu2 %v566_v9  ;;  %638 = vmatpush.msra.mxu0 %v566_v9 }
 0x176   :  { %800 = vmatpush.msra.mxu3 %v552_v61  ;;  %686 = vmatpush.msra.mxu1 %v552_v61  ;;  %655 = vst [vmem:[#allocation1] ss:$4 sm:$0xff] %v581_v16 }
 0x177   :  { %657 = vst [vmem:[#allocation1 + $0x1] ss:$4 sm:$0xff] %v582_v13  ;;  %787 = vmatpush.msra.mxu2 %v565_v18  ;;  %639 = vmatpush.msra.mxu0 %v565_v18 }
 0x178   :  { %801 = vmatpush.msra.mxu3 %v551_v21  ;;  %687 = vmatpush.msra.mxu1 %v551_v21  ;;  %659 = vst [vmem:[#allocation1 + $0x2] ss:$4 sm:$0xff] %v583_v1 }
 0x179   :  { %661 = vst [vmem:[#allocation1 + $0x3] ss:$4 sm:$0xff] %v584_v27  ;;  %643 = vmatmul.f32.vlgmr.msra.gmra.mxu2 %v621_v20  ;;  %640 = vmatmul.f32.vlgmr.msra.gmra.mxu0 %v620_v19 }
 0x17a   :  { %802 = vmatpush.msra.mxu3 %v550_v8  ;;  %688 = vmatpush.msra.mxu1 %v550_v8 }
 0x17c   :  { %803 = vmatpush.msra.mxu3 %v549_v33  ;;  %689 = vmatpush.msra.mxu1 %v549_v33  ;;  %v671_v30 = vld.sshfl [vmem:[#allocation1 + $0x20] sm:$0xff pattern:$0x73625140] }
 0x17d   :  { %693 = vmatmul.f32.vlgmr.msra.gmra.mxu3 %v671_v30 }
 0x180   :  { %v670_v6 = vld.sshfl [vmem:[#allocation1] sm:$0xff pattern:$0x73625140] }
 0x181   :  { %690 = vmatmul.f32.vlgmr.msra.gmra.mxu1 %v670_v6 }
 0x1f6   :  { %v641_v11 = vpop.f32.mrf.mxu0 }
 0x1fc   :  { %v644_v23 = vpop.f32.mrf.mxu2 }
 0x1fe   :  { %v691_v10 = vpop.f32.mrf.mxu1 }
 0x1ff   :  { %v692_v25 = vadd.f32 %v691_v10, %v641_v11 }
 0x200   :  { %v694_v17 = vpop.f32.mrf.mxu3 }
 0x201   :  { %v701_v2 = vadd.f32 %v879_v22, %v692_v25  ;;  %v695_v15 = vadd.f32 %v694_v17, %v644_v23 }
 0x203   :  { %v705_v12 = vrot.slane %v701_v2, 2  ;;  %v706_v14 = vrot.slane %v701_v2, 4  ;;  %v707_v32 = vrot.slane %v701_v2, 6  ;;  %717 = vst [vmem:[%s2004_s8] sm:$0x3] %v701_v2  ;;  %v702_v31 = vadd.f32 %v879_v22, %v695_v15 }
 0x205   :  { %718 = vst [vmem:[%s2004_s8 + $0x2] sm:$0x3] %v705_v12  ;;  %v708_v24 = vrot.slane %v702_v31, 2  ;;  %v709_v26 = vrot.slane %v702_v31, 4  ;;  %v710_v29 = vrot.slane %v702_v31, 6 }
 0x206   :  { %719 = vst [vmem:[%s2004_s8 + $0x4] sm:$0x3] %v706_v14 }
 0x207   :  { %720 = vst [vmem:[%s2004_s8 + $0x6] sm:$0x3] %v707_v32 }
 0x208   :  { %721 = vst [vmem:[%s2004_s8 + $0x8] sm:$0x3] %v702_v31 }
 0x209   :  { %722 = vst [vmem:[%s2004_s8 + $0xa] sm:$0x3] %v708_v24 }
 0x20a   :  { %723 = vst [vmem:[%s2004_s8 + $0xc] sm:$0x3] %v709_v26 }
 0x20b   :  { %724 = vst [vmem:[%s2004_s8 + $0xe] sm:$0x3] %v710_v29 }

</bundles_post_ra>
